<compile_context>
chip_gen: v7x
topology: tpu7x:2x2x1
jax: 0.10.0
libtpu: 0.0.40
codegen_flags: <defaults>
</compile_context>

<pallas_src>
import functools

import jax
import jax.numpy as jnp
from jax.experimental import pallas as pl
from jax.experimental.pallas import tpu as pltpu

KSIZE = 5
CONV1_HW = 24      # 28 - 5 + 1
POOL1_HW = 12
CONV2_HW = 8       # 12 - 5 + 1
POOL2_HW = 4
C1P = 32           # conv1 output channels 20 -> padded 32
C2P = 32           # conv2 output channels 20 -> padded 32
NCP = 128          # class lanes for the final lane-dense log_softmax / store


def _round_up(n, m):
    return ((n + m - 1) // m) * m


def _vmem_spec():
    return pl.BlockSpec(memory_space=pltpu.MemorySpace.VMEM)


# ---------------------------------------------------------------------------
# Fused Pallas kernel (whole forward pass, single gridless invocation)
# ---------------------------------------------------------------------------
def _net_kernel(lhs_ref, w1_ref, b1_ref, w2_ref, b2_ref, fw1_ref, fb1_ref,
                fw2_ref, fb2_ref, o_ref, p1_ref):
    f32, bf16 = jnp.float32, jnp.bfloat16
    B = o_ref.shape[0]

    # ---- conv1: ONE matmul over all 25 taps x cin (host-side im2col LHS) --------
    acc1 = jnp.dot(lhs_ref[...], w1_ref[...],
                   preferred_element_type=f32)                      # [4*B*144, C1P]

    # ---- maxpool 2x2 + bias + relu -> p1 scratch (one full-tile store) ----------
    # Rows are ordered (dy, dx, b, ph, pw): each pooling quadrant is a contiguous
    # block of rows, so the 2x2 max is three vector maxes with zero shuffling.
    v = acc1.reshape(4, B, POOL1_HW, POOL1_HW, C1P)
    pooled1 = jnp.maximum(jnp.maximum(v[0], v[1]), jnp.maximum(v[2], v[3]))
    flat1 = pooled1.reshape(B * POOL1_HW * POOL1_HW, C1P)
    p1 = jnp.maximum(flat1 + b1_ref[...], 0.0)
    p1_ref[...] = p1.reshape(B, POOL1_HW, POOL1_HW, C1P)

    # ---- conv2: 25 compact K=32 taps; f32 accumulator (16 vregs) stays live -----
    # TODO(synk): nn.Dropout2d(p=0.5) / F.dropout are identity in inference mode.
    m2 = B * CONV2_HW * CONV2_HW
    acc2 = jnp.zeros((m2, C2P), f32)
    for k in range(KSIZE * KSIZE):
        di, dj = divmod(k, KSIZE)
        xs = p1_ref[:, di:di + CONV2_HW, dj:dj + CONV2_HW, :]       # [B,8,8,C1P]
        xs = xs.reshape(m2, C1P).astype(bf16)
        acc2 = acc2 + jnp.dot(xs, w2_ref[k], preferred_element_type=f32)

    # ---- maxpool 2x2 + bias + relu fused with fc1 (16 plain 2-D dots) -----------
    v2 = acc2.reshape(B, POOL2_HW, 2, CONV2_HW, C2P)
    hmax2 = jnp.maximum(v2[:, :, 0], v2[:, :, 1])                   # [B,4,8,C2P]
    HP = fw1_ref.shape[-1]
    h1 = jnp.zeros((B, HP), f32)
    for s in range(POOL2_HW * POOL2_HW):
        ph, pw = divmod(s, POOL2_HW)
        a = hmax2[:, ph:ph + 1, 2 * pw:2 * pw + 1, :].reshape(B, C2P)
        b = hmax2[:, ph:ph + 1, 2 * pw + 1:2 * pw + 2, :].reshape(B, C2P)
        act = jnp.maximum(jnp.maximum(a, b) + b2_ref[...], 0.0).astype(bf16)
        h1 = h1 + jnp.dot(act, fw1_ref[s], preferred_element_type=f32)
    h1 = jnp.maximum(h1 + fb1_ref[...], 0.0)                        # [B, HP]

    # ---- fc2 + log_softmax (padded class lanes carry bias = -1e30 -> masked) ----
    logits = jnp.dot(h1.astype(bf16), fw2_ref[...],
                     preferred_element_type=f32) + fb2_ref[...]     # [B, NCP]
    mx = jnp.max(logits, axis=-1, keepdims=True)
    z = logits - mx
    lse = jnp.log(jnp.sum(jnp.exp(z), axis=-1, keepdims=True))
    o_ref[...] = z - lse


# ---------------------------------------------------------------------------
# Host-side packing: im2col for conv1, compact lane-dense weights
# ---------------------------------------------------------------------------
def prepare_inputs(x_nchw):
    """x [B,Cin,28,28] -> bf16 im2col LHS [4*B*144, round8(25*Cin)].

    Row order (dy, dx, b, ph, pw) so pooling quadrants are contiguous row blocks.
    K order (ki, kj, c) matches w1k."""
    B, cin, H, W = x_nchw.shape
    assert (H, W) == (28, 28), "Net's fc1(320) requires 28x28 spatial inputs"
    x = jnp.transpose(x_nchw, (0, 2, 3, 1)).astype(jnp.float32)     # NHWC
    taps = []
    for ki in range(KSIZE):
        for kj in range(KSIZE):
            taps.append(x[:, ki:ki + CONV1_HW, kj:kj + CONV1_HW, :])
    patches = jnp.stack(taps, axis=3)                               # [B,24,24,25,cin]
    k_real = KSIZE * KSIZE * cin
    patches = patches.reshape(B, CONV1_HW, CONV1_HW, k_real)
    p = patches.reshape(B, POOL1_HW, 2, POOL1_HW, 2, k_real)        # (b,ph,dy,pw,dx,K)
    p = jnp.transpose(p, (2, 4, 0, 1, 3, 5))                        # (dy,dx,b,ph,pw,K)
    lhs = p.reshape(4 * B * POOL1_HW * POOL1_HW, k_real)
    k_pad = _round_up(k_real, 8)
    lhs = jnp.pad(lhs, ((0, 0), (0, k_pad - k_real)))
    return lhs.astype(jnp.bfloat16)


def prepare_params(params, in_channels, hidden_size, num_classes):
    w1, b1, w2, b2, fw1, fb1, fw2, fb2 = params
    assert num_classes <= NCP
    bf16, f32 = jnp.bfloat16, jnp.float32
    k1_real = KSIZE * KSIZE * in_channels
    k1_pad = _round_up(k1_real, 8)
    hp = _round_up(max(hidden_size, 8), 8)

    # conv1 weight [20, Cin, 5, 5] -> [k1_pad, C1P], K ordered (ki, kj, c)
    w1k = jnp.transpose(w1, (2, 3, 1, 0)).reshape(k1_real, 20)
    w1k = jnp.pad(w1k, ((0, k1_pad - k1_real), (0, C1P - 20))).astype(bf16)
    b1p = jnp.pad(b1, (0, C1P - 20)).reshape(1, C1P).astype(f32)

    # conv2 weight [20, 20, 5, 5] -> compact [25, C1P, C2P]
    w2k = jnp.transpose(w2, (2, 3, 1, 0)).reshape(KSIZE * KSIZE, 20, 20)
    w2k = jnp.pad(w2k, ((0, 0), (0, C1P - 20), (0, C2P - 20))).astype(bf16)
    b2p = jnp.pad(b2, (0, C2P - 20)).reshape(1, C2P).astype(f32)

    # fc1 weight [hidden, 320]; 320 indexes (c, h, w) in PyTorch's NCHW flatten.
    # Re-permute once so the kernel consumes NHWC-pooled activations directly.
    w_fc1 = fw1.reshape(hidden_size, 20, POOL2_HW, POOL2_HW)        # [n, c, h, w]
    w_fc1 = jnp.transpose(w_fc1, (2, 3, 1, 0)).reshape(POOL2_HW * POOL2_HW, 20,
                                                       hidden_size)
    w_fc1 = jnp.pad(w_fc1, ((0, 0), (0, C2P - 20),
                            (0, hp - hidden_size))).astype(bf16)
    fb1p = jnp.pad(fb1, (0, hp - hidden_size)).reshape(1, hp).astype(f32)

    # fc2 weight [classes, hidden] -> [hp, NCP]; padded class lanes get bias -1e30
    # so they vanish from the in-kernel log_softmax.
    w_fc2 = jnp.pad(fw2.T, ((0, hp - hidden_size), (0, NCP - num_classes))).astype(bf16)
    fb2p = jnp.pad(fb2, (0, NCP - num_classes))
    fb2p = jnp.where(jnp.arange(NCP) < num_classes, fb2p, -1e30).reshape(1, NCP)
    fb2p = fb2p.astype(f32)

    return (w1k, b1p, w2k, b2p, w_fc1, fb1p, w_fc2, fb2p)


@functools.partial(jax.jit, static_argnames=("num_classes",))
def net_forward(x_nchw, prepared, *, num_classes):
    """Inference-mode forward pass of Net as a single fused Pallas TPU kernel."""
    B = x_nchw.shape[0]
    lhs = prepare_inputs(x_nchw)
    args = (lhs,) + tuple(prepared)
    out = pl.pallas_call(
        _net_kernel,
        out_shape=jax.ShapeDtypeStruct((B, NCP), jnp.float32),
        in_specs=[_vmem_spec() for _ in args],
        out_specs=_vmem_spec(),
        scratch_shapes=[
            pltpu.VMEM((B, POOL1_HW, POOL1_HW, C1P), jnp.float32),  # pooled conv1
        ],
    )(*args)
    return out[:, :num_classes]


# ---------------------------------------------------------------------------
# Pure-JAX reference (for correctness check) and parameter init
# ---------------------------------------------------------------------------
def _reference_forward(x_nchw, params):
    w1, b1, w2, b2, fw1, fb1, fw2, fb2 = params

    def conv(x, w, b):
        y = jax.lax.conv_general_dilated(
            x, w, (1, 1), "VALID", dimension_numbers=("NCHW", "OIHW", "NCHW"))
        return y + b[None, :, None, None]

    def pool_relu(x):
        y = jax.lax.reduce_window(x, -jnp.inf, jax.lax.max,
                                  (1, 1, 2, 2), (1, 1, 2, 2), "VALID")
        return jnp.maximum(y, 0.0)

    B = x_nchw.shape[0]
    y = pool_relu(conv(x_nchw, w1, b1))
    y = pool_relu(conv(y, w2, b2))
    y = y.reshape(B, -1)                           # NCHW flatten -> 320
    y = jnp.maximum(y @ fw1.T + fb1, 0.0)
    logits = y @ fw2.T + fb2
    return jax.nn.log_softmax(logits, axis=1)


def init_params(key, in_channels, hidden_size, num_classes):
    def uniform(k, shape, fan_in):
        bound = 1.0 / jnp.sqrt(jnp.float32(fan_in))
        return jax.random.uniform(k, shape, jnp.float32, -bound, bound)

    ks = jax.random.split(key, 8)
    w1 = uniform(ks[0], (20, in_channels, 5, 5), in_channels * 25)
    b1 = uniform(ks[1], (20,), in_channels * 25)
    w2 = uniform(ks[2], (20, 20, 5, 5), 20 * 25)
    b2 = uniform(ks[3], (20,), 20 * 25)
    fw1 = uniform(ks[4], (hidden_size, 320), 320)
    fb1 = uniform(ks[5], (hidden_size,), 320)
    fw2 = uniform(ks[6], (num_classes, hidden_size), hidden_size)
    fb2 = uniform(ks[7], (num_classes,), hidden_size)
    return (w1, b1, w2, b2, fw1, fb1, fw2, fb2)


if __name__ == "__main__":
    # cfg: in_channels=1, hidden_size=32, num_classes=10; spatial must be 28x28
    # so that the flattened feature count is 320 (= 20 * 4 * 4).
    B, C_in, H, W = 2, 1, 28, 28
    hidden_size, num_classes = 32, 10

    key = jax.random.PRNGKey(0)
    k_x, k_p = jax.random.split(key)
    x = jax.random.normal(k_x, (B, C_in, H, W), jnp.float32)
    params = init_params(k_p, C_in, hidden_size, num_classes)
    prepared = prepare_params(params, C_in, hidden_size, num_classes)

    out = net_forward(x, prepared, num_classes=num_classes)
    jax.block_until_ready(out)
    assert out.shape == (B, num_classes)

    ref = _reference_forward(x, params)
    err = float(jnp.max(jnp.abs(out - ref)))
    assert err < 1e-1, f"max |pallas - reference| = {err}"
    print("KERNEL_OK")
</pallas_src>

<mosaic_0001>
module attributes {stable_mosaic.version = 11 : i64} {
  func.func @_net_kernel(%arg0: memref<1152x32xbf16, #tpu.memory_space<vmem>>, %arg1: memref<32x32xbf16, #tpu.memory_space<vmem>>, %arg2: memref<1x32xf32, #tpu.memory_space<vmem>>, %arg3: memref<25x32x32xbf16, #tpu.memory_space<vmem>>, %arg4: memref<1x32xf32, #tpu.memory_space<vmem>>, %arg5: memref<16x32x32xbf16, #tpu.memory_space<vmem>>, %arg6: memref<1x32xf32, #tpu.memory_space<vmem>>, %arg7: memref<32x128xbf16, #tpu.memory_space<vmem>>, %arg8: memref<1x128xf32, #tpu.memory_space<vmem>>, %arg9: memref<2x128xf32, #tpu.memory_space<vmem>>, %arg10: memref<2x12x12x32xf32, #tpu.memory_space<vmem>>) attributes {dimension_semantics = [], scalar_prefetch = 0 : i64, scratch_operands = 1 : i64, tpu.core_type = #tpu.core_type<tc>} {
    %c0 = arith.constant 0 : index
    %c0_0 = arith.constant 0 : index
    %0 = vector.load %arg0[%c0, %c0_0] : memref<1152x32xbf16, #tpu.memory_space<vmem>>, vector<1152x32xbf16>
    %c0_1 = arith.constant 0 : index
    %c0_2 = arith.constant 0 : index
    %1 = vector.load %arg1[%c0_1, %c0_2] : memref<32x32xbf16, #tpu.memory_space<vmem>>, vector<32x32xbf16>
    %cst = arith.constant dense<0.000000e+00> : vector<1152x32xf32>
    %2 = tpu.matmul %0, %1, %cst {dimension_numbers = #tpu.dot_dimension_numbers<[1], [0], [0], [1], [0, 0, 1, 1], [], []>} : vector<1152x32xbf16>, vector<32x32xbf16>, vector<1152x32xf32> -> vector<1152x32xf32>
    %3 = vector.shape_cast %2 : vector<1152x32xf32> to vector<4x2x12x12x32xf32>
    %4 = vector.extract_strided_slice %3 {offsets = [0, 0, 0, 0, 0], sizes = [1, 2, 12, 12, 32], strides = [1, 1, 1, 1, 1]} : vector<4x2x12x12x32xf32> to vector<1x2x12x12x32xf32>
    %5 = vector.shape_cast %4 : vector<1x2x12x12x32xf32> to vector<2x12x12x32xf32>
    %6 = vector.extract_strided_slice %3 {offsets = [1, 0, 0, 0, 0], sizes = [1, 2, 12, 12, 32], strides = [1, 1, 1, 1, 1]} : vector<4x2x12x12x32xf32> to vector<1x2x12x12x32xf32>
    %7 = vector.shape_cast %6 : vector<1x2x12x12x32xf32> to vector<2x12x12x32xf32>
    %8 = arith.maximumf %5, %7 : vector<2x12x12x32xf32>
    %9 = vector.extract_strided_slice %3 {offsets = [2, 0, 0, 0, 0], sizes = [1, 2, 12, 12, 32], strides = [1, 1, 1, 1, 1]} : vector<4x2x12x12x32xf32> to vector<1x2x12x12x32xf32>
    %10 = vector.shape_cast %9 : vector<1x2x12x12x32xf32> to vector<2x12x12x32xf32>
    %11 = vector.extract_strided_slice %3 {offsets = [3, 0, 0, 0, 0], sizes = [1, 2, 12, 12, 32], strides = [1, 1, 1, 1, 1]} : vector<4x2x12x12x32xf32> to vector<1x2x12x12x32xf32>
    %12 = vector.shape_cast %11 : vector<1x2x12x12x32xf32> to vector<2x12x12x32xf32>
    %13 = arith.maximumf %10, %12 : vector<2x12x12x32xf32>
    %14 = arith.maximumf %8, %13 : vector<2x12x12x32xf32>
    %15 = vector.shape_cast %14 : vector<2x12x12x32xf32> to vector<288x32xf32>
    %c0_3 = arith.constant 0 : index
    %c0_4 = arith.constant 0 : index
    %16 = vector.load %arg2[%c0_3, %c0_4] : memref<1x32xf32, #tpu.memory_space<vmem>>, vector<1x32xf32>
    %17 = vector.broadcast %16 : vector<1x32xf32> to vector<288x32xf32>
    %18 = arith.addf %15, %17 : vector<288x32xf32>
    %cst_5 = arith.constant 0.000000e+00 : f32
    %19 = vector.broadcast %cst_5 : f32 to vector<288x32xf32>
    %20 = arith.maximumf %18, %19 : vector<288x32xf32>
    %21 = vector.shape_cast %20 : vector<288x32xf32> to vector<2x12x12x32xf32>
    %c0_6 = arith.constant 0 : index
    %c0_7 = arith.constant 0 : index
    %c0_8 = arith.constant 0 : index
    %c0_9 = arith.constant 0 : index
    %22 = vector.load %arg10[%c0_6, %c0_7, %c0_8, %c0_9] : memref<2x12x12x32xf32, #tpu.memory_space<vmem>>, vector<2x12x12x32xf32>
    tpu.vector_store %arg10[%c0_6, %c0_7, %c0_8, %c0_9], %21 {strides = array<i32>} : memref<2x12x12x32xf32, #tpu.memory_space<vmem>>, vector<2x12x12x32xf32>,
    %cst_10 = arith.constant 0.000000e+00 : f32
    %23 = vector.broadcast %cst_10 : f32 to vector<128x32xf32>
    %c0_11 = arith.constant 0 : index
    %c0_12 = arith.constant 0 : index
    %c0_13 = arith.constant 0 : index
    %c0_14 = arith.constant 0 : index
    %24 = vector.load %arg10[%c0_11, %c0_12, %c0_13, %c0_14] : memref<2x12x12x32xf32, #tpu.memory_space<vmem>>, vector<2x8x8x32xf32>
    %25 = vector.shape_cast %24 : vector<2x8x8x32xf32> to vector<128x32xf32>
    %26 = arith.truncf %25 : vector<128x32xf32> to vector<128x32xbf16>
    %c0_15 = arith.constant 0 : index
    %c0_16 = arith.constant 0 : index
    %c0_17 = arith.constant 0 : index
    %27 = vector.load %arg3[%c0_15, %c0_16, %c0_17] : memref<25x32x32xbf16, #tpu.memory_space<vmem>>, vector<1x32x32xbf16>
    %28 = vector.shape_cast %27 : vector<1x32x32xbf16> to vector<32x32xbf16>
    %cst_18 = arith.constant dense<0.000000e+00> : vector<128x32xf32>
    %29 = tpu.matmul %26, %28, %cst_18 {dimension_numbers = #tpu.dot_dimension_numbers<[1], [0], [0], [1], [0, 0, 1, 1], [], []>} : vector<128x32xbf16>, vector<32x32xbf16>, vector<128x32xf32> -> vector<128x32xf32>
    %30 = arith.addf %23, %29 : vector<128x32xf32>
    %c0_19 = arith.constant 0 : index
    %c0_20 = arith.constant 0 : index
    %c1 = arith.constant 1 : index
    %c0_21 = arith.constant 0 : index
    %31 = vector.load %arg10[%c0_19, %c0_20, %c1, %c0_21] : memref<2x12x12x32xf32, #tpu.memory_space<vmem>>, vector<2x8x8x32xf32>
    %32 = vector.shape_cast %31 : vector<2x8x8x32xf32> to vector<128x32xf32>
    %33 = arith.truncf %32 : vector<128x32xf32> to vector<128x32xbf16>
    %c1_22 = arith.constant 1 : index
    %c0_23 = arith.constant 0 : index
    %c0_24 = arith.constant 0 : index
    %34 = vector.load %arg3[%c1_22, %c0_23, %c0_24] : memref<25x32x32xbf16, #tpu.memory_space<vmem>>, vector<1x32x32xbf16>
    %35 = vector.shape_cast %34 : vector<1x32x32xbf16> to vector<32x32xbf16>
    %cst_25 = arith.constant dense<0.000000e+00> : vector<128x32xf32>
    %36 = tpu.matmul %33, %35, %cst_25 {dimension_numbers = #tpu.dot_dimension_numbers<[1], [0], [0], [1], [0, 0, 1, 1], [], []>} : vector<128x32xbf16>, vector<32x32xbf16>, vector<128x32xf32> -> vector<128x32xf32>
    %37 = arith.addf %30, %36 : vector<128x32xf32>
    %c0_26 = arith.constant 0 : index
    %c0_27 = arith.constant 0 : index
    %c2 = arith.constant 2 : index
    %c0_28 = arith.constant 0 : index
    %38 = vector.load %arg10[%c0_26, %c0_27, %c2, %c0_28] : memref<2x12x12x32xf32, #tpu.memory_space<vmem>>, vector<2x8x8x32xf32>
    %39 = vector.shape_cast %38 : vector<2x8x8x32xf32> to vector<128x32xf32>
    %40 = arith.truncf %39 : vector<128x32xf32> to vector<128x32xbf16>
    %c2_29 = arith.constant 2 : index
    %c0_30 = arith.constant 0 : index
    %c0_31 = arith.constant 0 : index
    %41 = vector.load %arg3[%c2_29, %c0_30, %c0_31] : memref<25x32x32xbf16, #tpu.memory_space<vmem>>, vector<1x32x32xbf16>
    %42 = vector.shape_cast %41 : vector<1x32x32xbf16> to vector<32x32xbf16>
    %cst_32 = arith.constant dense<0.000000e+00> : vector<128x32xf32>
    %43 = tpu.matmul %40, %42, %cst_32 {dimension_numbers = #tpu.dot_dimension_numbers<[1], [0], [0], [1], [0, 0, 1, 1], [], []>} : vector<128x32xbf16>, vector<32x32xbf16>, vector<128x32xf32> -> vector<128x32xf32>
    %44 = arith.addf %37, %43 : vector<128x32xf32>
    %c0_33 = arith.constant 0 : index
    %c0_34 = arith.constant 0 : index
    %c3 = arith.constant 3 : index
    %c0_35 = arith.constant 0 : index
    %45 = vector.load %arg10[%c0_33, %c0_34, %c3, %c0_35] : memref<2x12x12x32xf32, #tpu.memory_space<vmem>>, vector<2x8x8x32xf32>
    %46 = vector.shape_cast %45 : vector<2x8x8x32xf32> to vector<128x32xf32>
    %47 = arith.truncf %46 : vector<128x32xf32> to vector<128x32xbf16>
    %c3_36 = arith.constant 3 : index
    %c0_37 = arith.constant 0 : index
    %c0_38 = arith.constant 0 : index
    %48 = vector.load %arg3[%c3_36, %c0_37, %c0_38] : memref<25x32x32xbf16, #tpu.memory_space<vmem>>, vector<1x32x32xbf16>
    %49 = vector.shape_cast %48 : vector<1x32x32xbf16> to vector<32x32xbf16>
    %cst_39 = arith.constant dense<0.000000e+00> : vector<128x32xf32>
    %50 = tpu.matmul %47, %49, %cst_39 {dimension_numbers = #tpu.dot_dimension_numbers<[1], [0], [0], [1], [0, 0, 1, 1], [], []>} : vector<128x32xbf16>, vector<32x32xbf16>, vector<128x32xf32> -> vector<128x32xf32>
    %51 = arith.addf %44, %50 : vector<128x32xf32>
    %c0_40 = arith.constant 0 : index
    %c0_41 = arith.constant 0 : index
    %c4 = arith.constant 4 : index
    %c0_42 = arith.constant 0 : index
    %52 = vector.load %arg10[%c0_40, %c0_41, %c4, %c0_42] : memref<2x12x12x32xf32, #tpu.memory_space<vmem>>, vector<2x8x8x32xf32>
    %53 = vector.shape_cast %52 : vector<2x8x8x32xf32> to vector<128x32xf32>
    %54 = arith.truncf %53 : vector<128x32xf32> to vector<128x32xbf16>
    %c4_43 = arith.constant 4 : index
    %c0_44 = arith.constant 0 : index
    %c0_45 = arith.constant 0 : index
    %55 = vector.load %arg3[%c4_43, %c0_44, %c0_45] : memref<25x32x32xbf16, #tpu.memory_space<vmem>>, vector<1x32x32xbf16>
    %56 = vector.shape_cast %55 : vector<1x32x32xbf16> to vector<32x32xbf16>
    %cst_46 = arith.constant dense<0.000000e+00> : vector<128x32xf32>
    %57 = tpu.matmul %54, %56, %cst_46 {dimension_numbers = #tpu.dot_dimension_numbers<[1], [0], [0], [1], [0, 0, 1, 1], [], []>} : vector<128x32xbf16>, vector<32x32xbf16>, vector<128x32xf32> -> vector<128x32xf32>
    %58 = arith.addf %51, %57 : vector<128x32xf32>
    %c0_47 = arith.constant 0 : index
    %c1_48 = arith.constant 1 : index
    %c0_49 = arith.constant 0 : index
    %c0_50 = arith.constant 0 : index
    %59 = vector.load %arg10[%c0_47, %c1_48, %c0_49, %c0_50] : memref<2x12x12x32xf32, #tpu.memory_space<vmem>>, vector<2x8x8x32xf32>
    %60 = vector.shape_cast %59 : vector<2x8x8x32xf32> to vector<128x32xf32>
    %61 = arith.truncf %60 : vector<128x32xf32> to vector<128x32xbf16>
    %c5 = arith.constant 5 : index
    %c0_51 = arith.constant 0 : index
    %c0_52 = arith.constant 0 : index
    %62 = vector.load %arg3[%c5, %c0_51, %c0_52] : memref<25x32x32xbf16, #tpu.memory_space<vmem>>, vector<1x32x32xbf16>
    %63 = vector.shape_cast %62 : vector<1x32x32xbf16> to vector<32x32xbf16>
    %cst_53 = arith.constant dense<0.000000e+00> : vector<128x32xf32>
    %64 = tpu.matmul %61, %63, %cst_53 {dimension_numbers = #tpu.dot_dimension_numbers<[1], [0], [0], [1], [0, 0, 1, 1], [], []>} : vector<128x32xbf16>, vector<32x32xbf16>, vector<128x32xf32> -> vector<128x32xf32>
    %65 = arith.addf %58, %64 : vector<128x32xf32>
    %c0_54 = arith.constant 0 : index
    %c1_55 = arith.constant 1 : index
    %c1_56 = arith.constant 1 : index
    %c0_57 = arith.constant 0 : index
    %66 = vector.load %arg10[%c0_54, %c1_55, %c1_56, %c0_57] : memref<2x12x12x32xf32, #tpu.memory_space<vmem>>, vector<2x8x8x32xf32>
    %67 = vector.shape_cast %66 : vector<2x8x8x32xf32> to vector<128x32xf32>
    %68 = arith.truncf %67 : vector<128x32xf32> to vector<128x32xbf16>
    %c6 = arith.constant 6 : index
    %c0_58 = arith.constant 0 : index
    %c0_59 = arith.constant 0 : index
    %69 = vector.load %arg3[%c6, %c0_58, %c0_59] : memref<25x32x32xbf16, #tpu.memory_space<vmem>>, vector<1x32x32xbf16>
    %70 = vector.shape_cast %69 : vector<1x32x32xbf16> to vector<32x32xbf16>
    %cst_60 = arith.constant dense<0.000000e+00> : vector<128x32xf32>
    %71 = tpu.matmul %68, %70, %cst_60 {dimension_numbers = #tpu.dot_dimension_numbers<[1], [0], [0], [1], [0, 0, 1, 1], [], []>} : vector<128x32xbf16>, vector<32x32xbf16>, vector<128x32xf32> -> vector<128x32xf32>
    %72 = arith.addf %65, %71 : vector<128x32xf32>
    %c0_61 = arith.constant 0 : index
    %c1_62 = arith.constant 1 : index
    %c2_63 = arith.constant 2 : index
    %c0_64 = arith.constant 0 : index
    %73 = vector.load %arg10[%c0_61, %c1_62, %c2_63, %c0_64] : memref<2x12x12x32xf32, #tpu.memory_space<vmem>>, vector<2x8x8x32xf32>
    %74 = vector.shape_cast %73 : vector<2x8x8x32xf32> to vector<128x32xf32>
    %75 = arith.truncf %74 : vector<128x32xf32> to vector<128x32xbf16>
    %c7 = arith.constant 7 : index
    %c0_65 = arith.constant 0 : index
    %c0_66 = arith.constant 0 : index
    %76 = vector.load %arg3[%c7, %c0_65, %c0_66] : memref<25x32x32xbf16, #tpu.memory_space<vmem>>, vector<1x32x32xbf16>
    %77 = vector.shape_cast %76 : vector<1x32x32xbf16> to vector<32x32xbf16>
    %cst_67 = arith.constant dense<0.000000e+00> : vector<128x32xf32>
    %78 = tpu.matmul %75, %77, %cst_67 {dimension_numbers = #tpu.dot_dimension_numbers<[1], [0], [0], [1], [0, 0, 1, 1], [], []>} : vector<128x32xbf16>, vector<32x32xbf16>, vector<128x32xf32> -> vector<128x32xf32>
    %79 = arith.addf %72, %78 : vector<128x32xf32>
    %c0_68 = arith.constant 0 : index
    %c1_69 = arith.constant 1 : index
    %c3_70 = arith.constant 3 : index
    %c0_71 = arith.constant 0 : index
    %80 = vector.load %arg10[%c0_68, %c1_69, %c3_70, %c0_71] : memref<2x12x12x32xf32, #tpu.memory_space<vmem>>, vector<2x8x8x32xf32>
    %81 = vector.shape_cast %80 : vector<2x8x8x32xf32> to vector<128x32xf32>
    %82 = arith.truncf %81 : vector<128x32xf32> to vector<128x32xbf16>
    %c8 = arith.constant 8 : index
    %c0_72 = arith.constant 0 : index
    %c0_73 = arith.constant 0 : index
    %83 = vector.load %arg3[%c8, %c0_72, %c0_73] : memref<25x32x32xbf16, #tpu.memory_space<vmem>>, vector<1x32x32xbf16>
    %84 = vector.shape_cast %83 : vector<1x32x32xbf16> to vector<32x32xbf16>
    %cst_74 = arith.constant dense<0.000000e+00> : vector<128x32xf32>
    %85 = tpu.matmul %82, %84, %cst_74 {dimension_numbers = #tpu.dot_dimension_numbers<[1], [0], [0], [1], [0, 0, 1, 1], [], []>} : vector<128x32xbf16>, vector<32x32xbf16>, vector<128x32xf32> -> vector<128x32xf32>
    %86 = arith.addf %79, %85 : vector<128x32xf32>
    %c0_75 = arith.constant 0 : index
    %c1_76 = arith.constant 1 : index
    %c4_77 = arith.constant 4 : index
    %c0_78 = arith.constant 0 : index
    %87 = vector.load %arg10[%c0_75, %c1_76, %c4_77, %c0_78] : memref<2x12x12x32xf32, #tpu.memory_space<vmem>>, vector<2x8x8x32xf32>
    %88 = vector.shape_cast %87 : vector<2x8x8x32xf32> to vector<128x32xf32>
    %89 = arith.truncf %88 : vector<128x32xf32> to vector<128x32xbf16>
    %c9 = arith.constant 9 : index
    %c0_79 = arith.constant 0 : index
    %c0_80 = arith.constant 0 : index
    %90 = vector.load %arg3[%c9, %c0_79, %c0_80] : memref<25x32x32xbf16, #tpu.memory_space<vmem>>, vector<1x32x32xbf16>
    %91 = vector.shape_cast %90 : vector<1x32x32xbf16> to vector<32x32xbf16>
    %cst_81 = arith.constant dense<0.000000e+00> : vector<128x32xf32>
    %92 = tpu.matmul %89, %91, %cst_81 {dimension_numbers = #tpu.dot_dimension_numbers<[1], [0], [0], [1], [0, 0, 1, 1], [], []>} : vector<128x32xbf16>, vector<32x32xbf16>, vector<128x32xf32> -> vector<128x32xf32>
    %93 = arith.addf %86, %92 : vector<128x32xf32>
    %c0_82 = arith.constant 0 : index
    %c2_83 = arith.constant 2 : index
    %c0_84 = arith.constant 0 : index
    %c0_85 = arith.constant 0 : index
    %94 = vector.load %arg10[%c0_82, %c2_83, %c0_84, %c0_85] : memref<2x12x12x32xf32, #tpu.memory_space<vmem>>, vector<2x8x8x32xf32>
    %95 = vector.shape_cast %94 : vector<2x8x8x32xf32> to vector<128x32xf32>
    %96 = arith.truncf %95 : vector<128x32xf32> to vector<128x32xbf16>
    %c10 = arith.constant 10 : index
    %c0_86 = arith.constant 0 : index
    %c0_87 = arith.constant 0 : index
    %97 = vector.load %arg3[%c10, %c0_86, %c0_87] : memref<25x32x32xbf16, #tpu.memory_space<vmem>>, vector<1x32x32xbf16>
    %98 = vector.shape_cast %97 : vector<1x32x32xbf16> to vector<32x32xbf16>
    %cst_88 = arith.constant dense<0.000000e+00> : vector<128x32xf32>
    %99 = tpu.matmul %96, %98, %cst_88 {dimension_numbers = #tpu.dot_dimension_numbers<[1], [0], [0], [1], [0, 0, 1, 1], [], []>} : vector<128x32xbf16>, vector<32x32xbf16>, vector<128x32xf32> -> vector<128x32xf32>
    %100 = arith.addf %93, %99 : vector<128x32xf32>
    %c0_89 = arith.constant 0 : index
    %c2_90 = arith.constant 2 : index
    %c1_91 = arith.constant 1 : index
    %c0_92 = arith.constant 0 : index
    %101 = vector.load %arg10[%c0_89, %c2_90, %c1_91, %c0_92] : memref<2x12x12x32xf32, #tpu.memory_space<vmem>>, vector<2x8x8x32xf32>
    %102 = vector.shape_cast %101 : vector<2x8x8x32xf32> to vector<128x32xf32>
    %103 = arith.truncf %102 : vector<128x32xf32> to vector<128x32xbf16>
    %c11 = arith.constant 11 : index
    %c0_93 = arith.constant 0 : index
    %c0_94 = arith.constant 0 : index
    %104 = vector.load %arg3[%c11, %c0_93, %c0_94] : memref<25x32x32xbf16, #tpu.memory_space<vmem>>, vector<1x32x32xbf16>
    %105 = vector.shape_cast %104 : vector<1x32x32xbf16> to vector<32x32xbf16>
    %cst_95 = arith.constant dense<0.000000e+00> : vector<128x32xf32>
    %106 = tpu.matmul %103, %105, %cst_95 {dimension_numbers = #tpu.dot_dimension_numbers<[1], [0], [0], [1], [0, 0, 1, 1], [], []>} : vector<128x32xbf16>, vector<32x32xbf16>, vector<128x32xf32> -> vector<128x32xf32>
    %107 = arith.addf %100, %106 : vector<128x32xf32>
    %c0_96 = arith.constant 0 : index
    %c2_97 = arith.constant 2 : index
    %c2_98 = arith.constant 2 : index
    %c0_99 = arith.constant 0 : index
    %108 = vector.load %arg10[%c0_96, %c2_97, %c2_98, %c0_99] : memref<2x12x12x32xf32, #tpu.memory_space<vmem>>, vector<2x8x8x32xf32>
    %109 = vector.shape_cast %108 : vector<2x8x8x32xf32> to vector<128x32xf32>
    %110 = arith.truncf %109 : vector<128x32xf32> to vector<128x32xbf16>
    %c12 = arith.constant 12 : index
    %c0_100 = arith.constant 0 : index
    %c0_101 = arith.constant 0 : index
    %111 = vector.load %arg3[%c12, %c0_100, %c0_101] : memref<25x32x32xbf16, #tpu.memory_space<vmem>>, vector<1x32x32xbf16>
    %112 = vector.shape_cast %111 : vector<1x32x32xbf16> to vector<32x32xbf16>
    %cst_102 = arith.constant dense<0.000000e+00> : vector<128x32xf32>
    %113 = tpu.matmul %110, %112, %cst_102 {dimension_numbers = #tpu.dot_dimension_numbers<[1], [0], [0], [1], [0, 0, 1, 1], [], []>} : vector<128x32xbf16>, vector<32x32xbf16>, vector<128x32xf32> -> vector<128x32xf32>
    %114 = arith.addf %107, %113 : vector<128x32xf32>
    %c0_103 = arith.constant 0 : index
    %c2_104 = arith.constant 2 : index
    %c3_105 = arith.constant 3 : index
    %c0_106 = arith.constant 0 : index
    %115 = vector.load %arg10[%c0_103, %c2_104, %c3_105, %c0_106] : memref<2x12x12x32xf32, #tpu.memory_space<vmem>>, vector<2x8x8x32xf32>
    %116 = vector.shape_cast %115 : vector<2x8x8x32xf32> to vector<128x32xf32>
    %117 = arith.truncf %116 : vector<128x32xf32> to vector<128x32xbf16>
    %c13 = arith.constant 13 : index
    %c0_107 = arith.constant 0 : index
    %c0_108 = arith.constant 0 : index
    %118 = vector.load %arg3[%c13, %c0_107, %c0_108] : memref<25x32x32xbf16, #tpu.memory_space<vmem>>, vector<1x32x32xbf16>
    %119 = vector.shape_cast %118 : vector<1x32x32xbf16> to vector<32x32xbf16>
    %cst_109 = arith.constant dense<0.000000e+00> : vector<128x32xf32>
    %120 = tpu.matmul %117, %119, %cst_109 {dimension_numbers = #tpu.dot_dimension_numbers<[1], [0], [0], [1], [0, 0, 1, 1], [], []>} : vector<128x32xbf16>, vector<32x32xbf16>, vector<128x32xf32> -> vector<128x32xf32>
    %121 = arith.addf %114, %120 : vector<128x32xf32>
    %c0_110 = arith.constant 0 : index
    %c2_111 = arith.constant 2 : index
    %c4_112 = arith.constant 4 : index
    %c0_113 = arith.constant 0 : index
    %122 = vector.load %arg10[%c0_110, %c2_111, %c4_112, %c0_113] : memref<2x12x12x32xf32, #tpu.memory_space<vmem>>, vector<2x8x8x32xf32>
    %123 = vector.shape_cast %122 : vector<2x8x8x32xf32> to vector<128x32xf32>
    %124 = arith.truncf %123 : vector<128x32xf32> to vector<128x32xbf16>
    %c14 = arith.constant 14 : index
    %c0_114 = arith.constant 0 : index
    %c0_115 = arith.constant 0 : index
    %125 = vector.load %arg3[%c14, %c0_114, %c0_115] : memref<25x32x32xbf16, #tpu.memory_space<vmem>>, vector<1x32x32xbf16>
    %126 = vector.shape_cast %125 : vector<1x32x32xbf16> to vector<32x32xbf16>
    %cst_116 = arith.constant dense<0.000000e+00> : vector<128x32xf32>
    %127 = tpu.matmul %124, %126, %cst_116 {dimension_numbers = #tpu.dot_dimension_numbers<[1], [0], [0], [1], [0, 0, 1, 1], [], []>} : vector<128x32xbf16>, vector<32x32xbf16>, vector<128x32xf32> -> vector<128x32xf32>
    %128 = arith.addf %121, %127 : vector<128x32xf32>
    %c0_117 = arith.constant 0 : index
    %c3_118 = arith.constant 3 : index
    %c0_119 = arith.constant 0 : index
    %c0_120 = arith.constant 0 : index
    %129 = vector.load %arg10[%c0_117, %c3_118, %c0_119, %c0_120] : memref<2x12x12x32xf32, #tpu.memory_space<vmem>>, vector<2x8x8x32xf32>
    %130 = vector.shape_cast %129 : vector<2x8x8x32xf32> to vector<128x32xf32>
    %131 = arith.truncf %130 : vector<128x32xf32> to vector<128x32xbf16>
    %c15 = arith.constant 15 : index
    %c0_121 = arith.constant 0 : index
    %c0_122 = arith.constant 0 : index
    %132 = vector.load %arg3[%c15, %c0_121, %c0_122] : memref<25x32x32xbf16, #tpu.memory_space<vmem>>, vector<1x32x32xbf16>
    %133 = vector.shape_cast %132 : vector<1x32x32xbf16> to vector<32x32xbf16>
    %cst_123 = arith.constant dense<0.000000e+00> : vector<128x32xf32>
    %134 = tpu.matmul %131, %133, %cst_123 {dimension_numbers = #tpu.dot_dimension_numbers<[1], [0], [0], [1], [0, 0, 1, 1], [], []>} : vector<128x32xbf16>, vector<32x32xbf16>, vector<128x32xf32> -> vector<128x32xf32>
    %135 = arith.addf %128, %134 : vector<128x32xf32>
    %c0_124 = arith.constant 0 : index
    %c3_125 = arith.constant 3 : index
    %c1_126 = arith.constant 1 : index
    %c0_127 = arith.constant 0 : index
    %136 = vector.load %arg10[%c0_124, %c3_125, %c1_126, %c0_127] : memref<2x12x12x32xf32, #tpu.memory_space<vmem>>, vector<2x8x8x32xf32>
    %137 = vector.shape_cast %136 : vector<2x8x8x32xf32> to vector<128x32xf32>
    %138 = arith.truncf %137 : vector<128x32xf32> to vector<128x32xbf16>
    %c16 = arith.constant 16 : index
    %c0_128 = arith.constant 0 : index
    %c0_129 = arith.constant 0 : index
    %139 = vector.load %arg3[%c16, %c0_128, %c0_129] : memref<25x32x32xbf16, #tpu.memory_space<vmem>>, vector<1x32x32xbf16>
    %140 = vector.shape_cast %139 : vector<1x32x32xbf16> to vector<32x32xbf16>
    %cst_130 = arith.constant dense<0.000000e+00> : vector<128x32xf32>
    %141 = tpu.matmul %138, %140, %cst_130 {dimension_numbers = #tpu.dot_dimension_numbers<[1], [0], [0], [1], [0, 0, 1, 1], [], []>} : vector<128x32xbf16>, vector<32x32xbf16>, vector<128x32xf32> -> vector<128x32xf32>
    %142 = arith.addf %135, %141 : vector<128x32xf32>
    %c0_131 = arith.constant 0 : index
    %c3_132 = arith.constant 3 : index
    %c2_133 = arith.constant 2 : index
    %c0_134 = arith.constant 0 : index
    %143 = vector.load %arg10[%c0_131, %c3_132, %c2_133, %c0_134] : memref<2x12x12x32xf32, #tpu.memory_space<vmem>>, vector<2x8x8x32xf32>
    %144 = vector.shape_cast %143 : vector<2x8x8x32xf32> to vector<128x32xf32>
    %145 = arith.truncf %144 : vector<128x32xf32> to vector<128x32xbf16>
    %c17 = arith.constant 17 : index
    %c0_135 = arith.constant 0 : index
    %c0_136 = arith.constant 0 : index
    %146 = vector.load %arg3[%c17, %c0_135, %c0_136] : memref<25x32x32xbf16, #tpu.memory_space<vmem>>, vector<1x32x32xbf16>
    %147 = vector.shape_cast %146 : vector<1x32x32xbf16> to vector<32x32xbf16>
    %cst_137 = arith.constant dense<0.000000e+00> : vector<128x32xf32>
    %148 = tpu.matmul %145, %147, %cst_137 {dimension_numbers = #tpu.dot_dimension_numbers<[1], [0], [0], [1], [0, 0, 1, 1], [], []>} : vector<128x32xbf16>, vector<32x32xbf16>, vector<128x32xf32> -> vector<128x32xf32>
    %149 = arith.addf %142, %148 : vector<128x32xf32>
    %c0_138 = arith.constant 0 : index
    %c3_139 = arith.constant 3 : index
    %c3_140 = arith.constant 3 : index
    %c0_141 = arith.constant 0 : index
    %150 = vector.load %arg10[%c0_138, %c3_139, %c3_140, %c0_141] : memref<2x12x12x32xf32, #tpu.memory_space<vmem>>, vector<2x8x8x32xf32>
    %151 = vector.shape_cast %150 : vector<2x8x8x32xf32> to vector<128x32xf32>
    %152 = arith.truncf %151 : vector<128x32xf32> to vector<128x32xbf16>
    %c18 = arith.constant 18 : index
    %c0_142 = arith.constant 0 : index
    %c0_143 = arith.constant 0 : index
    %153 = vector.load %arg3[%c18, %c0_142, %c0_143] : memref<25x32x32xbf16, #tpu.memory_space<vmem>>, vector<1x32x32xbf16>
    %154 = vector.shape_cast %153 : vector<1x32x32xbf16> to vector<32x32xbf16>
    %cst_144 = arith.constant dense<0.000000e+00> : vector<128x32xf32>
    %155 = tpu.matmul %152, %154, %cst_144 {dimension_numbers = #tpu.dot_dimension_numbers<[1], [0], [0], [1], [0, 0, 1, 1], [], []>} : vector<128x32xbf16>, vector<32x32xbf16>, vector<128x32xf32> -> vector<128x32xf32>
    %156 = arith.addf %149, %155 : vector<128x32xf32>
    %c0_145 = arith.constant 0 : index
    %c3_146 = arith.constant 3 : index
    %c4_147 = arith.constant 4 : index
    %c0_148 = arith.constant 0 : index
    %157 = vector.load %arg10[%c0_145, %c3_146, %c4_147, %c0_148] : memref<2x12x12x32xf32, #tpu.memory_space<vmem>>, vector<2x8x8x32xf32>
    %158 = vector.shape_cast %157 : vector<2x8x8x32xf32> to vector<128x32xf32>
    %159 = arith.truncf %158 : vector<128x32xf32> to vector<128x32xbf16>
    %c19 = arith.constant 19 : index
    %c0_149 = arith.constant 0 : index
    %c0_150 = arith.constant 0 : index
    %160 = vector.load %arg3[%c19, %c0_149, %c0_150] : memref<25x32x32xbf16, #tpu.memory_space<vmem>>, vector<1x32x32xbf16>
    %161 = vector.shape_cast %160 : vector<1x32x32xbf16> to vector<32x32xbf16>
    %cst_151 = arith.constant dense<0.000000e+00> : vector<128x32xf32>
    %162 = tpu.matmul %159, %161, %cst_151 {dimension_numbers = #tpu.dot_dimension_numbers<[1], [0], [0], [1], [0, 0, 1, 1], [], []>} : vector<128x32xbf16>, vector<32x32xbf16>, vector<128x32xf32> -> vector<128x32xf32>
    %163 = arith.addf %156, %162 : vector<128x32xf32>
    %c0_152 = arith.constant 0 : index
    %c4_153 = arith.constant 4 : index
    %c0_154 = arith.constant 0 : index
    %c0_155 = arith.constant 0 : index
    %164 = vector.load %arg10[%c0_152, %c4_153, %c0_154, %c0_155] : memref<2x12x12x32xf32, #tpu.memory_space<vmem>>, vector<2x8x8x32xf32>
    %165 = vector.shape_cast %164 : vector<2x8x8x32xf32> to vector<128x32xf32>
    %166 = arith.truncf %165 : vector<128x32xf32> to vector<128x32xbf16>
    %c20 = arith.constant 20 : index
    %c0_156 = arith.constant 0 : index
    %c0_157 = arith.constant 0 : index
    %167 = vector.load %arg3[%c20, %c0_156, %c0_157] : memref<25x32x32xbf16, #tpu.memory_space<vmem>>, vector<1x32x32xbf16>
    %168 = vector.shape_cast %167 : vector<1x32x32xbf16> to vector<32x32xbf16>
    %cst_158 = arith.constant dense<0.000000e+00> : vector<128x32xf32>
    %169 = tpu.matmul %166, %168, %cst_158 {dimension_numbers = #tpu.dot_dimension_numbers<[1], [0], [0], [1], [0, 0, 1, 1], [], []>} : vector<128x32xbf16>, vector<32x32xbf16>, vector<128x32xf32> -> vector<128x32xf32>
    %170 = arith.addf %163, %169 : vector<128x32xf32>
    %c0_159 = arith.constant 0 : index
    %c4_160 = arith.constant 4 : index
    %c1_161 = arith.constant 1 : index
    %c0_162 = arith.constant 0 : index
    %171 = vector.load %arg10[%c0_159, %c4_160, %c1_161, %c0_162] : memref<2x12x12x32xf32, #tpu.memory_space<vmem>>, vector<2x8x8x32xf32>
    %172 = vector.shape_cast %171 : vector<2x8x8x32xf32> to vector<128x32xf32>
    %173 = arith.truncf %172 : vector<128x32xf32> to vector<128x32xbf16>
    %c21 = arith.constant 21 : index
    %c0_163 = arith.constant 0 : index
    %c0_164 = arith.constant 0 : index
    %174 = vector.load %arg3[%c21, %c0_163, %c0_164] : memref<25x32x32xbf16, #tpu.memory_space<vmem>>, vector<1x32x32xbf16>
    %175 = vector.shape_cast %174 : vector<1x32x32xbf16> to vector<32x32xbf16>
    %cst_165 = arith.constant dense<0.000000e+00> : vector<128x32xf32>
    %176 = tpu.matmul %173, %175, %cst_165 {dimension_numbers = #tpu.dot_dimension_numbers<[1], [0], [0], [1], [0, 0, 1, 1], [], []>} : vector<128x32xbf16>, vector<32x32xbf16>, vector<128x32xf32> -> vector<128x32xf32>
    %177 = arith.addf %170, %176 : vector<128x32xf32>
    %c0_166 = arith.constant 0 : index
    %c4_167 = arith.constant 4 : index
    %c2_168 = arith.constant 2 : index
    %c0_169 = arith.constant 0 : index
    %178 = vector.load %arg10[%c0_166, %c4_167, %c2_168, %c0_169] : memref<2x12x12x32xf32, #tpu.memory_space<vmem>>, vector<2x8x8x32xf32>
    %179 = vector.shape_cast %178 : vector<2x8x8x32xf32> to vector<128x32xf32>
    %180 = arith.truncf %179 : vector<128x32xf32> to vector<128x32xbf16>
    %c22 = arith.constant 22 : index
    %c0_170 = arith.constant 0 : index
    %c0_171 = arith.constant 0 : index
    %181 = vector.load %arg3[%c22, %c0_170, %c0_171] : memref<25x32x32xbf16, #tpu.memory_space<vmem>>, vector<1x32x32xbf16>
    %182 = vector.shape_cast %181 : vector<1x32x32xbf16> to vector<32x32xbf16>
    %cst_172 = arith.constant dense<0.000000e+00> : vector<128x32xf32>
    %183 = tpu.matmul %180, %182, %cst_172 {dimension_numbers = #tpu.dot_dimension_numbers<[1], [0], [0], [1], [0, 0, 1, 1], [], []>} : vector<128x32xbf16>, vector<32x32xbf16>, vector<128x32xf32> -> vector<128x32xf32>
    %184 = arith.addf %177, %183 : vector<128x32xf32>
    %c0_173 = arith.constant 0 : index
    %c4_174 = arith.constant 4 : index
    %c3_175 = arith.constant 3 : index
    %c0_176 = arith.constant 0 : index
    %185 = vector.load %arg10[%c0_173, %c4_174, %c3_175, %c0_176] : memref<2x12x12x32xf32, #tpu.memory_space<vmem>>, vector<2x8x8x32xf32>
    %186 = vector.shape_cast %185 : vector<2x8x8x32xf32> to vector<128x32xf32>
    %187 = arith.truncf %186 : vector<128x32xf32> to vector<128x32xbf16>
    %c23 = arith.constant 23 : index
    %c0_177 = arith.constant 0 : index
    %c0_178 = arith.constant 0 : index
    %188 = vector.load %arg3[%c23, %c0_177, %c0_178] : memref<25x32x32xbf16, #tpu.memory_space<vmem>>, vector<1x32x32xbf16>
    %189 = vector.shape_cast %188 : vector<1x32x32xbf16> to vector<32x32xbf16>
    %cst_179 = arith.constant dense<0.000000e+00> : vector<128x32xf32>
    %190 = tpu.matmul %187, %189, %cst_179 {dimension_numbers = #tpu.dot_dimension_numbers<[1], [0], [0], [1], [0, 0, 1, 1], [], []>} : vector<128x32xbf16>, vector<32x32xbf16>, vector<128x32xf32> -> vector<128x32xf32>
    %191 = arith.addf %184, %190 : vector<128x32xf32>
    %c0_180 = arith.constant 0 : index
    %c4_181 = arith.constant 4 : index
    %c4_182 = arith.constant 4 : index
    %c0_183 = arith.constant 0 : index
    %192 = vector.load %arg10[%c0_180, %c4_181, %c4_182, %c0_183] : memref<2x12x12x32xf32, #tpu.memory_space<vmem>>, vector<2x8x8x32xf32>
    %193 = vector.shape_cast %192 : vector<2x8x8x32xf32> to vector<128x32xf32>
    %194 = arith.truncf %193 : vector<128x32xf32> to vector<128x32xbf16>
    %c24 = arith.constant 24 : index
    %c0_184 = arith.constant 0 : index
    %c0_185 = arith.constant 0 : index
    %195 = vector.load %arg3[%c24, %c0_184, %c0_185] : memref<25x32x32xbf16, #tpu.memory_space<vmem>>, vector<1x32x32xbf16>
    %196 = vector.shape_cast %195 : vector<1x32x32xbf16> to vector<32x32xbf16>
    %cst_186 = arith.constant dense<0.000000e+00> : vector<128x32xf32>
    %197 = tpu.matmul %194, %196, %cst_186 {dimension_numbers = #tpu.dot_dimension_numbers<[1], [0], [0], [1], [0, 0, 1, 1], [], []>} : vector<128x32xbf16>, vector<32x32xbf16>, vector<128x32xf32> -> vector<128x32xf32>
    %198 = arith.addf %191, %197 : vector<128x32xf32>
    %199 = vector.shape_cast %198 : vector<128x32xf32> to vector<2x4x2x8x32xf32>
    %200 = vector.extract_strided_slice %199 {offsets = [0, 0, 0, 0, 0], sizes = [2, 4, 1, 8, 32], strides = [1, 1, 1, 1, 1]} : vector<2x4x2x8x32xf32> to vector<2x4x1x8x32xf32>
    %201 = vector.shape_cast %200 : vector<2x4x1x8x32xf32> to vector<2x4x8x32xf32>
    %202 = vector.extract_strided_slice %199 {offsets = [0, 0, 1, 0, 0], sizes = [2, 4, 1, 8, 32], strides = [1, 1, 1, 1, 1]} : vector<2x4x2x8x32xf32> to vector<2x4x1x8x32xf32>
    %203 = vector.shape_cast %202 : vector<2x4x1x8x32xf32> to vector<2x4x8x32xf32>
    %204 = arith.maximumf %201, %203 : vector<2x4x8x32xf32>
    %cst_187 = arith.constant 0.000000e+00 : f32
    %205 = vector.broadcast %cst_187 : f32 to vector<2x32xf32>
    %206 = vector.extract_strided_slice %204 {offsets = [0, 0, 0, 0], sizes = [2, 1, 1, 32], strides = [1, 1, 1, 1]} : vector<2x4x8x32xf32> to vector<2x1x1x32xf32>
    %207 = vector.shape_cast %206 : vector<2x1x1x32xf32> to vector<2x32xf32>
    %208 = vector.extract_strided_slice %204 {offsets = [0, 0, 1, 0], sizes = [2, 1, 1, 32], strides = [1, 1, 1, 1]} : vector<2x4x8x32xf32> to vector<2x1x1x32xf32>
    %209 = vector.shape_cast %208 : vector<2x1x1x32xf32> to vector<2x32xf32>
    %210 = arith.maximumf %207, %209 : vector<2x32xf32>
    %c0_188 = arith.constant 0 : index
    %c0_189 = arith.constant 0 : index
    %211 = vector.load %arg4[%c0_188, %c0_189] : memref<1x32xf32, #tpu.memory_space<vmem>>, vector<1x32xf32>
    %212 = vector.broadcast %211 : vector<1x32xf32> to vector<2x32xf32>
    %213 = arith.addf %210, %212 : vector<2x32xf32>
    %cst_190 = arith.constant 0.000000e+00 : f32
    %214 = vector.broadcast %cst_190 : f32 to vector<2x32xf32>
    %215 = arith.maximumf %213, %214 : vector<2x32xf32>
    %216 = arith.truncf %215 : vector<2x32xf32> to vector<2x32xbf16>
    %c0_191 = arith.constant 0 : index
    %c0_192 = arith.constant 0 : index
    %c0_193 = arith.constant 0 : index
    %217 = vector.load %arg5[%c0_191, %c0_192, %c0_193] : memref<16x32x32xbf16, #tpu.memory_space<vmem>>, vector<1x32x32xbf16>
    %218 = vector.shape_cast %217 : vector<1x32x32xbf16> to vector<32x32xbf16>
    %cst_194 = arith.constant dense<0.000000e+00> : vector<2x32xf32>
    %219 = tpu.matmul %216, %218, %cst_194 {dimension_numbers = #tpu.dot_dimension_numbers<[1], [0], [0], [1], [0, 0, 1, 1], [], []>} : vector<2x32xbf16>, vector<32x32xbf16>, vector<2x32xf32> -> vector<2x32xf32>
    %220 = arith.addf %205, %219 : vector<2x32xf32>
    %221 = vector.extract_strided_slice %204 {offsets = [0, 0, 2, 0], sizes = [2, 1, 1, 32], strides = [1, 1, 1, 1]} : vector<2x4x8x32xf32> to vector<2x1x1x32xf32>
    %222 = vector.shape_cast %221 : vector<2x1x1x32xf32> to vector<2x32xf32>
    %223 = vector.extract_strided_slice %204 {offsets = [0, 0, 3, 0], sizes = [2, 1, 1, 32], strides = [1, 1, 1, 1]} : vector<2x4x8x32xf32> to vector<2x1x1x32xf32>
    %224 = vector.shape_cast %223 : vector<2x1x1x32xf32> to vector<2x32xf32>
    %225 = arith.maximumf %222, %224 : vector<2x32xf32>
    %c0_195 = arith.constant 0 : index
    %c0_196 = arith.constant 0 : index
    %226 = vector.load %arg4[%c0_195, %c0_196] : memref<1x32xf32, #tpu.memory_space<vmem>>, vector<1x32xf32>
    %227 = vector.broadcast %226 : vector<1x32xf32> to vector<2x32xf32>
    %228 = arith.addf %225, %227 : vector<2x32xf32>
    %cst_197 = arith.constant 0.000000e+00 : f32
    %229 = vector.broadcast %cst_197 : f32 to vector<2x32xf32>
    %230 = arith.maximumf %228, %229 : vector<2x32xf32>
    %231 = arith.truncf %230 : vector<2x32xf32> to vector<2x32xbf16>
    %c1_198 = arith.constant 1 : index
    %c0_199 = arith.constant 0 : index
    %c0_200 = arith.constant 0 : index
    %232 = vector.load %arg5[%c1_198, %c0_199, %c0_200] : memref<16x32x32xbf16, #tpu.memory_space<vmem>>, vector<1x32x32xbf16>
    %233 = vector.shape_cast %232 : vector<1x32x32xbf16> to vector<32x32xbf16>
    %cst_201 = arith.constant dense<0.000000e+00> : vector<2x32xf32>
    %234 = tpu.matmul %231, %233, %cst_201 {dimension_numbers = #tpu.dot_dimension_numbers<[1], [0], [0], [1], [0, 0, 1, 1], [], []>} : vector<2x32xbf16>, vector<32x32xbf16>, vector<2x32xf32> -> vector<2x32xf32>
    %235 = arith.addf %220, %234 : vector<2x32xf32>
    %236 = vector.extract_strided_slice %204 {offsets = [0, 0, 4, 0], sizes = [2, 1, 1, 32], strides = [1, 1, 1, 1]} : vector<2x4x8x32xf32> to vector<2x1x1x32xf32>
    %237 = vector.shape_cast %236 : vector<2x1x1x32xf32> to vector<2x32xf32>
    %238 = vector.extract_strided_slice %204 {offsets = [0, 0, 5, 0], sizes = [2, 1, 1, 32], strides = [1, 1, 1, 1]} : vector<2x4x8x32xf32> to vector<2x1x1x32xf32>
    %239 = vector.shape_cast %238 : vector<2x1x1x32xf32> to vector<2x32xf32>
    %240 = arith.maximumf %237, %239 : vector<2x32xf32>
    %c0_202 = arith.constant 0 : index
    %c0_203 = arith.constant 0 : index
    %241 = vector.load %arg4[%c0_202, %c0_203] : memref<1x32xf32, #tpu.memory_space<vmem>>, vector<1x32xf32>
    %242 = vector.broadcast %241 : vector<1x32xf32> to vector<2x32xf32>
    %243 = arith.addf %240, %242 : vector<2x32xf32>
    %cst_204 = arith.constant 0.000000e+00 : f32
    %244 = vector.broadcast %cst_204 : f32 to vector<2x32xf32>
    %245 = arith.maximumf %243, %244 : vector<2x32xf32>
    %246 = arith.truncf %245 : vector<2x32xf32> to vector<2x32xbf16>
    %c2_205 = arith.constant 2 : index
    %c0_206 = arith.constant 0 : index
    %c0_207 = arith.constant 0 : index
    %247 = vector.load %arg5[%c2_205, %c0_206, %c0_207] : memref<16x32x32xbf16, #tpu.memory_space<vmem>>, vector<1x32x32xbf16>
    %248 = vector.shape_cast %247 : vector<1x32x32xbf16> to vector<32x32xbf16>
    %cst_208 = arith.constant dense<0.000000e+00> : vector<2x32xf32>
    %249 = tpu.matmul %246, %248, %cst_208 {dimension_numbers = #tpu.dot_dimension_numbers<[1], [0], [0], [1], [0, 0, 1, 1], [], []>} : vector<2x32xbf16>, vector<32x32xbf16>, vector<2x32xf32> -> vector<2x32xf32>
    %250 = arith.addf %235, %249 : vector<2x32xf32>
    %251 = vector.extract_strided_slice %204 {offsets = [0, 0, 6, 0], sizes = [2, 1, 1, 32], strides = [1, 1, 1, 1]} : vector<2x4x8x32xf32> to vector<2x1x1x32xf32>
    %252 = vector.shape_cast %251 : vector<2x1x1x32xf32> to vector<2x32xf32>
    %253 = vector.extract_strided_slice %204 {offsets = [0, 0, 7, 0], sizes = [2, 1, 1, 32], strides = [1, 1, 1, 1]} : vector<2x4x8x32xf32> to vector<2x1x1x32xf32>
    %254 = vector.shape_cast %253 : vector<2x1x1x32xf32> to vector<2x32xf32>
    %255 = arith.maximumf %252, %254 : vector<2x32xf32>
    %c0_209 = arith.constant 0 : index
    %c0_210 = arith.constant 0 : index
    %256 = vector.load %arg4[%c0_209, %c0_210] : memref<1x32xf32, #tpu.memory_space<vmem>>, vector<1x32xf32>
    %257 = vector.broadcast %256 : vector<1x32xf32> to vector<2x32xf32>
    %258 = arith.addf %255, %257 : vector<2x32xf32>
    %cst_211 = arith.constant 0.000000e+00 : f32
    %259 = vector.broadcast %cst_211 : f32 to vector<2x32xf32>
    %260 = arith.maximumf %258, %259 : vector<2x32xf32>
    %261 = arith.truncf %260 : vector<2x32xf32> to vector<2x32xbf16>
    %c3_212 = arith.constant 3 : index
    %c0_213 = arith.constant 0 : index
    %c0_214 = arith.constant 0 : index
    %262 = vector.load %arg5[%c3_212, %c0_213, %c0_214] : memref<16x32x32xbf16, #tpu.memory_space<vmem>>, vector<1x32x32xbf16>
    %263 = vector.shape_cast %262 : vector<1x32x32xbf16> to vector<32x32xbf16>
    %cst_215 = arith.constant dense<0.000000e+00> : vector<2x32xf32>
    %264 = tpu.matmul %261, %263, %cst_215 {dimension_numbers = #tpu.dot_dimension_numbers<[1], [0], [0], [1], [0, 0, 1, 1], [], []>} : vector<2x32xbf16>, vector<32x32xbf16>, vector<2x32xf32> -> vector<2x32xf32>
    %265 = arith.addf %250, %264 : vector<2x32xf32>
    %266 = vector.extract_strided_slice %204 {offsets = [0, 1, 0, 0], sizes = [2, 1, 1, 32], strides = [1, 1, 1, 1]} : vector<2x4x8x32xf32> to vector<2x1x1x32xf32>
    %267 = vector.shape_cast %266 : vector<2x1x1x32xf32> to vector<2x32xf32>
    %268 = vector.extract_strided_slice %204 {offsets = [0, 1, 1, 0], sizes = [2, 1, 1, 32], strides = [1, 1, 1, 1]} : vector<2x4x8x32xf32> to vector<2x1x1x32xf32>
    %269 = vector.shape_cast %268 : vector<2x1x1x32xf32> to vector<2x32xf32>
    %270 = arith.maximumf %267, %269 : vector<2x32xf32>
    %c0_216 = arith.constant 0 : index
    %c0_217 = arith.constant 0 : index
    %271 = vector.load %arg4[%c0_216, %c0_217] : memref<1x32xf32, #tpu.memory_space<vmem>>, vector<1x32xf32>
    %272 = vector.broadcast %271 : vector<1x32xf32> to vector<2x32xf32>
    %273 = arith.addf %270, %272 : vector<2x32xf32>
    %cst_218 = arith.constant 0.000000e+00 : f32
    %274 = vector.broadcast %cst_218 : f32 to vector<2x32xf32>
    %275 = arith.maximumf %273, %274 : vector<2x32xf32>
    %276 = arith.truncf %275 : vector<2x32xf32> to vector<2x32xbf16>
    %c4_219 = arith.constant 4 : index
    %c0_220 = arith.constant 0 : index
    %c0_221 = arith.constant 0 : index
    %277 = vector.load %arg5[%c4_219, %c0_220, %c0_221] : memref<16x32x32xbf16, #tpu.memory_space<vmem>>, vector<1x32x32xbf16>
    %278 = vector.shape_cast %277 : vector<1x32x32xbf16> to vector<32x32xbf16>
    %cst_222 = arith.constant dense<0.000000e+00> : vector<2x32xf32>
    %279 = tpu.matmul %276, %278, %cst_222 {dimension_numbers = #tpu.dot_dimension_numbers<[1], [0], [0], [1], [0, 0, 1, 1], [], []>} : vector<2x32xbf16>, vector<32x32xbf16>, vector<2x32xf32> -> vector<2x32xf32>
    %280 = arith.addf %265, %279 : vector<2x32xf32>
    %281 = vector.extract_strided_slice %204 {offsets = [0, 1, 2, 0], sizes = [2, 1, 1, 32], strides = [1, 1, 1, 1]} : vector<2x4x8x32xf32> to vector<2x1x1x32xf32>
    %282 = vector.shape_cast %281 : vector<2x1x1x32xf32> to vector<2x32xf32>
    %283 = vector.extract_strided_slice %204 {offsets = [0, 1, 3, 0], sizes = [2, 1, 1, 32], strides = [1, 1, 1, 1]} : vector<2x4x8x32xf32> to vector<2x1x1x32xf32>
    %284 = vector.shape_cast %283 : vector<2x1x1x32xf32> to vector<2x32xf32>
    %285 = arith.maximumf %282, %284 : vector<2x32xf32>
    %c0_223 = arith.constant 0 : index
    %c0_224 = arith.constant 0 : index
    %286 = vector.load %arg4[%c0_223, %c0_224] : memref<1x32xf32, #tpu.memory_space<vmem>>, vector<1x32xf32>
    %287 = vector.broadcast %286 : vector<1x32xf32> to vector<2x32xf32>
    %288 = arith.addf %285, %287 : vector<2x32xf32>
    %cst_225 = arith.constant 0.000000e+00 : f32
    %289 = vector.broadcast %cst_225 : f32 to vector<2x32xf32>
    %290 = arith.maximumf %288, %289 : vector<2x32xf32>
    %291 = arith.truncf %290 : vector<2x32xf32> to vector<2x32xbf16>
    %c5_226 = arith.constant 5 : index
    %c0_227 = arith.constant 0 : index
    %c0_228 = arith.constant 0 : index
    %292 = vector.load %arg5[%c5_226, %c0_227, %c0_228] : memref<16x32x32xbf16, #tpu.memory_space<vmem>>, vector<1x32x32xbf16>
    %293 = vector.shape_cast %292 : vector<1x32x32xbf16> to vector<32x32xbf16>
    %cst_229 = arith.constant dense<0.000000e+00> : vector<2x32xf32>
    %294 = tpu.matmul %291, %293, %cst_229 {dimension_numbers = #tpu.dot_dimension_numbers<[1], [0], [0], [1], [0, 0, 1, 1], [], []>} : vector<2x32xbf16>, vector<32x32xbf16>, vector<2x32xf32> -> vector<2x32xf32>
    %295 = arith.addf %280, %294 : vector<2x32xf32>
    %296 = vector.extract_strided_slice %204 {offsets = [0, 1, 4, 0], sizes = [2, 1, 1, 32], strides = [1, 1, 1, 1]} : vector<2x4x8x32xf32> to vector<2x1x1x32xf32>
    %297 = vector.shape_cast %296 : vector<2x1x1x32xf32> to vector<2x32xf32>
    %298 = vector.extract_strided_slice %204 {offsets = [0, 1, 5, 0], sizes = [2, 1, 1, 32], strides = [1, 1, 1, 1]} : vector<2x4x8x32xf32> to vector<2x1x1x32xf32>
    %299 = vector.shape_cast %298 : vector<2x1x1x32xf32> to vector<2x32xf32>
    %300 = arith.maximumf %297, %299 : vector<2x32xf32>
    %c0_230 = arith.constant 0 : index
    %c0_231 = arith.constant 0 : index
    %301 = vector.load %arg4[%c0_230, %c0_231] : memref<1x32xf32, #tpu.memory_space<vmem>>, vector<1x32xf32>
    %302 = vector.broadcast %301 : vector<1x32xf32> to vector<2x32xf32>
    %303 = arith.addf %300, %302 : vector<2x32xf32>
    %cst_232 = arith.constant 0.000000e+00 : f32
    %304 = vector.broadcast %cst_232 : f32 to vector<2x32xf32>
    %305 = arith.maximumf %303, %304 : vector<2x32xf32>
    %306 = arith.truncf %305 : vector<2x32xf32> to vector<2x32xbf16>
    %c6_233 = arith.constant 6 : index
    %c0_234 = arith.constant 0 : index
    %c0_235 = arith.constant 0 : index
    %307 = vector.load %arg5[%c6_233, %c0_234, %c0_235] : memref<16x32x32xbf16, #tpu.memory_space<vmem>>, vector<1x32x32xbf16>
    %308 = vector.shape_cast %307 : vector<1x32x32xbf16> to vector<32x32xbf16>
    %cst_236 = arith.constant dense<0.000000e+00> : vector<2x32xf32>
    %309 = tpu.matmul %306, %308, %cst_236 {dimension_numbers = #tpu.dot_dimension_numbers<[1], [0], [0], [1], [0, 0, 1, 1], [], []>} : vector<2x32xbf16>, vector<32x32xbf16>, vector<2x32xf32> -> vector<2x32xf32>
    %310 = arith.addf %295, %309 : vector<2x32xf32>
    %311 = vector.extract_strided_slice %204 {offsets = [0, 1, 6, 0], sizes = [2, 1, 1, 32], strides = [1, 1, 1, 1]} : vector<2x4x8x32xf32> to vector<2x1x1x32xf32>
    %312 = vector.shape_cast %311 : vector<2x1x1x32xf32> to vector<2x32xf32>
    %313 = vector.extract_strided_slice %204 {offsets = [0, 1, 7, 0], sizes = [2, 1, 1, 32], strides = [1, 1, 1, 1]} : vector<2x4x8x32xf32> to vector<2x1x1x32xf32>
    %314 = vector.shape_cast %313 : vector<2x1x1x32xf32> to vector<2x32xf32>
    %315 = arith.maximumf %312, %314 : vector<2x32xf32>
    %c0_237 = arith.constant 0 : index
    %c0_238 = arith.constant 0 : index
    %316 = vector.load %arg4[%c0_237, %c0_238] : memref<1x32xf32, #tpu.memory_space<vmem>>, vector<1x32xf32>
    %317 = vector.broadcast %316 : vector<1x32xf32> to vector<2x32xf32>
    %318 = arith.addf %315, %317 : vector<2x32xf32>
    %cst_239 = arith.constant 0.000000e+00 : f32
    %319 = vector.broadcast %cst_239 : f32 to vector<2x32xf32>
    %320 = arith.maximumf %318, %319 : vector<2x32xf32>
    %321 = arith.truncf %320 : vector<2x32xf32> to vector<2x32xbf16>
    %c7_240 = arith.constant 7 : index
    %c0_241 = arith.constant 0 : index
    %c0_242 = arith.constant 0 : index
    %322 = vector.load %arg5[%c7_240, %c0_241, %c0_242] : memref<16x32x32xbf16, #tpu.memory_space<vmem>>, vector<1x32x32xbf16>
    %323 = vector.shape_cast %322 : vector<1x32x32xbf16> to vector<32x32xbf16>
    %cst_243 = arith.constant dense<0.000000e+00> : vector<2x32xf32>
    %324 = tpu.matmul %321, %323, %cst_243 {dimension_numbers = #tpu.dot_dimension_numbers<[1], [0], [0], [1], [0, 0, 1, 1], [], []>} : vector<2x32xbf16>, vector<32x32xbf16>, vector<2x32xf32> -> vector<2x32xf32>
    %325 = arith.addf %310, %324 : vector<2x32xf32>
    %326 = vector.extract_strided_slice %204 {offsets = [0, 2, 0, 0], sizes = [2, 1, 1, 32], strides = [1, 1, 1, 1]} : vector<2x4x8x32xf32> to vector<2x1x1x32xf32>
    %327 = vector.shape_cast %326 : vector<2x1x1x32xf32> to vector<2x32xf32>
    %328 = vector.extract_strided_slice %204 {offsets = [0, 2, 1, 0], sizes = [2, 1, 1, 32], strides = [1, 1, 1, 1]} : vector<2x4x8x32xf32> to vector<2x1x1x32xf32>
    %329 = vector.shape_cast %328 : vector<2x1x1x32xf32> to vector<2x32xf32>
    %330 = arith.maximumf %327, %329 : vector<2x32xf32>
    %c0_244 = arith.constant 0 : index
    %c0_245 = arith.constant 0 : index
    %331 = vector.load %arg4[%c0_244, %c0_245] : memref<1x32xf32, #tpu.memory_space<vmem>>, vector<1x32xf32>
    %332 = vector.broadcast %331 : vector<1x32xf32> to vector<2x32xf32>
    %333 = arith.addf %330, %332 : vector<2x32xf32>
    %cst_246 = arith.constant 0.000000e+00 : f32
    %334 = vector.broadcast %cst_246 : f32 to vector<2x32xf32>
    %335 = arith.maximumf %333, %334 : vector<2x32xf32>
    %336 = arith.truncf %335 : vector<2x32xf32> to vector<2x32xbf16>
    %c8_247 = arith.constant 8 : index
    %c0_248 = arith.constant 0 : index
    %c0_249 = arith.constant 0 : index
    %337 = vector.load %arg5[%c8_247, %c0_248, %c0_249] : memref<16x32x32xbf16, #tpu.memory_space<vmem>>, vector<1x32x32xbf16>
    %338 = vector.shape_cast %337 : vector<1x32x32xbf16> to vector<32x32xbf16>
    %cst_250 = arith.constant dense<0.000000e+00> : vector<2x32xf32>
    %339 = tpu.matmul %336, %338, %cst_250 {dimension_numbers = #tpu.dot_dimension_numbers<[1], [0], [0], [1], [0, 0, 1, 1], [], []>} : vector<2x32xbf16>, vector<32x32xbf16>, vector<2x32xf32> -> vector<2x32xf32>
    %340 = arith.addf %325, %339 : vector<2x32xf32>
    %341 = vector.extract_strided_slice %204 {offsets = [0, 2, 2, 0], sizes = [2, 1, 1, 32], strides = [1, 1, 1, 1]} : vector<2x4x8x32xf32> to vector<2x1x1x32xf32>
    %342 = vector.shape_cast %341 : vector<2x1x1x32xf32> to vector<2x32xf32>
    %343 = vector.extract_strided_slice %204 {offsets = [0, 2, 3, 0], sizes = [2, 1, 1, 32], strides = [1, 1, 1, 1]} : vector<2x4x8x32xf32> to vector<2x1x1x32xf32>
    %344 = vector.shape_cast %343 : vector<2x1x1x32xf32> to vector<2x32xf32>
    %345 = arith.maximumf %342, %344 : vector<2x32xf32>
    %c0_251 = arith.constant 0 : index
    %c0_252 = arith.constant 0 : index
    %346 = vector.load %arg4[%c0_251, %c0_252] : memref<1x32xf32, #tpu.memory_space<vmem>>, vector<1x32xf32>
    %347 = vector.broadcast %346 : vector<1x32xf32> to vector<2x32xf32>
    %348 = arith.addf %345, %347 : vector<2x32xf32>
    %cst_253 = arith.constant 0.000000e+00 : f32
    %349 = vector.broadcast %cst_253 : f32 to vector<2x32xf32>
    %350 = arith.maximumf %348, %349 : vector<2x32xf32>
    %351 = arith.truncf %350 : vector<2x32xf32> to vector<2x32xbf16>
    %c9_254 = arith.constant 9 : index
    %c0_255 = arith.constant 0 : index
    %c0_256 = arith.constant 0 : index
    %352 = vector.load %arg5[%c9_254, %c0_255, %c0_256] : memref<16x32x32xbf16, #tpu.memory_space<vmem>>, vector<1x32x32xbf16>
    %353 = vector.shape_cast %352 : vector<1x32x32xbf16> to vector<32x32xbf16>
    %cst_257 = arith.constant dense<0.000000e+00> : vector<2x32xf32>
    %354 = tpu.matmul %351, %353, %cst_257 {dimension_numbers = #tpu.dot_dimension_numbers<[1], [0], [0], [1], [0, 0, 1, 1], [], []>} : vector<2x32xbf16>, vector<32x32xbf16>, vector<2x32xf32> -> vector<2x32xf32>
    %355 = arith.addf %340, %354 : vector<2x32xf32>
    %356 = vector.extract_strided_slice %204 {offsets = [0, 2, 4, 0], sizes = [2, 1, 1, 32], strides = [1, 1, 1, 1]} : vector<2x4x8x32xf32> to vector<2x1x1x32xf32>
    %357 = vector.shape_cast %356 : vector<2x1x1x32xf32> to vector<2x32xf32>
    %358 = vector.extract_strided_slice %204 {offsets = [0, 2, 5, 0], sizes = [2, 1, 1, 32], strides = [1, 1, 1, 1]} : vector<2x4x8x32xf32> to vector<2x1x1x32xf32>
    %359 = vector.shape_cast %358 : vector<2x1x1x32xf32> to vector<2x32xf32>
    %360 = arith.maximumf %357, %359 : vector<2x32xf32>
    %c0_258 = arith.constant 0 : index
    %c0_259 = arith.constant 0 : index
    %361 = vector.load %arg4[%c0_258, %c0_259] : memref<1x32xf32, #tpu.memory_space<vmem>>, vector<1x32xf32>
    %362 = vector.broadcast %361 : vector<1x32xf32> to vector<2x32xf32>
    %363 = arith.addf %360, %362 : vector<2x32xf32>
    %cst_260 = arith.constant 0.000000e+00 : f32
    %364 = vector.broadcast %cst_260 : f32 to vector<2x32xf32>
    %365 = arith.maximumf %363, %364 : vector<2x32xf32>
    %366 = arith.truncf %365 : vector<2x32xf32> to vector<2x32xbf16>
    %c10_261 = arith.constant 10 : index
    %c0_262 = arith.constant 0 : index
    %c0_263 = arith.constant 0 : index
    %367 = vector.load %arg5[%c10_261, %c0_262, %c0_263] : memref<16x32x32xbf16, #tpu.memory_space<vmem>>, vector<1x32x32xbf16>
    %368 = vector.shape_cast %367 : vector<1x32x32xbf16> to vector<32x32xbf16>
    %cst_264 = arith.constant dense<0.000000e+00> : vector<2x32xf32>
    %369 = tpu.matmul %366, %368, %cst_264 {dimension_numbers = #tpu.dot_dimension_numbers<[1], [0], [0], [1], [0, 0, 1, 1], [], []>} : vector<2x32xbf16>, vector<32x32xbf16>, vector<2x32xf32> -> vector<2x32xf32>
    %370 = arith.addf %355, %369 : vector<2x32xf32>
    %371 = vector.extract_strided_slice %204 {offsets = [0, 2, 6, 0], sizes = [2, 1, 1, 32], strides = [1, 1, 1, 1]} : vector<2x4x8x32xf32> to vector<2x1x1x32xf32>
    %372 = vector.shape_cast %371 : vector<2x1x1x32xf32> to vector<2x32xf32>
    %373 = vector.extract_strided_slice %204 {offsets = [0, 2, 7, 0], sizes = [2, 1, 1, 32], strides = [1, 1, 1, 1]} : vector<2x4x8x32xf32> to vector<2x1x1x32xf32>
    %374 = vector.shape_cast %373 : vector<2x1x1x32xf32> to vector<2x32xf32>
    %375 = arith.maximumf %372, %374 : vector<2x32xf32>
    %c0_265 = arith.constant 0 : index
    %c0_266 = arith.constant 0 : index
    %376 = vector.load %arg4[%c0_265, %c0_266] : memref<1x32xf32, #tpu.memory_space<vmem>>, vector<1x32xf32>
    %377 = vector.broadcast %376 : vector<1x32xf32> to vector<2x32xf32>
    %378 = arith.addf %375, %377 : vector<2x32xf32>
    %cst_267 = arith.constant 0.000000e+00 : f32
    %379 = vector.broadcast %cst_267 : f32 to vector<2x32xf32>
    %380 = arith.maximumf %378, %379 : vector<2x32xf32>
    %381 = arith.truncf %380 : vector<2x32xf32> to vector<2x32xbf16>
    %c11_268 = arith.constant 11 : index
    %c0_269 = arith.constant 0 : index
    %c0_270 = arith.constant 0 : index
    %382 = vector.load %arg5[%c11_268, %c0_269, %c0_270] : memref<16x32x32xbf16, #tpu.memory_space<vmem>>, vector<1x32x32xbf16>
    %383 = vector.shape_cast %382 : vector<1x32x32xbf16> to vector<32x32xbf16>
    %cst_271 = arith.constant dense<0.000000e+00> : vector<2x32xf32>
    %384 = tpu.matmul %381, %383, %cst_271 {dimension_numbers = #tpu.dot_dimension_numbers<[1], [0], [0], [1], [0, 0, 1, 1], [], []>} : vector<2x32xbf16>, vector<32x32xbf16>, vector<2x32xf32> -> vector<2x32xf32>
    %385 = arith.addf %370, %384 : vector<2x32xf32>
    %386 = vector.extract_strided_slice %204 {offsets = [0, 3, 0, 0], sizes = [2, 1, 1, 32], strides = [1, 1, 1, 1]} : vector<2x4x8x32xf32> to vector<2x1x1x32xf32>
    %387 = vector.shape_cast %386 : vector<2x1x1x32xf32> to vector<2x32xf32>
    %388 = vector.extract_strided_slice %204 {offsets = [0, 3, 1, 0], sizes = [2, 1, 1, 32], strides = [1, 1, 1, 1]} : vector<2x4x8x32xf32> to vector<2x1x1x32xf32>
    %389 = vector.shape_cast %388 : vector<2x1x1x32xf32> to vector<2x32xf32>
    %390 = arith.maximumf %387, %389 : vector<2x32xf32>
    %c0_272 = arith.constant 0 : index
    %c0_273 = arith.constant 0 : index
    %391 = vector.load %arg4[%c0_272, %c0_273] : memref<1x32xf32, #tpu.memory_space<vmem>>, vector<1x32xf32>
    %392 = vector.broadcast %391 : vector<1x32xf32> to vector<2x32xf32>
    %393 = arith.addf %390, %392 : vector<2x32xf32>
    %cst_274 = arith.constant 0.000000e+00 : f32
    %394 = vector.broadcast %cst_274 : f32 to vector<2x32xf32>
    %395 = arith.maximumf %393, %394 : vector<2x32xf32>
    %396 = arith.truncf %395 : vector<2x32xf32> to vector<2x32xbf16>
    %c12_275 = arith.constant 12 : index
    %c0_276 = arith.constant 0 : index
    %c0_277 = arith.constant 0 : index
    %397 = vector.load %arg5[%c12_275, %c0_276, %c0_277] : memref<16x32x32xbf16, #tpu.memory_space<vmem>>, vector<1x32x32xbf16>
    %398 = vector.shape_cast %397 : vector<1x32x32xbf16> to vector<32x32xbf16>
    %cst_278 = arith.constant dense<0.000000e+00> : vector<2x32xf32>
    %399 = tpu.matmul %396, %398, %cst_278 {dimension_numbers = #tpu.dot_dimension_numbers<[1], [0], [0], [1], [0, 0, 1, 1], [], []>} : vector<2x32xbf16>, vector<32x32xbf16>, vector<2x32xf32> -> vector<2x32xf32>
    %400 = arith.addf %385, %399 : vector<2x32xf32>
    %401 = vector.extract_strided_slice %204 {offsets = [0, 3, 2, 0], sizes = [2, 1, 1, 32], strides = [1, 1, 1, 1]} : vector<2x4x8x32xf32> to vector<2x1x1x32xf32>
    %402 = vector.shape_cast %401 : vector<2x1x1x32xf32> to vector<2x32xf32>
    %403 = vector.extract_strided_slice %204 {offsets = [0, 3, 3, 0], sizes = [2, 1, 1, 32], strides = [1, 1, 1, 1]} : vector<2x4x8x32xf32> to vector<2x1x1x32xf32>
    %404 = vector.shape_cast %403 : vector<2x1x1x32xf32> to vector<2x32xf32>
    %405 = arith.maximumf %402, %404 : vector<2x32xf32>
    %c0_279 = arith.constant 0 : index
    %c0_280 = arith.constant 0 : index
    %406 = vector.load %arg4[%c0_279, %c0_280] : memref<1x32xf32, #tpu.memory_space<vmem>>, vector<1x32xf32>
    %407 = vector.broadcast %406 : vector<1x32xf32> to vector<2x32xf32>
    %408 = arith.addf %405, %407 : vector<2x32xf32>
    %cst_281 = arith.constant 0.000000e+00 : f32
    %409 = vector.broadcast %cst_281 : f32 to vector<2x32xf32>
    %410 = arith.maximumf %408, %409 : vector<2x32xf32>
    %411 = arith.truncf %410 : vector<2x32xf32> to vector<2x32xbf16>
    %c13_282 = arith.constant 13 : index
    %c0_283 = arith.constant 0 : index
    %c0_284 = arith.constant 0 : index
    %412 = vector.load %arg5[%c13_282, %c0_283, %c0_284] : memref<16x32x32xbf16, #tpu.memory_space<vmem>>, vector<1x32x32xbf16>
    %413 = vector.shape_cast %412 : vector<1x32x32xbf16> to vector<32x32xbf16>
    %cst_285 = arith.constant dense<0.000000e+00> : vector<2x32xf32>
    %414 = tpu.matmul %411, %413, %cst_285 {dimension_numbers = #tpu.dot_dimension_numbers<[1], [0], [0], [1], [0, 0, 1, 1], [], []>} : vector<2x32xbf16>, vector<32x32xbf16>, vector<2x32xf32> -> vector<2x32xf32>
    %415 = arith.addf %400, %414 : vector<2x32xf32>
    %416 = vector.extract_strided_slice %204 {offsets = [0, 3, 4, 0], sizes = [2, 1, 1, 32], strides = [1, 1, 1, 1]} : vector<2x4x8x32xf32> to vector<2x1x1x32xf32>
    %417 = vector.shape_cast %416 : vector<2x1x1x32xf32> to vector<2x32xf32>
    %418 = vector.extract_strided_slice %204 {offsets = [0, 3, 5, 0], sizes = [2, 1, 1, 32], strides = [1, 1, 1, 1]} : vector<2x4x8x32xf32> to vector<2x1x1x32xf32>
    %419 = vector.shape_cast %418 : vector<2x1x1x32xf32> to vector<2x32xf32>
    %420 = arith.maximumf %417, %419 : vector<2x32xf32>
    %c0_286 = arith.constant 0 : index
    %c0_287 = arith.constant 0 : index
    %421 = vector.load %arg4[%c0_286, %c0_287] : memref<1x32xf32, #tpu.memory_space<vmem>>, vector<1x32xf32>
    %422 = vector.broadcast %421 : vector<1x32xf32> to vector<2x32xf32>
    %423 = arith.addf %420, %422 : vector<2x32xf32>
    %cst_288 = arith.constant 0.000000e+00 : f32
    %424 = vector.broadcast %cst_288 : f32 to vector<2x32xf32>
    %425 = arith.maximumf %423, %424 : vector<2x32xf32>
    %426 = arith.truncf %425 : vector<2x32xf32> to vector<2x32xbf16>
    %c14_289 = arith.constant 14 : index
    %c0_290 = arith.constant 0 : index
    %c0_291 = arith.constant 0 : index
    %427 = vector.load %arg5[%c14_289, %c0_290, %c0_291] : memref<16x32x32xbf16, #tpu.memory_space<vmem>>, vector<1x32x32xbf16>
    %428 = vector.shape_cast %427 : vector<1x32x32xbf16> to vector<32x32xbf16>
    %cst_292 = arith.constant dense<0.000000e+00> : vector<2x32xf32>
    %429 = tpu.matmul %426, %428, %cst_292 {dimension_numbers = #tpu.dot_dimension_numbers<[1], [0], [0], [1], [0, 0, 1, 1], [], []>} : vector<2x32xbf16>, vector<32x32xbf16>, vector<2x32xf32> -> vector<2x32xf32>
    %430 = arith.addf %415, %429 : vector<2x32xf32>
    %431 = vector.extract_strided_slice %204 {offsets = [0, 3, 6, 0], sizes = [2, 1, 1, 32], strides = [1, 1, 1, 1]} : vector<2x4x8x32xf32> to vector<2x1x1x32xf32>
    %432 = vector.shape_cast %431 : vector<2x1x1x32xf32> to vector<2x32xf32>
    %433 = vector.extract_strided_slice %204 {offsets = [0, 3, 7, 0], sizes = [2, 1, 1, 32], strides = [1, 1, 1, 1]} : vector<2x4x8x32xf32> to vector<2x1x1x32xf32>
    %434 = vector.shape_cast %433 : vector<2x1x1x32xf32> to vector<2x32xf32>
    %435 = arith.maximumf %432, %434 : vector<2x32xf32>
    %c0_293 = arith.constant 0 : index
    %c0_294 = arith.constant 0 : index
    %436 = vector.load %arg4[%c0_293, %c0_294] : memref<1x32xf32, #tpu.memory_space<vmem>>, vector<1x32xf32>
    %437 = vector.broadcast %436 : vector<1x32xf32> to vector<2x32xf32>
    %438 = arith.addf %435, %437 : vector<2x32xf32>
    %cst_295 = arith.constant 0.000000e+00 : f32
    %439 = vector.broadcast %cst_295 : f32 to vector<2x32xf32>
    %440 = arith.maximumf %438, %439 : vector<2x32xf32>
    %441 = arith.truncf %440 : vector<2x32xf32> to vector<2x32xbf16>
    %c15_296 = arith.constant 15 : index
    %c0_297 = arith.constant 0 : index
    %c0_298 = arith.constant 0 : index
    %442 = vector.load %arg5[%c15_296, %c0_297, %c0_298] : memref<16x32x32xbf16, #tpu.memory_space<vmem>>, vector<1x32x32xbf16>
    %443 = vector.shape_cast %442 : vector<1x32x32xbf16> to vector<32x32xbf16>
    %cst_299 = arith.constant dense<0.000000e+00> : vector<2x32xf32>
    %444 = tpu.matmul %441, %443, %cst_299 {dimension_numbers = #tpu.dot_dimension_numbers<[1], [0], [0], [1], [0, 0, 1, 1], [], []>} : vector<2x32xbf16>, vector<32x32xbf16>, vector<2x32xf32> -> vector<2x32xf32>
    %445 = arith.addf %430, %444 : vector<2x32xf32>
    %c0_300 = arith.constant 0 : index
    %c0_301 = arith.constant 0 : index
    %446 = vector.load %arg6[%c0_300, %c0_301] : memref<1x32xf32, #tpu.memory_space<vmem>>, vector<1x32xf32>
    %447 = vector.broadcast %446 : vector<1x32xf32> to vector<2x32xf32>
    %448 = arith.addf %445, %447 : vector<2x32xf32>
    %cst_302 = arith.constant 0.000000e+00 : f32
    %449 = vector.broadcast %cst_302 : f32 to vector<2x32xf32>
    %450 = arith.maximumf %448, %449 : vector<2x32xf32>
    %451 = arith.truncf %450 : vector<2x32xf32> to vector<2x32xbf16>
    %c0_303 = arith.constant 0 : index
    %c0_304 = arith.constant 0 : index
    %452 = vector.load %arg7[%c0_303, %c0_304] : memref<32x128xbf16, #tpu.memory_space<vmem>>, vector<32x128xbf16>
    %cst_305 = arith.constant dense<0.000000e+00> : vector<2x128xf32>
    %453 = tpu.matmul %451, %452, %cst_305 {dimension_numbers = #tpu.dot_dimension_numbers<[1], [0], [0], [1], [0, 0, 1, 1], [], []>} : vector<2x32xbf16>, vector<32x128xbf16>, vector<2x128xf32> -> vector<2x128xf32>
    %c0_306 = arith.constant 0 : index
    %c0_307 = arith.constant 0 : index
    %454 = vector.load %arg8[%c0_306, %c0_307] : memref<1x128xf32, #tpu.memory_space<vmem>>, vector<1x128xf32>
    %455 = vector.broadcast %454 : vector<1x128xf32> to vector<2x128xf32>
    %456 = arith.addf %453, %455 : vector<2x128xf32>
    %cst_308 = arith.constant dense<0xFF800000> : vector<2xf32>
    %457 = vector.multi_reduction <maximumf>, %456, %cst_308 [1] : vector<2x128xf32> to vector<2xf32>
    %458 = vector.shape_cast %457 : vector<2xf32> to vector<2x1xf32>
    %459 = vector.broadcast %458 : vector<2x1xf32> to vector<2x128xf32>
    %460 = arith.subf %456, %459 : vector<2x128xf32>
    %461 = math.exp %460 : vector<2x128xf32>
    %cst_309 = arith.constant dense<0.000000e+00> : vector<2xf32>
    %462 = vector.multi_reduction <add>, %461, %cst_309 [1] : vector<2x128xf32> to vector<2xf32>
    %463 = vector.shape_cast %462 : vector<2xf32> to vector<2x1xf32>
    %464 = math.log %463 : vector<2x1xf32>
    %465 = vector.broadcast %464 : vector<2x1xf32> to vector<2x128xf32>
    %466 = arith.subf %460, %465 : vector<2x128xf32>
    %c0_310 = arith.constant 0 : index
    %c0_311 = arith.constant 0 : index
    %467 = vector.load %arg9[%c0_310, %c0_311] : memref<2x128xf32, #tpu.memory_space<vmem>>, vector<2x128xf32>
    tpu.vector_store %arg9[%c0_310, %c0_311], %466 {strides = array<i32>} : memref<2x128xf32, #tpu.memory_space<vmem>>, vector<2x128xf32>,
    return
  }
}

</mosaic_0001>

<bundles_post_ra>
// kernel: net_forward.1
= control target key start
LH: loop header
LB: loop body
LE: loop exit
PB: predicated region body
PF: predicated region fallthrough
CT: control target
= control target key end

     0   :  { %vm554_vm0 = vcmask 261120   ;;  %s13126_s0 = inlined_call_operand.vmem [shape: bf16[1152,32], index: 0, kind: input, shape index: {}]   ;;  %s13127_s1 = inlined_call_operand.vmem [shape: bf16[32,32], index: 1, kind: input, shape index: {}]   ;;  %s13128_s2 = inlined_call_operand.vmem [shape: f32[1,32], index: 2, kind: input, shape index: {}]   ;;  %s13129_s3 = inlined_call_operand.vmem [shape: bf16[25,32,32], index: 3, kind: input, shape index: {}]   ;;  %s13130_s4 = inlined_call_operand.vmem [shape: f32[1,32], index: 4, kind: input, shape index: {}]   ;;  %s13131_s5 = inlined_call_operand.vmem [shape: bf16[16,32,32], index: 5, kind: input, shape index: {}]   ;;  %s13132_s6 = inlined_call_operand.vmem [shape: f32[1,32], index: 6, kind: input, shape index: {}]   ;;  %s13133_s7 = inlined_call_operand.vmem [shape: bf16[32,128], index: 7, kind: input, shape index: {}]   ;;  %s13134_s8 = inlined_call_operand.vmem [shape: f32[1,128], index: 8, kind: input, shape index: {}]   ;;  %s13135_s9 = inlined_call_operand.hbm [shape: f32[2,128], index: 9, kind: output, shape index: {}]  }
   0x1   :  { %v10125_v0 = vld [vmem:[%s13127_s1] sm:$0xff]   ;;  %v10126_v1 = vld [vmem:[%s13127_s1 + $0x8] sm:$0xff]   ;;  %v10129_v4 = vld [vmem:[%s13126_s0 + $0x10] sm:$0xff]  }
   0x2   :  { %8954 = vmatprep.subr.bf16.mxu0 %v10125_v0  ;;  %v10127_v2 = vld [vmem:[%s13126_s0] sm:$0xff]   ;;  %v10128_v3 = vld [vmem:[%s13126_s0 + $0x8] sm:$0xff]   ;;  %v10130_v5 = vld [vmem:[%s13126_s0 + $0x18] sm:$0xff]  }
   0x3   :  { %8955 = vmatpush3.bf16.msra.mxu0 %v10125_v0  ;;  %8958 = vmatprep.mubr.msk.bf16.mxu0 %vm554_vm0, %v10127_v2  ;;  %v10131_v6 = vld [vmem:[%s13126_s0 + $0x20] sm:$0xff]   ;;  %v10132_v7 = vld [vmem:[%s13126_s0 + $0x28] sm:$0xff]   ;;  %v10133_v8 = vld [vmem:[%s13126_s0 + $0x30] sm:$0xff]  }
   0x4   :  { %8956 = vmatprep.subr.bf16.mxu0 %v10126_v1  ;;  %v10134_v9 = vld [vmem:[%s13126_s0 + $0x38] sm:$0xff]   ;;  %v10135_v10 = vld [vmem:[%s13126_s0 + $0x40] sm:$0xff]   ;;  %v10136_v11 = vld [vmem:[%s13126_s0 + $0x48] sm:$0xff]  }
   0x5   :  { %v10137_v12 = vld [vmem:[%s13126_s0 + $0x50] sm:$0xff]   ;;  %v10138_v13 = vld [vmem:[%s13126_s0 + $0x58] sm:$0xff]   ;;  %v10139_v14 = vld [vmem:[%s13126_s0 + $0x60] sm:$0xff]  }
   0x6   :  { %v10140_v15 = vld [vmem:[%s13126_s0 + $0x68] sm:$0xff]   ;;  %v10141_v16 = vld [vmem:[%s13126_s0 + $0x70] sm:$0xff]   ;;  %v10142_v17 = vld [vmem:[%s13126_s0 + $0x78] sm:$0xff]  }
   0x7   :  { %8957 = vmatpush3.bf16.msra.mxu0 %v10126_v1  ;;  %v10143_v18 = vld [vmem:[%s13126_s0 + $0x80] sm:$0xff]   ;;  %v10144_v19 = vld [vmem:[%s13126_s0 + $0x88] sm:$0xff]   ;;  %v10145_v20 = vld [vmem:[%s13126_s0 + $0x90] sm:$0xff]  }
   0x8   :  { %v10146_v21 = vld [vmem:[%s13126_s0 + $0x98] sm:$0xff]   ;;  %v10147_v22 = vld [vmem:[%s13126_s0 + $0xa0] sm:$0xff]   ;;  %v10148_v23 = vld [vmem:[%s13126_s0 + $0xa8] sm:$0xff]  }
   0x9   :  { %v10149_v24 = vld [vmem:[%s13126_s0 + $0xb0] sm:$0xff]   ;;  %v10150_v25 = vld [vmem:[%s13126_s0 + $0xb8] sm:$0xff]   ;;  %v10151_v26 = vld [vmem:[%s13126_s0 + $0xc0] sm:$0xff]  }
   0xa   :  { %8959 = vmatmul.mubr.msk.bf16.vlgmr.msra.gmra.mrb[0].mxu0 %vm554_vm0, %v10128_v3  ;;  %v10152_v27 = vld [vmem:[%s13126_s0 + $0xc8] sm:$0xff]   ;;  %v10153_v28 = vld [vmem:[%s13126_s0 + $0xd0] sm:$0xff]   ;;  %v10154_v29 = vld [vmem:[%s13126_s0 + $0xd8] sm:$0xff]  }
   0xb   :  { %8962 = vmatprep.mubr.msk.bf16.mxu0 %vm554_vm0, %v10129_v4  ;;  %v10155_v30 = vld [vmem:[%s13126_s0 + $0xe0] sm:$0xff]   ;;  %v10156_v31 = vld [vmem:[%s13126_s0 + $0xe8] sm:$0xff]   ;;  %v10157_v32 = vld [vmem:[%s13126_s0 + $0xf0] sm:$0xff]  }
   0xc   :  { %v10158_v33 = vld [vmem:[%s13126_s0 + $0xf8] sm:$0xff]  }
  0x12   :  { %8963 = vmatmul.mubr.msk.bf16.gmra.mrb[4].mxu0 %vm554_vm0, %v10130_v5 }
  0x13   :  { %8966 = vmatprep.mubr.msk.bf16.mxu0 %vm554_vm0, %v10131_v6 }
  0x1a   :  { %8967 = vmatmul.mubr.msk.bf16.gmra.mrb[8].mxu0 %vm554_vm0, %v10132_v7 }
  0x1b   :  { %8970 = vmatprep.mubr.msk.bf16.mxu0 %vm554_vm0, %v10133_v8 }
  0x22   :  { %8971 = vmatmul.mubr.msk.bf16.gmra.mrb[12].mxu0 %vm554_vm0, %v10134_v9 }
  0x23   :  { %8974 = vmatprep.mubr.msk.bf16.mxu0 %vm554_vm0, %v10135_v10 }
  0x2a   :  { %8975 = vmatmul.mubr.msk.bf16.gmra.mrb[16].mxu0 %vm554_vm0, %v10136_v11 }
  0x2b   :  { %8978 = vmatprep.mubr.msk.bf16.mxu0 %vm554_vm0, %v10137_v12 }
  0x32   :  { %8979 = vmatmul.mubr.msk.bf16.gmra.mrb[20].mxu0 %vm554_vm0, %v10138_v13 }
  0x33   :  { %8982 = vmatprep.mubr.msk.bf16.mxu0 %vm554_vm0, %v10139_v14 }
  0x3a   :  { %8983 = vmatmul.mubr.msk.bf16.gmra.mrb[24].mxu0 %vm554_vm0, %v10140_v15 }
  0x3b   :  { %8986 = vmatprep.mubr.msk.bf16.mxu0 %vm554_vm0, %v10141_v16 }
  0x42   :  { %8987 = vmatmul.mubr.msk.bf16.gmra.mrb[28].mxu0 %vm554_vm0, %v10142_v17 }
  0x43   :  { %8990 = vmatprep.mubr.msk.bf16.mxu0 %vm554_vm0, %v10143_v18 }
  0x4a   :  { %8991 = vmatmul.mubr.msk.bf16.gmra.mrb[32].mxu0 %vm554_vm0, %v10144_v19 }
  0x4b   :  { %8994 = vmatprep.mubr.msk.bf16.mxu0 %vm554_vm0, %v10145_v20 }
  0x52   :  { %8995 = vmatmul.mubr.msk.bf16.gmra.mrb[36].mxu0 %vm554_vm0, %v10146_v21 }
  0x53   :  { %8998 = vmatprep.mubr.msk.bf16.mxu0 %vm554_vm0, %v10147_v22 }
  0x5a   :  { %8999 = vmatmul.mubr.msk.bf16.gmra.mrb[40].mxu0 %vm554_vm0, %v10148_v23 }
  0x5b   :  { %9002 = vmatprep.mubr.msk.bf16.mxu0 %vm554_vm0, %v10149_v24 }
  0x62   :  { %9003 = vmatmul.mubr.msk.bf16.gmra.mrb[44].mxu0 %vm554_vm0, %v10150_v25 }
  0x63   :  { %9006 = vmatprep.mubr.msk.bf16.mxu0 %vm554_vm0, %v10151_v26 }
  0x6a   :  { %9007 = vmatmul.mubr.msk.bf16.gmra.mrb[48].mxu0 %vm554_vm0, %v10152_v27 }
  0x6b   :  { %9010 = vmatprep.mubr.msk.bf16.mxu0 %vm554_vm0, %v10153_v28 }
  0x72   :  { %9011 = vmatmul.mubr.msk.bf16.gmra.mrb[52].mxu0 %vm554_vm0, %v10154_v29 }
  0x73   :  { %9014 = vmatprep.mubr.msk.bf16.mxu0 %vm554_vm0, %v10155_v30 }
  0x7a   :  { %9015 = vmatmul.mubr.msk.bf16.gmra.mrb[56].mxu0 %vm554_vm0, %v10156_v31 }
  0x7b   :  { %9018 = vmatprep.mubr.msk.bf16.mxu0 %vm554_vm0, %v10157_v32 }
  0x7c   :  { %14 = vsyncpa [#allocation4], 0  ;;  %v10159_v34 = vld [vmem:[%s13126_s0 + $0x100] sm:$0xff]   ;;  %v10160_v35 = vld [vmem:[%s13126_s0 + $0x108] sm:$0xff]   ;;  %vm2278_vm1 = vcmask 257024   ;;  %vm10313_vm2 = vmmov 0  }
  0x7d   :  { %v10161_v36 = vld [vmem:[%s13126_s0 + $0x110] sm:$0xff]   ;;  %v10162_v37 = vld [vmem:[%s13126_s0 + $0x118] sm:$0xff]   ;;  %v10163_v38 = vld [vmem:[%s13126_s0 + $0x120] sm:$0xff]   ;;  %vm6791_vm3 = vcmask 1041409   ;;  %vm7944_vm4 = vcmask 1041408  }
  0x7e   :  { %v10164_v39 = vld [vmem:[%s13126_s0 + $0x128] sm:$0xff]   ;;  %v10165_v40 = vld [vmem:[%s13126_s0 + $0x130] sm:$0xff]   ;;  %v10166_v41 = vld [vmem:[%s13126_s0 + $0x138] sm:$0xff]  }
  0x7f   :  { %v10167_v42 = vld [vmem:[%s13126_s0 + $0x140] sm:$0xff]   ;;  %v10168_v43 = vld [vmem:[%s13126_s0 + $0x148] sm:$0xff]   ;;  %v10169_v44 = vld [vmem:[%s13126_s0 + $0x150] sm:$0xff]  }
  0x80   :  { %v10170_v45 = vld [vmem:[%s13126_s0 + $0x158] sm:$0xff]   ;;  %v10171_v46 = vld [vmem:[%s13126_s0 + $0x160] sm:$0xff]   ;;  %v10172_v47 = vld [vmem:[%s13126_s0 + $0x168] sm:$0xff]  }
  0x81   :  { %v10173_v48 = vld [vmem:[%s13126_s0 + $0x170] sm:$0xff]   ;;  %v10174_v49 = vld [vmem:[%s13126_s0 + $0x178] sm:$0xff]   ;;  %v10175_v50 = vld [vmem:[%s13126_s0 + $0x180] sm:$0xff]  }
  0x82   :  { %9019 = vmatmul.mubr.msk.bf16.gmra.mrb[60].mxu0 %vm554_vm0, %v10158_v33  ;;  %v10176_v51 = vld [vmem:[%s13126_s0 + $0x188] sm:$0xff]   ;;  %v10177_v52 = vld [vmem:[%s13126_s0 + $0x190] sm:$0xff]   ;;  %v10178_v53 = vld [vmem:[%s13126_s0 + $0x198] sm:$0xff]  }
  0x83   :  { %9022 = vmatprep.mubr.msk.bf16.mxu0 %vm554_vm0, %v10159_v34  ;;  %v10179_v54 = vld [vmem:[%s13126_s0 + $0x1a0] sm:$0xff]   ;;  %v10180_v55 = vld [vmem:[%s13126_s0 + $0x1a8] sm:$0xff]   ;;  %v10181_v56 = vld [vmem:[%s13126_s0 + $0x1b0] sm:$0xff]  }
  0x84   :  { %v10182_v59 = vld [vmem:[%s13126_s0 + $0x1b8] sm:$0xff]   ;;  %v10183_v61 = vld [vmem:[%s13126_s0 + $0x1c0] sm:$0xff]   ;;  %v10184_v1 = vld [vmem:[%s13126_s0 + $0x1c8] sm:$0xff]  }
  0x85   :  { %v10185_v3 = vld [vmem:[%s13126_s0 + $0x1d0] sm:$0xff]   ;;  %v10186_v7 = vld [vmem:[%s13126_s0 + $0x1d8] sm:$0xff]   ;;  %v10187_v9 = vld [vmem:[%s13126_s0 + $0x1e0] sm:$0xff]  }
  0x86   :  { %v10188_v13 = vld [vmem:[%s13126_s0 + $0x1e8] sm:$0xff]   ;;  %v10189_v15 = vld [vmem:[%s13126_s0 + $0x1f0] sm:$0xff]   ;;  %v10190_v19 = vld [vmem:[%s13126_s0 + $0x1f8] sm:$0xff]  }
  0x87   :  { %v10191_v21 = vld [vmem:[%s13126_s0 + $0x200] sm:$0xff]   ;;  %v10192_v25 = vld [vmem:[%s13126_s0 + $0x208] sm:$0xff]   ;;  %v10193_v27 = vld [vmem:[%s13126_s0 + $0x210] sm:$0xff]  }
  0x88   :  { %v10194_v31 = vld [vmem:[%s13126_s0 + $0x218] sm:$0xff]   ;;  %v10195_v33 = vld [vmem:[%s13126_s0 + $0x220] sm:$0xff]  }
  0x8a   :  { %9023 = vmatmul.mubr.msk.bf16.gmra.mrb[64].mxu0 %vm554_vm0, %v10160_v35 }
  0x8b   :  { %9026 = vmatprep.mubr.msk.bf16.mxu0 %vm554_vm0, %v10161_v36 }
  0x92   :  { %9027 = vmatmul.mubr.msk.bf16.gmra.mrb[68].mxu0 %vm554_vm0, %v10162_v37  ;;  %v10196_v37 = vld [vmem:[%s13126_s0 + $0x228] sm:$0xff]  }
  0x93   :  { %9030 = vmatprep.mubr.msk.bf16.mxu0 %vm554_vm0, %v10163_v38 }
  0x9a   :  { %9031 = vmatmul.mubr.msk.bf16.gmra.mrb[72].mxu0 %vm554_vm0, %v10164_v39  ;;  %v10197_v39 = vld [vmem:[%s13126_s0 + $0x230] sm:$0xff]  }
  0x9b   :  { %9034 = vmatprep.mubr.msk.bf16.mxu0 %vm554_vm0, %v10165_v40 }
  0xa2   :  { %9035 = vmatmul.mubr.msk.bf16.gmra.mrb[76].mxu0 %vm554_vm0, %v10166_v41 }
  0xa3   :  { %9038 = vmatprep.mubr.msk.bf16.mxu0 %vm554_vm0, %v10167_v42 }
  0xaa   :  { %9039 = vmatmul.mubr.msk.bf16.gmra.mrb[80].mxu0 %vm554_vm0, %v10168_v43  ;;  %v10198_v43 = vld [vmem:[%s13126_s0 + $0x238] sm:$0xff]  }
  0xab   :  { %9042 = vmatprep.mubr.msk.bf16.mxu0 %vm554_vm0, %v10169_v44 }
  0xb2   :  { %9043 = vmatmul.mubr.msk.bf16.gmra.mrb[84].mxu0 %vm554_vm0, %v10170_v45 }
  0xb3   :  { %9046 = vmatprep.mubr.msk.bf16.mxu0 %vm554_vm0, %v10171_v46 }
  0xba   :  { %9047 = vmatmul.mubr.msk.bf16.gmra.mrb[88].mxu0 %vm554_vm0, %v10172_v47 }
  0xbb   :  { %9050 = vmatprep.mubr.msk.bf16.mxu0 %vm554_vm0, %v10173_v48 }
  0xc2   :  { %9051 = vmatmul.mubr.msk.bf16.gmra.mrb[92].mxu0 %vm554_vm0, %v10174_v49 }
  0xc3   :  { %9054 = vmatprep.mubr.msk.bf16.mxu0 %vm554_vm0, %v10175_v50 }
  0xca   :  { %9055 = vmatmul.mubr.msk.bf16.gmra.mrb[96].mxu0 %vm554_vm0, %v10176_v51 }
  0xcb   :  { %9058 = vmatprep.mubr.msk.bf16.mxu0 %vm554_vm0, %v10177_v52 }
  0xd2   :  { %9059 = vmatmul.mubr.msk.bf16.gmra.mrb[100].mxu0 %vm554_vm0, %v10178_v53 }
  0xd3   :  { %9062 = vmatprep.mubr.msk.bf16.mxu0 %vm554_vm0, %v10179_v54 }
  0xda   :  { %9063 = vmatmul.mubr.msk.bf16.gmra.mrb[104].mxu0 %vm554_vm0, %v10180_v55 }
  0xdb   :  { %9066 = vmatprep.mubr.msk.bf16.mxu0 %vm554_vm0, %v10181_v56 }
  0xdd   :  { %v10591_v57 = vpop.f32.mrb[0].mxu0 }
  0xde   :  { %v10593_v58 = vpop.f32.mrb[1].mxu0  ;;  %v1526_v47 = vcombine.high %v10591_v57, %v10591_v57 }
  0xdf   :  { %v10598_v60 = vpop.f32.mrb[2].mxu0  ;;  %v1524_v51 = vcombine.high %v10593_v58, %v10593_v58 }
  0xe0   :  { %v10603_v62 = vpop.f32.mrb[3].mxu0  ;;  %v1527_v55 = vcombine.high %v10598_v60, %v10598_v60 }
  0xe2   :  { %9067 = vmatmul.mubr.msk.bf16.gmra.mrb[108].mxu0 %vm554_vm0, %v10182_v59 }
  0xe3   :  { %9070 = vmatprep.mubr.msk.bf16.mxu0 %vm554_vm0, %v10183_v61 }
  0xe5   :  { %v10607_v63 = vpop.f32.mrb[4].mxu0 }
  0xe6   :  { %v10609_v0 = vpop.f32.mrb[5].mxu0 }
  0xe7   :  { %v10614_v2 = vpop.f32.mrb[6].mxu0 }
  0xe8   :  { %13302 = vst [vmem:[#allocation6_spill] sm:$0xff] %v10614_v2  ;;  %v10619_v4 = vpop.f32.mrb[7].mxu0 }
  0xe9   :  { %13303 = vst [vmem:[#allocation7_spill] sm:$0xff] %v10619_v4 }
  0xea   :  { %9071 = vmatmul.mubr.msk.bf16.gmra.mrb[112].mxu0 %vm554_vm0, %v10184_v1 }
  0xeb   :  { %9074 = vmatprep.mubr.msk.bf16.mxu0 %vm554_vm0, %v10185_v3  ;;  %v1525_v3 = vcombine.high %v10603_v62, %v10603_v62 }
  0xed   :  { %v10623_v5 = vpop.f32.mrb[8].mxu0 }
  0xee   :  { %13304 = vst [vmem:[#allocation8_spill] sm:$0xff] %v10623_v5  ;;  %v10625_v6 = vpop.f32.mrb[9].mxu0 }
  0xef   :  { %13305 = vst [vmem:[#allocation9_spill] sm:$0xff] %v10625_v6  ;;  %v10630_v8 = vpop.f32.mrb[10].mxu0 }
  0xf0   :  { %13306 = vst [vmem:[#allocation10_spill] sm:$0xff] %v10630_v8  ;;  %v10635_v10 = vpop.f32.mrb[11].mxu0 }
  0xf1   :  { %13307 = vst [vmem:[#allocation11_spill] sm:$0xff] %v10635_v10 }
  0xf2   :  { %9075 = vmatmul.mubr.msk.bf16.gmra.mrb[116].mxu0 %vm554_vm0, %v10186_v7 }
  0xf3   :  { %9078 = vmatprep.mubr.msk.bf16.mxu0 %vm554_vm0, %v10187_v9 }
  0xf5   :  { %v10639_v11 = vpop.f32.mrb[12].mxu0 }
  0xf6   :  { %13308 = vst [vmem:[#allocation12_spill] sm:$0xff] %v10639_v11  ;;  %v10641_v12 = vpop.f32.mrb[13].mxu0  ;;  %v1538_v49 = vcombine.high %v10639_v11, %v10639_v11 }
  0xf7   :  { %13309 = vst [vmem:[#allocation13_spill] sm:$0xff] %v10641_v12  ;;  %v10646_v14 = vpop.f32.mrb[14].mxu0 }
  0xf8   :  { %13310 = vst [vmem:[#allocation14_spill] sm:$0xff] %v10646_v14  ;;  %v10651_v16 = vpop.f32.mrb[15].mxu0 }
  0xf9   :  { %13311 = vst [vmem:[#allocation15_spill] sm:$0xff] %v10651_v16 }
  0xfa   :  { %9079 = vmatmul.mubr.msk.bf16.gmra.mrb[120].mxu0 %vm554_vm0, %v10188_v13 }
  0xfb   :  { %9082 = vmatprep.mubr.msk.bf16.mxu0 %vm554_vm0, %v10189_v15 }
  0xfd   :  { %v10655_v17 = vpop.f32.mrb[16].mxu0 }
  0xfe   :  { %13312 = vst [vmem:[#allocation16_spill] sm:$0xff] %v10655_v17  ;;  %v10657_v18 = vpop.f32.mrb[17].mxu0 }
  0xff   :  { %13313 = vst [vmem:[#allocation17_spill] sm:$0xff] %v10657_v18  ;;  %v10662_v20 = vpop.f32.mrb[18].mxu0 }
 0x100   :  { %13314 = vst [vmem:[#allocation18_spill] sm:$0xff] %v10662_v20  ;;  %v10667_v22 = vpop.f32.mrb[19].mxu0 }
 0x101   :  { %13315 = vst [vmem:[#allocation19_spill] sm:$0xff] %v10667_v22 }
 0x102   :  { %9083 = vmatmul.mubr.msk.bf16.gmra.mrb[124].mxu0 %vm554_vm0, %v10190_v19 }
 0x103   :  { %9086 = vmatprep.mubr.msk.bf16.mxu0 %vm554_vm0, %v10191_v21 }
 0x105   :  { %v10671_v23 = vpop.f32.mrb[20].mxu0 }
 0x106   :  { %13316 = vst [vmem:[#allocation20_spill] sm:$0xff] %v10671_v23  ;;  %v10673_v24 = vpop.f32.mrb[21].mxu0 }
 0x107   :  { %13317 = vst [vmem:[#allocation21_spill] sm:$0xff] %v10673_v24  ;;  %v10678_v26 = vpop.f32.mrb[22].mxu0 }
 0x108   :  { %13318 = vst [vmem:[#allocation22_spill] sm:$0xff] %v10678_v26  ;;  %v10683_v28 = vpop.f32.mrb[23].mxu0 }
 0x109   :  { %13319 = vst [vmem:[#allocation23_spill] sm:$0xff] %v10683_v28 }
 0x10a   :  { %9087 = vmatmul.mubr.msk.bf16.gmra.mrb[128].mxu0 %vm554_vm0, %v10192_v25  ;;  %v1530_v25 = vcombine.high %v10607_v63, %v10607_v63 }
 0x10b   :  { %9090 = vmatprep.mubr.msk.bf16.mxu0 %vm554_vm0, %v10193_v27 }
 0x10d   :  { %v10687_v29 = vpop.f32.mrb[24].mxu0 }
 0x10e   :  { %13320 = vst [vmem:[#allocation24_spill] sm:$0xff] %v10687_v29  ;;  %v10689_v30 = vpop.f32.mrb[25].mxu0 }
 0x10f   :  { %13321 = vst [vmem:[#allocation25_spill] sm:$0xff] %v10689_v30  ;;  %v10694_v32 = vpop.f32.mrb[26].mxu0 }
 0x110   :  { %13322 = vst [vmem:[#allocation26_spill] sm:$0xff] %v10694_v32  ;;  %v10699_v34 = vpop.f32.mrb[27].mxu0 }
 0x111   :  { %13323 = vst [vmem:[#allocation27_spill] sm:$0xff] %v10699_v34 }
 0x112   :  { %9091 = vmatmul.mubr.msk.bf16.gmra.mrb[132].mxu0 %vm554_vm0, %v10194_v31 }
 0x113   :  { %9094 = vmatprep.mubr.msk.bf16.mxu0 %vm554_vm0, %v10195_v33 }
 0x115   :  { %v10703_v35 = vpop.f32.mrb[28].mxu0 }
 0x116   :  { %13324 = vst [vmem:[#allocation28_spill] sm:$0xff] %v10703_v35  ;;  %v10705_v36 = vpop.f32.mrb[29].mxu0 }
 0x117   :  { %13325 = vst [vmem:[#allocation29_spill] sm:$0xff] %v10705_v36  ;;  %v10710_v38 = vpop.f32.mrb[30].mxu0 }
 0x118   :  { %13326 = vst [vmem:[#allocation30_spill] sm:$0xff] %v10710_v38  ;;  %v10715_v40 = vpop.f32.mrb[31].mxu0 }
 0x119   :  { %13327 = vst [vmem:[#allocation31_spill] sm:$0xff] %v10715_v40 }
 0x11a   :  { %9095 = vmatmul.mubr.msk.bf16.gmra.mrb[136].mxu0 %vm554_vm0, %v10196_v37  ;;  %v1528_v37 = vcombine.high %v10609_v0, %v10609_v0 }
 0x11b   :  { %9098 = vmatprep.mubr.msk.bf16.mxu0 %vm554_vm0, %v10197_v39 }
 0x11d   :  { %v10719_v41 = vpop.f32.mrb[32].mxu0 }
 0x11e   :  { %13328 = vst [vmem:[#allocation32_spill] sm:$0xff] %v10719_v41  ;;  %v10721_v42 = vpop.f32.mrb[33].mxu0 }
 0x11f   :  { %13329 = vst [vmem:[#allocation33_spill] sm:$0xff] %v10721_v42  ;;  %v10726_v44 = vpop.f32.mrb[34].mxu0 }
 0x120   :  { %13330 = vst [vmem:[#allocation34_spill] sm:$0xff] %v10726_v44  ;;  %v10728_v45 = vpop.f32.mrb[35].mxu0 }
 0x121   :  { %13331 = vst [vmem:[#allocation35_spill] sm:$0xff] %v10728_v45 }
 0x122   :  { %9099 = vmatmul.mubr.msk.bf16.gmra.mrb[140].mxu0 %vm554_vm0, %v10198_v43 }
 0x125   :  { %v10731_v46 = vpop.f32.mrb[36].mxu0 }
 0x126   :  { %v1562_v48 = vcombine.high %v10731_v46, %v10731_v46  ;;  %v10739_v50 = vpop.f32.mrb[37].mxu0 }
 0x127   :  { %v1560_v52 = vcombine.high %v10739_v50, %v10739_v50  ;;  %v10747_v54 = vpop.f32.mrb[38].mxu0 }
 0x128   :  { %v10751_v56 = vmax.f32 %v1526_v47, %v1562_v48  ;;  %v1563_v59 = vcombine.high %v10747_v54, %v10747_v54  ;;  %v10757_v1 = vpop.f32.mrb[39].mxu0  ;;  %v1531_v48 = vcombine.high %v10614_v2, %v10614_v2 }
 0x129   :  { %v10761_v7 = vmax.f32 %v1524_v51, %v1560_v52  ;;  %v1561_v9 = vcombine.high %v10757_v1, %v10757_v1 }
 0x12a   :  { %v10767_v15 = vmax.f32 %v1527_v55, %v1563_v59  ;;  %v1534_v55 = vcombine.high %v10623_v5, %v10623_v5  ;;  %v1533_v5 = vcombine.high %v10635_v10, %v10635_v10 }
 0x12b   :  { %v10769_v19 = vmax.f32 %v1525_v3, %v1561_v9  ;;  %v1529_v3 = vcombine.high %v10619_v4, %v10619_v4  ;;  %v13406_v4 = vmax.f32 %v10591_v57, %v10731_v46  ;;  %v13408_v57 = vmax.f32 %v10598_v60, %v10747_v54 }
 0x12d   :  { %v10771_v21 = vpop.f32.mrb[40].mxu0 }
 0x12e   :  { %v1566_v27 = vcombine.high %v10771_v21, %v10771_v21  ;;  %v10779_v33 = vpop.f32.mrb[41].mxu0 }
 0x12f   :  { %13332 = vst [vmem:[#allocation36_spill] sm:$0xff] %v10779_v33  ;;  %v1564_v39 = vcombine.high %v10779_v33, %v10779_v33  ;;  %v10787_v47 = vpop.f32.mrb[42].mxu0 }
 0x130   :  { %13333 = vst [vmem:[#allocation37_spill] sm:$0xff] %v10787_v47  ;;  %v10791_v51 = vmax.f32 %v1530_v25, %v1566_v27  ;;  %v1567_v52 = vcombine.high %v10787_v47, %v10787_v47  ;;  %v10797_v59 = vpop.f32.mrb[43].mxu0  ;;  %v1532_v25 = vcombine.high %v10625_v6, %v10625_v6 }
 0x131   :  { %13334 = vst [vmem:[#allocation38_spill] sm:$0xff] %v10797_v59  ;;  %v10801_v9 = vmax.f32 %v1528_v37, %v1564_v39  ;;  %v1565_v43 = vcombine.high %v10797_v59, %v10797_v59 }
 0x132   :  { %v10807_v27 = vmax.f32 %v1531_v48, %v1567_v52 }
 0x133   :  { %13335 = vst [vmem:[#allocation39_spill] sm:$0xff] %v10801_v9  ;;  %v10809_v31 = vmax.f32 %v1529_v3, %v1565_v43  ;;  %v1535_v3 = vcombine.high %v10630_v8, %v10630_v8  ;;  %v13407_v9 = vmax.f32 %v10593_v58, %v10739_v50  ;;  %v13409_v58 = vmax.f32 %v10603_v62, %v10757_v1 }
 0x134   :  { %13336 = vst [vmem:[#allocation40_spill] sm:$0xff] %v10807_v27 }
 0x135   :  { %13337 = vst [vmem:[#allocation41_spill] sm:$0xff] %v10809_v31  ;;  %v10811_v13 = vpop.f32.mrb[44].mxu0 }
 0x136   :  { %13338 = vst [vmem:[#allocation42_spill] sm:$0xff] %v10811_v13  ;;  %v1570_v61 = vcombine.high %v10811_v13, %v10811_v13  ;;  %v10819_v39 = vpop.f32.mrb[45].mxu0 }
 0x137   :  { %13339 = vst [vmem:[#allocation43_spill] sm:$0xff] %v10819_v39  ;;  %v1568_v43 = vcombine.high %v10819_v39, %v10819_v39  ;;  %v10827_v52 = vpop.f32.mrb[46].mxu0 }
 0x138   :  { %13340 = vst [vmem:[#allocation44_spill] sm:$0xff] %v10827_v52  ;;  %v10831_v53 = vmax.f32 %v1534_v55, %v1570_v61  ;;  %v1571_v37 = vcombine.high %v10827_v52, %v10827_v52  ;;  %v10837_v13 = vpop.f32.mrb[47].mxu0  ;;  %v1536_v61 = vcombine.high %v10641_v12, %v10641_v12 }
 0x139   :  { %13342 = vst [vmem:[#allocation46_spill] sm:$0xff] %v10837_v13  ;;  %v10841_v31 = vmax.f32 %v1532_v25, %v1568_v43  ;;  %v1569_v48 = vcombine.high %v10837_v13, %v10837_v13  ;;  %v1537_v13 = vcombine.high %v10651_v16, %v10651_v16 }
 0x13a   :  { %13341 = vst [vmem:[#allocation45_spill] sm:$0xff] %v10831_v53  ;;  %v10847_v55 = vmax.f32 %v1535_v3, %v1571_v37  ;;  %v1539_v3 = vcombine.high %v10646_v14, %v10646_v14 }
 0x13b   :  { %13343 = vst [vmem:[#allocation47_spill] sm:$0xff] %v10841_v31  ;;  %v10849_v39 = vmax.f32 %v1533_v5, %v1569_v48 }
 0x13c   :  { %13344 = vst [vmem:[#allocation48_spill] sm:$0xff] %v10847_v55 }
 0x13d   :  { %13345 = vst [vmem:[#allocation49_spill] sm:$0xff] %v10849_v39  ;;  %v10851_v6 = vpop.f32.mrb[48].mxu0 }
 0x13e   :  { %13346 = vst [vmem:[#allocation50_spill] sm:$0xff] %v10851_v6  ;;  %v1574_v52 = vcombine.high %v10851_v6, %v10851_v6  ;;  %v10859_v43 = vpop.f32.mrb[49].mxu0  ;;  %v1542_v6 = vcombine.high %v10655_v17, %v10655_v17 }
 0x13f   :  { %13347 = vst [vmem:[#allocation51_spill] sm:$0xff] %v10859_v43  ;;  %v1572_v5 = vcombine.high %v10859_v43, %v10859_v43  ;;  %v10867_v48 = vpop.f32.mrb[50].mxu0 }
 0x140   :  { %13348 = vst [vmem:[#allocation52_spill] sm:$0xff] %v10867_v48  ;;  %v10871_v39 = vmax.f32 %v1538_v49, %v1574_v52  ;;  %v1575_v25 = vcombine.high %v10867_v48, %v10867_v48  ;;  %v10877_v11 = vpop.f32.mrb[51].mxu0  ;;  %v1540_v49 = vcombine.high %v10657_v18, %v10657_v18 }
 0x141   :  { %13350 = vst [vmem:[#allocation54_spill] sm:$0xff] %v10877_v11  ;;  %v10881_v10 = vmax.f32 %v1536_v61, %v1572_v5  ;;  %v1573_v37 = vcombine.high %v10877_v11, %v10877_v11  ;;  %v1541_v11 = vcombine.high %v10667_v22, %v10667_v22 }
 0x142   :  { %13349 = vst [vmem:[#allocation53_spill] sm:$0xff] %v10871_v39  ;;  %v10887_v52 = vmax.f32 %v1539_v3, %v1575_v25  ;;  %v1543_v3 = vcombine.high %v10662_v20, %v10662_v20 }
 0x143   :  { %13351 = vst [vmem:[#allocation55_spill] sm:$0xff] %v10881_v10  ;;  %v10889_v43 = vmax.f32 %v1537_v13, %v1573_v37 }
 0x144   :  { %13352 = vst [vmem:[#allocation56_spill] sm:$0xff] %v10887_v52 }
 0x145   :  { %13353 = vst [vmem:[#allocation57_spill] sm:$0xff] %v10889_v43  ;;  %v10891_v12 = vpop.f32.mrb[52].mxu0 }
 0x146   :  { %13354 = vst [vmem:[#allocation58_spill] sm:$0xff] %v10891_v12  ;;  %v1578_v48 = vcombine.high %v10891_v12, %v10891_v12  ;;  %v10899_v5 = vpop.f32.mrb[53].mxu0  ;;  %v1546_v12 = vcombine.high %v10671_v23, %v10671_v23 }
 0x147   :  { %13355 = vst [vmem:[#allocation59_spill] sm:$0xff] %v10899_v5  ;;  %v1576_v13 = vcombine.high %v10899_v5, %v10899_v5  ;;  %v10907_v37 = vpop.f32.mrb[54].mxu0 }
 0x148   :  { %13356 = vst [vmem:[#allocation60_spill] sm:$0xff] %v10907_v37  ;;  %v10911_v43 = vmax.f32 %v1542_v6, %v1578_v48  ;;  %v1579_v61 = vcombine.high %v10907_v37, %v10907_v37  ;;  %v10917_v17 = vpop.f32.mrb[55].mxu0  ;;  %v1544_v6 = vcombine.high %v10673_v24, %v10673_v24 }
 0x149   :  { %13358 = vst [vmem:[#allocation62_spill] sm:$0xff] %v10917_v17  ;;  %v10921_v16 = vmax.f32 %v1540_v49, %v1576_v13  ;;  %v1577_v25 = vcombine.high %v10917_v17, %v10917_v17  ;;  %v1545_v17 = vcombine.high %v10683_v28, %v10683_v28 }
 0x14a   :  { %13357 = vst [vmem:[#allocation61_spill] sm:$0xff] %v10911_v43  ;;  %v10927_v48 = vmax.f32 %v1543_v3, %v1579_v61  ;;  %v1547_v3 = vcombine.high %v10678_v26, %v10678_v26 }
 0x14b   :  { %13359 = vst [vmem:[#allocation63_spill] sm:$0xff] %v10921_v16  ;;  %v10929_v5 = vmax.f32 %v1541_v11, %v1577_v25 }
 0x14c   :  { %13360 = vst [vmem:[#allocation64_spill] sm:$0xff] %v10927_v48 }
 0x14d   :  { %13361 = vst [vmem:[#allocation65_spill] sm:$0xff] %v10929_v5  ;;  %v10931_v18 = vpop.f32.mrb[56].mxu0 }
 0x14e   :  { %13362 = vst [vmem:[#allocation66_spill] sm:$0xff] %v10931_v18  ;;  %v1582_v37 = vcombine.high %v10931_v18, %v10931_v18  ;;  %v10939_v13 = vpop.f32.mrb[57].mxu0  ;;  %v10200_v18 = vld [vmem:[%s13129_s3 + $0x60] sm:$0xff]  }
 0x14f   :  { %13363 = vst [vmem:[#allocation67_spill] sm:$0xff] %v10939_v13  ;;  %v1580_v11 = vcombine.high %v10939_v13, %v10939_v13  ;;  %v10947_v25 = vpop.f32.mrb[58].mxu0  ;;  %9222 = vmatprep.subr.bf16.mxu1 %v10200_v18 }
 0x150   :  { %13364 = vst [vmem:[#allocation68_spill] sm:$0xff] %v10947_v25  ;;  %v10951_v5 = vmax.f32 %v1546_v12, %v1582_v37  ;;  %v1583_v49 = vcombine.high %v10947_v25, %v10947_v25  ;;  %v10957_v23 = vpop.f32.mrb[59].mxu0  ;;  %v10199_v37 = vld [vmem:[%s13129_s3 + $0x10] sm:$0xff]   ;;  %9223 = vmatpush3.bf16.msra.mxu1 %v10200_v18 }
 0x151   :  { %13366 = vst [vmem:[#allocation70_spill] sm:$0xff] %v10957_v23  ;;  %v10961_v22 = vmax.f32 %v1544_v6, %v1580_v11  ;;  %v1581_v61 = vcombine.high %v10957_v23, %v10957_v23  ;;  %9102 = vmatprep.subr.bf16.mxu0 %v10199_v37  ;;  %v1550_v11 = vcombine.high %v10687_v29, %v10687_v29 }
 0x152   :  { %13365 = vst [vmem:[#allocation69_spill] sm:$0xff] %v10951_v5  ;;  %v10973_v25 = vmax.f32 %v1547_v3, %v1583_v49  ;;  %9103 = vmatpush3.bf16.msra.mxu0 %v10199_v37  ;;  %v1551_v3 = vcombine.high %v10694_v32, %v10694_v32 }
 0x153   :  { %13367 = vst [vmem:[#allocation71_spill] sm:$0xff] %v10961_v22  ;;  %v10975_v26 = vmax.f32 %v1545_v17, %v1581_v61  ;;  %v1548_v17 = vcombine.high %v10689_v30, %v10689_v30  ;;  %v11160_v22 = vld [vmem:[%s13129_s3] sm:$0xff]  }
 0x154   :  { %13368 = vst [vmem:[#allocation72_spill] sm:$0xff] %v10973_v25  ;;  %13396 = vst [vmem:[#allocation100_spill] sm:$0xff] %v11160_v22 }
 0x155   :  { %13369 = vst [vmem:[#allocation73_spill] sm:$0xff] %v10975_v26  ;;  %v10977_v6 = vpop.f32.mrb[60].mxu0  ;;  %v1549_v26 = vcombine.high %v10699_v34, %v10699_v34 }
 0x156   :  { %13370 = vst [vmem:[#allocation74_spill] sm:$0xff] %v10977_v6  ;;  %v1586_v12 = vcombine.high %v10977_v6, %v10977_v6  ;;  %v10985_v28 = vpop.f32.mrb[61].mxu0  ;;  %v10202_v6 = vld [vmem:[%s13129_s3 + $0x68] sm:$0xff]  }
 0x157   :  { %13371 = vst [vmem:[#allocation75_spill] sm:$0xff] %v10985_v28  ;;  %v1584_v49 = vcombine.high %v10985_v28, %v10985_v28  ;;  %v10993_v61 = vpop.f32.mrb[62].mxu0  ;;  %9224 = vmatprep.subr.bf16.mxu1 %v10202_v6 }
 0x158   :  { %13372 = vst [vmem:[#allocation76_spill] sm:$0xff] %v10993_v61  ;;  %v10997_v37 = vmax.f32 %v1550_v11, %v1586_v12  ;;  %v1587_v23 = vcombine.high %v10993_v61, %v10993_v61  ;;  %v11003_v29 = vpop.f32.mrb[63].mxu0  ;;  %v10201_v11 = vld [vmem:[%s13129_s3 + $0x18] sm:$0xff]   ;;  %9225 = vmatpush3.bf16.msra.mxu1 %v10202_v6 }
 0x159   :  { %13374 = vst [vmem:[#allocation78_spill] sm:$0xff] %v11003_v29  ;;  %v11007_v25 = vmax.f32 %v1548_v17, %v1584_v49  ;;  %v1585_v18 = vcombine.high %v11003_v29, %v11003_v29  ;;  %9104 = vmatprep.subr.bf16.mxu0 %v10201_v11  ;;  %v1554_v49 = vcombine.high %v10703_v35, %v10703_v35 }
 0x15a   :  { %13373 = vst [vmem:[#allocation77_spill] sm:$0xff] %v10997_v37  ;;  %v11019_v61 = vmax.f32 %v1551_v3, %v1587_v23  ;;  %9105 = vmatpush3.bf16.msra.mxu0 %v10201_v11  ;;  %v1552_v23 = vcombine.high %v10705_v36, %v10705_v36  ;;  %v1555_v3 = vcombine.high %v10710_v38, %v10710_v38 }
 0x15b   :  { %13375 = vst [vmem:[#allocation79_spill] sm:$0xff] %v11007_v25  ;;  %v11021_v32 = vmax.f32 %v1549_v26, %v1585_v18  ;;  %9122 = vmatprep.subr.bf16.mxu0 %v11160_v22  ;;  %v11182_v22 = vld [vmem:[%s13128_s2] ss:$0 sm:$0xff] }
 0x15c   :  { %13376 = vst [vmem:[#allocation80_spill] sm:$0xff] %v11019_v61  ;;  %v11188_v10 = vcombine.high %v11182_v22, %v11182_v22 }
 0x15d   :  { %13377 = vst [vmem:[#allocation81_spill] sm:$0xff] %v11021_v32  ;;  %v11023_v17 = vpop.f32.mrb[64].mxu0  ;;  %v1553_v32 = vcombine.high %v10715_v40, %v10715_v40 }
 0x15e   :  { %13378 = vst [vmem:[#allocation82_spill] sm:$0xff] %v11023_v17  ;;  %v1590_v12 = vcombine.high %v11023_v17, %v11023_v17  ;;  %v11031_v34 = vpop.f32.mrb[65].mxu0  ;;  %v1558_v17 = vcombine.high %v10719_v41, %v10719_v41 }
 0x15f   :  { %13379 = vst [vmem:[#allocation83_spill] sm:$0xff] %v11031_v34  ;;  %v1588_v26 = vcombine.high %v11031_v34, %v11031_v34  ;;  %v11039_v18 = vpop.f32.mrb[66].mxu0 }
 0x160   :  { %13380 = vst [vmem:[#allocation84_spill] sm:$0xff] %v11039_v18  ;;  %v11043_v11 = vmax.f32 %v1554_v49, %v1590_v12  ;;  %v1591_v29 = vcombine.high %v11039_v18, %v11039_v18  ;;  %v11049_v35 = vpop.f32.mrb[67].mxu0  ;;  %v1556_v12 = vcombine.high %v10721_v42, %v10721_v42 }
 0x161   :  { %13382 = vst [vmem:[#allocation86_spill] sm:$0xff] %v11049_v35  ;;  %v11053_v61 = vmax.f32 %v1552_v23, %v1588_v26  ;;  %v1589_v6 = vcombine.high %v11049_v35, %v11049_v35  ;;  %v1557_v35 = vcombine.high %v10728_v45, %v10728_v45 }
 0x162   :  { %13381 = vst [vmem:[#allocation85_spill] sm:$0xff] %v11043_v11  ;;  %v11059_v49 = vmax.f32 %v1555_v3, %v1591_v29  ;;  %v1559_v3 = vcombine.high %v10726_v44, %v10726_v44 }
 0x163   :  { %13383 = vst [vmem:[#allocation87_spill] sm:$0xff] %v11053_v61  ;;  %v11061_v34 = vmax.f32 %v1553_v32, %v1589_v6 }
 0x164   :  { %13384 = vst [vmem:[#allocation88_spill] sm:$0xff] %v11059_v49 }
 0x165   :  { %13385 = vst [vmem:[#allocation89_spill] sm:$0xff] %v11061_v34  ;;  %v11063_v36 = vpop.f32.mrb[68].mxu0 }
 0x166   :  { %13386 = vst [vmem:[#allocation90_spill] sm:$0xff] %v11063_v36  ;;  %v1594_v18 = vcombine.high %v11063_v36, %v11063_v36  ;;  %v11071_v26 = vpop.f32.mrb[69].mxu0 }
 0x167   :  { %13387 = vst [vmem:[#allocation91_spill] sm:$0xff] %v11071_v26  ;;  %v1592_v29 = vcombine.high %v11071_v26, %v11071_v26  ;;  %v11079_v6 = vpop.f32.mrb[70].mxu0 }
 0x168   :  { %13388 = vst [vmem:[#allocation92_spill] sm:$0xff] %v11079_v6  ;;  %v11083_v34 = vmax.f32 %v1558_v17, %v1594_v18  ;;  %v1595_v23 = vcombine.high %v11079_v6, %v11079_v6  ;;  %v11089_v41 = vpop.f32.mrb[71].mxu0  ;;  %v11130_v17 = vld [vmem:[%s13129_s3 + $0x70] sm:$0xff]  }
 0x169   :  { %13390 = vst [vmem:[#allocation94_spill] sm:$0xff] %v11089_v41  ;;  %v11093_v40 = vmax.f32 %v1556_v12, %v1592_v29  ;;  %v1593_v32 = vcombine.high %v11089_v41, %v11089_v41  ;;  %13395 = vst [vmem:[#allocation99_spill] sm:$0xff] %v11130_v17  ;;  %9242 = vmatprep.subr.bf16.mxu1 %v11130_v17 }
 0x16a   :  { %13389 = vst [vmem:[#allocation93_spill] sm:$0xff] %v11083_v34  ;;  %v11099_v18 = vmax.f32 %v1559_v3, %v1595_v23 }
 0x16b   :  { %13391 = vst [vmem:[#allocation95_spill] sm:$0xff] %v11093_v40  ;;  %v11101_v34 = vmax.f32 %v1557_v35, %v1593_v32 }
 0x16c   :  { %13392 = vst [vmem:[#allocation96_spill] sm:$0xff] %v11099_v18 }
 0x16d   :  { %13393 = vst [vmem:[#allocation97_spill] sm:$0xff] %v11101_v34  ;;  %v11103_v26 = vpop.f32.mrb[72].mxu0 }
 0x16e   :  { %v11105_v36 = vpop.f32.mrb[73].mxu0  ;;  %v1598_v14 = vcombine.high %v11103_v26, %v11103_v26 }
 0x16f   :  { %v11107_v6 = vpop.f32.mrb[74].mxu0  ;;  %v1596_v39 = vcombine.high %v11105_v36, %v11105_v36 }
 0x170   :  { %v11109_v44 = vpop.f32.mrb[75].mxu0  ;;  %v1599_v55 = vcombine.high %v11107_v6, %v11107_v6 }
 0x171   :  { %v1597_v31 = vcombine.high %v11109_v44, %v11109_v44 }
 0x175   :  { %v11111_v12 = vpop.f32.mrb[76].mxu0 }
 0x176   :  { %v11113_v29 = vpop.f32.mrb[77].mxu0 }
 0x177   :  { %v11115_v40 = vpop.f32.mrb[78].mxu0 }
 0x178   :  { %v11117_v42 = vpop.f32.mrb[79].mxu0 }
 0x17d   :  { %v11119_v23 = vpop.f32.mrb[80].mxu0 }
 0x17e   :  { %v11121_v35 = vpop.f32.mrb[81].mxu0 }
 0x17f   :  { %v11123_v32 = vpop.f32.mrb[82].mxu0 }
 0x180   :  { %v11125_v3 = vpop.f32.mrb[83].mxu0 }
 0x181   :  { %13394 = vst [vmem:[#allocation98_spill] sm:$0xff] %v11125_v3 }
 0x185   :  { %v11132_v34 = vpop.f32.mrb[84].mxu0 }
 0x186   :  { %v11135_v41 = vpop.f32.mrb[85].mxu0 }
 0x187   :  { %v11137_v45 = vpop.f32.mrb[86].mxu0 }
 0x188   :  { %v11139_v18 = vpop.f32.mrb[87].mxu0 }
 0x18d   :  { %v11141_v49 = vpop.f32.mrb[88].mxu0 }
 0x18e   :  { %v11143_v38 = vpop.f32.mrb[89].mxu0 }
 0x18f   :  { %v11145_v61 = vpop.f32.mrb[90].mxu0 }
 0x190   :  { %v11147_v11 = vpop.f32.mrb[91].mxu0 }
 0x195   :  { %v11149_v25 = vpop.f32.mrb[92].mxu0 }
 0x196   :  { %v11151_v28 = vpop.f32.mrb[93].mxu0 }
 0x197   :  { %v11153_v30 = vpop.f32.mrb[94].mxu0 }
 0x198   :  { %v11155_v37 = vpop.f32.mrb[95].mxu0 }
 0x19d   :  { %v11163_v13 = vpop.f32.mrb[96].mxu0 }
 0x19e   :  { %13397 = vst [vmem:[#allocation101_spill] sm:$0xff] %v11163_v13  ;;  %v11165_v24 = vpop.f32.mrb[97].mxu0 }
 0x19f   :  { %v11167_v5 = vpop.f32.mrb[98].mxu0 }
 0x1a0   :  { %v11169_v48 = vpop.f32.mrb[99].mxu0 }
 0x1a1   :  { %13398 = vst [vmem:[#allocation102_spill] sm:$0xff] %v11169_v48 }
 0x1a5   :  { %v11171_v20 = vpop.f32.mrb[100].mxu0 }
 0x1a6   :  { %13399 = vst [vmem:[#allocation103_spill] sm:$0xff] %v11171_v20  ;;  %v11173_v16 = vpop.f32.mrb[101].mxu0 }
 0x1a7   :  { %13400 = vst [vmem:[#allocation104_spill] sm:$0xff] %v11173_v16  ;;  %v11175_v17 = vpop.f32.mrb[102].mxu0 }
 0x1a8   :  { %13401 = vst [vmem:[#allocation105_spill] sm:$0xff] %v11175_v17  ;;  %v11177_v43 = vpop.f32.mrb[103].mxu0 }
 0x1a9   :  { %13402 = vst [vmem:[#allocation106_spill] sm:$0xff] %v11177_v43 }
 0x1ad   :  { %v11184_v52 = vpop.f32.mrb[104].mxu0 }
 0x1ae   :  { %13403 = vst [vmem:[#allocation107_spill] sm:$0xff] %v11184_v52  ;;  %v11198_v8 = vpop.f32.mrb[105].mxu0 }
 0x1af   :  { %13404 = vst [vmem:[#allocation108_spill] sm:$0xff] %v11198_v8  ;;  %v11208_v47 = vpop.f32.mrb[106].mxu0 }
 0x1b0   :  { %13405 = vst [vmem:[#allocation109_spill] sm:$0xff] %v11208_v47  ;;  %v11218_v33 = vpop.f32.mrb[107].mxu0 }
 0x1b5   :  { %v9068_v13 = vpop.f32.mrb[108].mxu0 }
 0x1b6   :  { %v1634_v3 = vcombine.high %v9068_v13, %v9068_v13  ;;  %v1888_v2 = vmax.f32 %v11103_v26, %v9068_v13  ;;  %v1237_v20 = vpop.f32.mrb[109].mxu0 }
 0x1b7   :  { %v1632_v17 = vcombine.high %v1237_v20, %v1237_v20  ;;  %v1884_v59 = vmax.f32 %v11105_v36, %v1237_v20  ;;  %v9069_v43 = vpop.f32.mrb[110].mxu0 }
 0x1b8   :  { %v1889_v16 = vmax.f32 %v1598_v14, %v1634_v3  ;;  %v1960_v52 = vmax.f32 %v13406_v4, %v1888_v2  ;;  %v1635_v27 = vcombine.high %v9069_v43, %v9069_v43  ;;  %v1890_v8 = vmax.f32 %v11107_v6, %v9069_v43  ;;  %v1240_v13 = vpop.f32.mrb[111].mxu0 }
 0x1b9   :  { %v1885_v26 = vmax.f32 %v1596_v39, %v1632_v17  ;;  %v1956_v47 = vmax.f32 %v13407_v9, %v1884_v59  ;;  %v1633_v48 = vcombine.high %v1240_v13, %v1240_v13  ;;  %v1886_v53 = vmax.f32 %v11109_v44, %v1240_v13 }
 0x1ba   :  { %v1961_v20 = vmax.f32 %v10751_v56, %v1889_v16  ;;  %v2041_v14 = vadd.f32 %v11182_v22, %v1960_v52  ;;  %v1891_v36 = vmax.f32 %v1599_v55, %v1635_v27  ;;  %v1962_v2 = vmax.f32 %v13408_v57, %v1890_v8 }
 0x1bb   :  { %v1957_v4 = vmax.f32 %v10761_v7, %v1885_v26  ;;  %v2037_v46 = vadd.f32 %v11182_v22, %v1956_v47  ;;  %v1887_v39 = vmax.f32 %v1597_v31, %v1633_v48  ;;  %v1958_v50 = vmax.f32 %v13409_v58, %v1886_v53 }
 0x1bc   :  { %v2042_v44 = vadd.f32 %v11188_v10, %v1961_v20  ;;  %v2113_v59 = vmax.f32 %v2041_v14, 0.0  ;;  %v1963_v16 = vmax.f32 %v10767_v15, %v1891_v36  ;;  %v2043_v56 = vadd.f32 %v11182_v22, %v1962_v2 }
 0x1bd   :  { %v2038_v9 = vadd.f32 %v11188_v10, %v1957_v4  ;;  %v2109_v60 = vmax.f32 %v2037_v46, 0.0  ;;  %v1959_v8 = vmax.f32 %v10769_v19, %v1887_v39  ;;  %v2039_v54 = vadd.f32 %v11182_v22, %v1958_v50  ;;  %v9072_v7 = vpop.f32.mrb[112].mxu0  ;;  %v13413_v39 = vld [vmem:[#allocation36_spill] sm:$0xff] }
 0x1be   :  { %v2114_v31 = vmax.f32 %v2042_v44, 0.0  ;;  %v2044_v47 = vadd.f32 %v11188_v10, %v1963_v16  ;;  %v2115_v62 = vmax.f32 %v2043_v56, 0.0  ;;  %v1638_v53 = vcombine.high %v9072_v7, %v9072_v7  ;;  %v1253_v1 = vpop.f32.mrb[113].mxu0 }
 0x1bf   :  { %v2110_v27 = vmax.f32 %v2038_v9, 0.0  ;;  %v2040_v55 = vadd.f32 %v11188_v10, %v1959_v8  ;;  %v2111_v15 = vmax.f32 %v2039_v54, 0.0  ;;  %v1896_v43 = vmax.f32 %v11111_v12, %v9072_v7  ;;  %v9073_v52 = vpop.f32.mrb[114].mxu0  ;;  %v13417_v8 = vld [vmem:[#allocation6_spill] sm:$0xff]  ;;  %v13418_v54 = vld [vmem:[#allocation37_spill] sm:$0xff] }
 0x1c0   :  { %2281 = vst.msk [vmem:[#allocation2 + $0x18] sm:$0xf] %vm2278_vm1, %v2114_v31  ;;  %v2116_v48 = vmax.f32 %v2044_v47, 0.0  ;;  %v13410_v19 = vcombine.high %v11111_v12, %v11111_v12  ;;  %v1636_v17 = vcombine.high %v1253_v1, %v1253_v1  ;;  %v1892_v3 = vmax.f32 %v11113_v29, %v1253_v1  ;;  %v1256_v13 = vpop.f32.mrb[115].mxu0  ;;  %v13420_v47 = vld [vmem:[#allocation40_spill] sm:$0xff] }
 0x1c1   :  { %v2229_v26 = vcombine.low %v2109_v60, %v2110_v27  ;;  %v2112_v20 = vmax.f32 %v2040_v55, 0.0  ;;  %2279 = vst.msk [vmem:[#allocation2 + $0x8] sm:$0xf] %vm2278_vm1, %v2111_v15  ;;  %v13411_v14 = vmax.f32 %v10607_v63, %v10771_v21  ;;  %v1639_v57 = vcombine.high %v9073_v52, %v9073_v52 }
 0x1c2   :  { %v1897_v6 = vmax.f32 %v13410_v19, %v1638_v53  ;;  %v2231_v2 = vcombine.low %v2115_v62, %v2116_v48  ;;  %v13412_v12 = vcombine.high %v11113_v29, %v11113_v29  ;;  %v13414_v58 = vmax.f32 %v10609_v0, %v13413_v39  ;;  %v13416_v29 = vld [vmem:[#allocation39_spill] sm:$0xff] }
 0x1c3   :  { %v1968_v36 = vmax.f32 %v13411_v14, %v1896_v43  ;;  %2277 = vst.msk [vmem:[#allocation2] sm:$0xff] %vm554_vm0, %v2229_v26  ;;  %v2230_v44 = vcombine.low %v2112_v20, %v2113_v59  ;;  %v1898_v63 = vmax.f32 %v11115_v40, %v9073_v52  ;;  %v13415_v21 = vcombine.high %v11115_v40, %v11115_v40 }
 0x1c4   :  { %v1969_v4 = vmax.f32 %v10791_v51, %v1897_v6  ;;  %v1893_v46 = vmax.f32 %v13412_v12, %v1636_v17  ;;  %v1964_v50 = vmax.f32 %v13414_v58, %v1892_v3  ;;  %2282 = vst.msk [vmem:[#allocation2 + $0x20] sm:$0xff] %vm554_vm0, %v2231_v2  ;;  %v1637_v60 = vcombine.high %v1256_v13, %v1256_v13  ;;  %v13422_v6 = vld [vmem:[#allocation7_spill] sm:$0xff]  ;;  %v13423_v17 = vld [vmem:[#allocation38_spill] sm:$0xff] }
 0x1c5   :  { %v2049_v16 = vadd.f32 %v11182_v22, %v1968_v36  ;;  %v1899_v56 = vmax.f32 %v13415_v21, %v1639_v57  ;;  %2280 = vst.msk [vmem:[#allocation2 + $0x10] sm:$0xff] %vm554_vm0, %v2230_v44  ;;  %v13419_v7 = vmax.f32 %v13417_v8, %v13418_v54  ;;  %v1894_v40 = vmax.f32 %v11117_v42, %v1256_v13  ;;  %v9076_v53 = vpop.f32.mrb[116].mxu0  ;;  %v13425_v57 = vld [vmem:[#allocation41_spill] sm:$0xff] }
 0x1c6   :  { %v2050_v51 = vadd.f32 %v11188_v10, %v1969_v4  ;;  %v1965_v9 = vmax.f32 %v13416_v29, %v1893_v46  ;;  %v2045_v0 = vadd.f32 %v11182_v22, %v1964_v50  ;;  %v13421_v15 = vcombine.high %v11117_v42, %v11117_v42  ;;  %v1269_v52 = vpop.f32.mrb[117].mxu0 }
 0x1c7   :  { %v2121_v59 = vmax.f32 %v2049_v16, 0.0  ;;  %v1970_v31 = vmax.f32 %v13419_v7, %v1898_v63  ;;  %v1971_v62 = vmax.f32 %v13420_v47, %v1899_v56  ;;  %v13424_v3 = vmax.f32 %v13422_v6, %v13423_v17  ;;  %v9077_v13 = vpop.f32.mrb[118].mxu0  ;;  %v13427_v16 = vld [vmem:[#allocation8_spill] sm:$0xff]  ;;  %v13428_v63 = vld [vmem:[#allocation42_spill] sm:$0xff]  ;;  %v13432_v47 = vld [vmem:[#allocation9_spill] sm:$0xff] }
 0x1c8   :  { %v2122_v1 = vmax.f32 %v2050_v51, 0.0  ;;  %v2046_v27 = vadd.f32 %v11188_v10, %v1965_v9  ;;  %v2117_v55 = vmax.f32 %v2045_v0, 0.0  ;;  %v1895_v43 = vmax.f32 %v13421_v15, %v1637_v60  ;;  %v1272_v4 = vpop.f32.mrb[119].mxu0  ;;  %v13430_v0 = vld [vmem:[#allocation45_spill] sm:$0xff]  ;;  %v13439_v17 = vld [vmem:[#allocation47_spill] sm:$0xff] }
 0x1c9   :  { %v2051_v48 = vadd.f32 %v11182_v22, %v1970_v31  ;;  %v2052_v19 = vadd.f32 %v11188_v10, %v1971_v62  ;;  %v1966_v26 = vmax.f32 %v13424_v3, %v1894_v40  ;;  %v1642_v20 = vcombine.high %v9076_v53, %v9076_v53  ;;  %v13433_v62 = vld [vmem:[#allocation43_spill] sm:$0xff] }
 0x1ca   :  { %v2233_v14 = vcombine.low %v2121_v59, %v2122_v1  ;;  %v2118_v36 = vmax.f32 %v2046_v27, 0.0  ;;  %2283 = vst.msk [vmem:[#allocation2 + $0x28] sm:$0xf] %vm2278_vm1, %v2117_v55  ;;  %v1967_v2 = vmax.f32 %v13425_v57, %v1895_v43  ;;  %v1904_v42 = vmax.f32 %v11119_v23, %v9076_v53  ;;  %v13436_v43 = vld [vmem:[#allocation10_spill] sm:$0xff] }
 0x1cb   :  { %v2123_v12 = vmax.f32 %v2051_v48, 0.0  ;;  %v2124_v46 = vmax.f32 %v2052_v19, 0.0  ;;  %v2047_v39 = vadd.f32 %v11182_v22, %v1966_v26  ;;  %v13426_v58 = vcombine.high %v11119_v23, %v11119_v23 }
 0x1cc   :  { %2286 = vst.msk [vmem:[#allocation2 + $0x40] sm:$0xff] %vm554_vm0, %v2233_v14  ;;  %v2048_v44 = vadd.f32 %v11188_v10, %v1967_v2  ;;  %v13429_v21 = vmax.f32 %v13427_v16, %v13428_v63  ;;  %v1640_v51 = vcombine.high %v1269_v52, %v1269_v52  ;;  %v1900_v29 = vmax.f32 %v11121_v35, %v1269_v52  ;;  %v13437_v52 = vld [vmem:[#allocation44_spill] sm:$0xff]  ;;  %v13441_v2 = vld [vmem:[#allocation98_spill] sm:$0xff] }
 0x1cd   :  { %v1905_v50 = vmax.f32 %v13426_v58, %v1642_v20  ;;  %2287 = vst.msk [vmem:[#allocation2 + $0x48] sm:$0xf] %vm2278_vm1, %v2123_v12  ;;  %v2119_v9 = vmax.f32 %v2047_v39, 0.0  ;;  %v1643_v59 = vcombine.high %v9077_v13, %v9077_v13  ;;  %v1906_v23 = vmax.f32 %v11123_v32, %v9077_v13  ;;  %v9080_v6 = vpop.f32.mrb[120].mxu0 }
 0x1ce   :  { %v1976_v56 = vmax.f32 %v13429_v21, %v1904_v42  ;;  %v2120_v8 = vmax.f32 %v2048_v44, 0.0  ;;  %v13431_v7 = vcombine.high %v11121_v35, %v11121_v35  ;;  %v13434_v40 = vmax.f32 %v13432_v47, %v13433_v62  ;;  %v1285_v13 = vpop.f32.mrb[121].mxu0 }
 0x1cf   :  { %v1977_v60 = vmax.f32 %v13430_v0, %v1905_v50  ;;  %v2232_v1 = vcombine.low %v2118_v36, %v2119_v9  ;;  %v13435_v55 = vcombine.high %v11123_v32, %v11123_v32  ;;  %v13438_v48 = vmax.f32 %v13436_v43, %v13437_v52  ;;  %v13440_v36 = vld [vmem:[#allocation48_spill] sm:$0xff]  ;;  %v9081_v12 = vpop.f32.mrb[122].mxu0 }
 0x1d0   :  { %v2057_v54 = vadd.f32 %v11182_v22, %v1976_v56  ;;  %v1901_v31 = vmax.f32 %v13431_v7, %v1640_v51  ;;  %v1972_v53 = vmax.f32 %v13434_v40, %v1900_v29  ;;  %2285 = vst.msk [vmem:[#allocation2 + $0x38] sm:$0xf] %vm2278_vm1, %v2120_v8  ;;  %v1641_v20 = vcombine.high %v1272_v4, %v1272_v4  ;;  %v1288_v63 = vpop.f32.mrb[123].mxu0  ;;  %v13443_v51 = vld [vmem:[#allocation11_spill] sm:$0xff]  ;;  %v13444_v29 = vld [vmem:[#allocation46_spill] sm:$0xff]  ;;  %v13448_v40 = vld [vmem:[#allocation12_spill] sm:$0xff] }
 0x1d1   :  { %v2058_v27 = vadd.f32 %v11188_v10, %v1977_v60  ;;  %v1907_v15 = vmax.f32 %v13435_v55, %v1643_v59  ;;  %v1978_v19 = vmax.f32 %v13438_v48, %v1906_v23  ;;  %2284 = vst.msk [vmem:[#allocation2 + $0x30] sm:$0xff] %vm554_vm0, %v2232_v1  ;;  %v1902_v42 = vmax.f32 %v13441_v2, %v1272_v4  ;;  %v13446_v23 = vld [vmem:[#allocation49_spill] sm:$0xff]  ;;  %v2355_v52 = vld [vmem:[#allocation2 + $0x11] sm:$0xff] }
 0x1d2   :  { %v2129_v35 = vmax.f32 %v2057_v54, 0.0  ;;  %v1973_v3 = vmax.f32 %v13439_v17, %v1901_v31  ;;  %v2053_v26 = vadd.f32 %v11182_v22, %v1972_v53  ;;  %v13442_v50 = vcombine.high %v13441_v2, %v13441_v2  ;;  %v13449_v53 = vld [vmem:[#allocation50_spill] sm:$0xff]  ;;  %v13451_v55 = vld [vmem:[#allocation53_spill] sm:$0xff] }
 0x1d3   :  { %v2130_v14 = vmax.f32 %v2058_v27, 0.0  ;;  %v1979_v32 = vmax.f32 %v13440_v36, %v1907_v15  ;;  %v2059_v57 = vadd.f32 %v11182_v22, %v1978_v19  ;;  %v1646_v16 = vcombine.high %v9080_v6, %v9080_v6  ;;  %v13454_v36 = vld [vmem:[#allocation51_spill] sm:$0xff]  ;;  %v2354_v2 = vld [vmem:[#allocation2 + $0x1] sm:$0xff] }
 0x1d4   :  { %2291 = vst.msk [vmem:[#allocation2 + $0x68] sm:$0xf] %vm2278_vm1, %v2129_v35  ;;  %v2054_v39 = vadd.f32 %v11188_v10, %v1973_v3  ;;  %v2125_v58 = vmax.f32 %v2053_v26, 0.0  ;;  %v1903_v44 = vmax.f32 %v13442_v50, %v1641_v20  ;;  %v13445_v9 = vmax.f32 %v13443_v51, %v13444_v29  ;;  %v13457_v50 = vld [vmem:[#allocation14_spill] sm:$0xff] }
 0x1d5   :  { %v2060_v21 = vadd.f32 %v11188_v10, %v1979_v32  ;;  %v2131_v56 = vmax.f32 %v2059_v57, 0.0  ;;  %v1912_v4 = vmax.f32 %v11132_v34, %v9080_v6  ;;  %v13447_v54 = vcombine.high %v11132_v34, %v11132_v34  ;;  %v9084_v17 = vpop.f32.mrb[124].mxu0 }
 0x1d6   :  { %v1974_v0 = vmax.f32 %v13445_v9, %v1902_v42  ;;  %v2126_v60 = vmax.f32 %v2054_v39, 0.0  ;;  %v2234_v59 = vcombine.low %v2124_v46, %v2125_v58  ;;  %v1975_v8 = vmax.f32 %v13446_v23, %v1903_v44  ;;  %v11411_v42 = vpop.f32.mrb[125].mxu0  ;;  %v13458_v44 = vld [vmem:[#allocation52_spill] sm:$0xff] }
 0x1d7   :  { %v1913_v7 = vmax.f32 %v13447_v54, %v1646_v16  ;;  %v2132_v31 = vmax.f32 %v2060_v21, 0.0  ;;  %v2236_v47 = vcombine.low %v2130_v14, %v2131_v56  ;;  %v13450_v1 = vmax.f32 %v13448_v40, %v13449_v53  ;;  %v13453_v14 = vld [vmem:[#allocation13_spill] sm:$0xff]  ;;  %v11420_v51 = vpop.f32.mrb[126].mxu0  ;;  %v13461_v23 = vld [vmem:[#allocation56_spill] sm:$0xff] }
 0x1d8   :  { %v2055_v62 = vadd.f32 %v11182_v22, %v1974_v0  ;;  %2288 = vst.msk [vmem:[#allocation2 + $0x50] sm:$0xff] %vm554_vm0, %v2234_v59  ;;  %v2056_v46 = vadd.f32 %v11188_v10, %v1975_v8  ;;  %v1644_v43 = vcombine.high %v1285_v13, %v1285_v13  ;;  %v1908_v34 = vmax.f32 %v11135_v41, %v1285_v13  ;;  %v13460_v0 = vld [vmem:[#allocation55_spill] sm:$0xff]  ;;  %v11424_v59 = vpop.f32.mrb[127].mxu0 }
 0x1d9   :  { %v1984_v27 = vmax.f32 %v13450_v1, %v1912_v4  ;;  %2289 = vst.msk [vmem:[#allocation2 + $0x58] sm:$0xf] %vm2278_vm1, %v2126_v60  ;;  %v1985_v15 = vmax.f32 %v13451_v55, %v1913_v7  ;;  %2293 = vst.msk [vmem:[#allocation2 + $0x78] sm:$0xf] %vm2278_vm1, %v2132_v31  ;;  %v1647_v6 = vcombine.high %v9081_v12, %v9081_v12  ;;  %v2357_v31 = vld [vmem:[#allocation2 + $0x31] sm:$0xff]  ;;  %v11433_v1 = vld [vmem:[#allocation2 + $0x41] sm:$0xff] }
 0x1da   :  { %2292 = vst.msk [vmem:[#allocation2 + $0x70] sm:$0xff] %vm554_vm0, %v2236_v47  ;;  %v2127_v48 = vmax.f32 %v2055_v62, 0.0  ;;  %v1914_v35 = vmax.f32 %v11137_v45, %v9081_v12  ;;  %v2128_v3 = vmax.f32 %v2056_v46, 0.0  ;;  %v13452_v20 = vcombine.high %v11135_v41, %v11135_v41  ;;  %v3363_v41 = vld [vmem:[#allocation2 + $0x21] sm:$0xff] }
 0x1db   :  { %v11401_v19 = vadd.f32 %v11182_v22, %v1984_v27  ;;  %v2066_v26 = vadd.f32 %v11188_v10, %v1985_v15  ;;  %v13455_v32 = vmax.f32 %v13453_v14, %v13454_v36  ;;  %v13456_v12 = vcombine.high %v11137_v45, %v11137_v45 }
 0x1dc   :  { %v1909_v13 = vmax.f32 %v13452_v20, %v1644_v43  ;;  %v13459_v16 = vmax.f32 %v13457_v50, %v13458_v44  ;;  %v2370_v56 = vpack.c.bf16 %v2355_v52, %v2354_v2  ;;  %v2235_v29 = vcombine.low %v2127_v48, %v2128_v3  ;;  %v13464_v43 = vld [vmem:[#allocation54_spill] sm:$0xff]  ;;  %v13468_v2 = vld [vmem:[#allocation16_spill] sm:$0xff]  ;;  %v13471_v44 = vld [vmem:[#allocation61_spill] sm:$0xff] }
 0x1dd   :  { %v1980_v57 = vmax.f32 %v13455_v32, %v1908_v34  ;;  %v2137_v39 = vmax.f32 %v11401_v19, 0.0  ;;  %v1915_v58 = vmax.f32 %v13456_v12, %v1647_v6  ;;  %v2138_v9 = vmax.f32 %v2066_v26, 0.0  ;;  %v11450_v32 = vpop.f32.mrb[128].mxu0  ;;  %v13469_v12 = vld [vmem:[#allocation58_spill] sm:$0xff] }
 0x1de   :  { %v1986_v21 = vmax.f32 %v13459_v16, %v1914_v35  ;;  %v1981_v4 = vmax.f32 %v13460_v0, %v1909_v13  ;;  %9106 = vmatprep.mubr.msk.bf16.mxu0 %vm554_vm0, %v2370_v56  ;;  %v1645_v54 = vcombine.high %v1288_v63, %v1288_v63  ;;  %v1910_v7 = vmax.f32 %v11139_v18, %v1288_v63  ;;  %v13463_v63 = vld [vmem:[#allocation15_spill] sm:$0xff]  ;;  %v13467_v13 = vld [vmem:[#allocation57_spill] sm:$0xff]  ;;  %v11465_v56 = vpop.f32.mrb[129].mxu0 }
 0x1df   :  { %v2061_v60 = vadd.f32 %v11182_v22, %v1980_v57  ;;  %v1987_v8 = vmax.f32 %v13461_v23, %v1915_v58  ;;  %2290 = vst.msk [vmem:[#allocation2 + $0x60] sm:$0xff] %vm554_vm0, %v2235_v29  ;;  %v3378_v40 = vpack.c.bf16 %v3363_v41, %v2355_v52  ;;  %v1650_v53 = vcombine.high %v9084_v17, %v9084_v17  ;;  %v10204_v57 = vld [vmem:[%s13129_s3 + $0x78] sm:$0xff]  }
 0x1e0   :  { %v2067_v45 = vadd.f32 %v11182_v22, %v1986_v21  ;;  %2297 = vst.msk [vmem:[#allocation2 + $0x98] sm:$0xf] %vm2278_vm1, %v2138_v9  ;;  %v2062_v47 = vadd.f32 %v11188_v10, %v1981_v4  ;;  %v13462_v55 = vcombine.high %v11139_v18, %v11139_v18  ;;  %v13465_v34 = vmax.f32 %v13463_v63, %v13464_v43  ;;  %v11471_v4 = vpop.f32.mrb[130].mxu0 }
 0x1e1   :  { %v2133_v62 = vmax.f32 %v2061_v60, 0.0  ;;  %v2068_v27 = vadd.f32 %v11188_v10, %v1987_v8  ;;  %9226 = vmatprep.mubr.msk.bf16.mxu1 %vm554_vm0, %v3378_v40  ;;  %v1920_v35 = vmax.f32 %v11141_v49, %v9084_v17  ;;  %v13466_v52 = vcombine.high %v11141_v49, %v11141_v49  ;;  %v10206_v17 = vld [vmem:[%s13129_s3 + $0x8] sm:$0xff]   ;;  %v13472_v60 = vld [vmem:[#allocation100_spill] sm:$0xff] }
 0x1e2   :  { %v2139_v46 = vmax.f32 %v2067_v45, 0.0  ;;  %v1911_v15 = vmax.f32 %v13462_v55, %v1645_v54  ;;  %v1982_v48 = vmax.f32 %v13465_v34, %v1910_v7  ;;  %v2134_v6 = vmax.f32 %v2062_v47, 0.0  ;;  %v13476_v40 = vld [vmem:[#allocation59_spill] sm:$0xff]  ;;  %v11497_v55 = vld [vmem:[%s13129_s3 + $0x80] sm:$0xff]  }
 0x1e3   :  { %v1921_v3 = vmax.f32 %v13466_v52, %v1650_v53  ;;  %v2371_v26 = vpack.c.bf16 %v2357_v31, %v3363_v41  ;;  %v2140_v20 = vmax.f32 %v2068_v27, 0.0  ;;  %v3379_v36 = vpack.c.bf16 %v11433_v1, %v2357_v31  ;;  %v11482_v31 = vpop.f32.mrb[131].mxu0  ;;  %v13478_v34 = vld [vmem:[#allocation63_spill] sm:$0xff] }
 0x1e4   :  { %v1983_v14 = vmax.f32 %v13467_v13, %v1911_v15  ;;  %v2063_v18 = vadd.f32 %v11182_v22, %v1982_v48  ;;  %v2237_v49 = vcombine.low %v2133_v62, %v2134_v6  ;;  %v13470_v58 = vmax.f32 %v13468_v2, %v13469_v12  ;;  %v13475_v62 = vld [vmem:[#allocation17_spill] sm:$0xff] }
 0x1e5   :  { %v1993_v16 = vmax.f32 %v13471_v44, %v1921_v3  ;;  %9107 = vmatmul.mubr.msk.bf16.vlgmr.msra.gmra.mrb[144].mxu0 %vm554_vm0, %v2371_v26  ;;  %v1648_v21 = vcombine.high %v11411_v42, %v11411_v42  ;;  %v2239_v41 = vcombine.low %v2139_v46, %v2140_v20  ;;  %9227 = vmatmul.mubr.msk.bf16.vlgmr.msra.gmra.mrb[0].mxu1 %vm554_vm0, %v3379_v36  ;;  %v11502_v15 = vld [vmem:[%s13129_s3 + $0x20] sm:$0xff]   ;;  %v13481_v20 = vld [vmem:[#allocation60_spill] sm:$0xff] }
 0x1e6   :  { %v1992_v50 = vmax.f32 %v13470_v58, %v1920_v35  ;;  %v2064_v29 = vadd.f32 %v11188_v10, %v1983_v14  ;;  %v2135_v9 = vmax.f32 %v2063_v18, 0.0  ;;  %v1916_v0 = vmax.f32 %v11143_v38, %v11411_v42  ;;  %9123 = vmatpush3.bf16.msra.mxu0 %v13472_v60  ;;  %2294 = vst.msk [vmem:[#allocation2 + $0x80] sm:$0xff] %vm554_vm0, %v2237_v49  ;;  %v13474_v42 = vld [vmem:[#allocation99_spill] sm:$0xff]  ;;  %v13480_v26 = vld [vmem:[#allocation18_spill] sm:$0xff] }
 0x1e7   :  { %v2074_v8 = vadd.f32 %v11188_v10, %v1993_v16  ;;  %v13473_v45 = vcombine.high %v11143_v38, %v11143_v38  ;;  %v1651_v7 = vcombine.high %v11420_v51, %v11420_v51  ;;  %9243 = vmatpush3.bf16.msra.mxu1 %v13474_v42  ;;  %2298 = vst.msk [vmem:[#allocation2 + $0xa0] sm:$0xff] %vm554_vm0, %v2239_v41  ;;  %v11508_v35 = vld [vmem:[#allocation2 + $0x51] sm:$0xff]  ;;  %v13486_v44 = vld [vmem:[#allocation62_spill] sm:$0xff]  ;;  %v13488_v41 = vld [vmem:[#allocation65_spill] sm:$0xff] }
 0x1e8   :  { %v2073_v23 = vadd.f32 %v11182_v22, %v1992_v50  ;;  %v2136_v47 = vmax.f32 %v2064_v29, 0.0  ;;  %2295 = vst.msk [vmem:[#allocation2 + $0x88] sm:$0xf] %vm2278_vm1, %v2135_v9  ;;  %v13477_v53 = vmax.f32 %v13475_v62, %v13476_v40  ;;  %v1922_v38 = vmax.f32 %v11145_v61, %v11420_v51  ;;  %9244 = vmatprep.subr.bf16.mxu1 %v10204_v57  ;;  %v13485_v50 = vld [vmem:[#allocation19_spill] sm:$0xff] }
 0x1e9   :  { %v1917_v54 = vmax.f32 %v13473_v45, %v1648_v21  ;;  %v1649_v46 = vcombine.high %v11424_v59, %v11424_v59  ;;  %9124 = vmatprep.subr.bf16.mxu0 %v10206_v17  ;;  %v2146_v43 = vmax.f32 %v2074_v8, 0.0  ;;  %v13479_v51 = vcombine.high %v11145_v61, %v11145_v61  ;;  %v13483_v61 = vld [vmem:[#allocation64_spill] sm:$0xff]  ;;  %v11530_v21 = vpop.f32.mrb[132].mxu0 }
 0x1ea   :  { %v1988_v27 = vmax.f32 %v13477_v53, %v1916_v0  ;;  %v2145_v63 = vmax.f32 %v2073_v23, 0.0  ;;  %v2238_v52 = vcombine.low %v2136_v47, %v2137_v39  ;;  %v13482_v13 = vmax.f32 %v13480_v26, %v13481_v20  ;;  %9125 = vmatpush3.bf16.msra.mxu0 %v10206_v17  ;;  %v11539_v0 = vpop.f32.mrb[133].mxu0  ;;  %v13490_v53 = vld [vmem:[#allocation20_spill] sm:$0xff] }
 0x1eb   :  { %v1989_v48 = vmax.f32 %v13478_v34, %v1917_v54  ;;  %v1923_v6 = vmax.f32 %v13479_v51, %v1651_v7  ;;  %v1918_v18 = vmax.f32 %v11147_v11, %v11424_v59  ;;  %v13484_v12 = vcombine.high %v11147_v11, %v11147_v11  ;;  %9245 = vmatpush3.bf16.msra.mxu1 %v10204_v57  ;;  %v11548_v45 = vpop.f32.mrb[134].mxu0  ;;  %v2360_v34 = vld [vmem:[#allocation2 + $0x61] sm:$0xff] }
 0x1ec   :  { %v2069_v3 = vadd.f32 %v11182_v22, %v1988_v27  ;;  %v1994_v14 = vmax.f32 %v13482_v13, %v1922_v38  ;;  %v2241_v36 = vcombine.low %v2145_v63, %v2146_v43  ;;  %2296 = vst.msk [vmem:[#allocation2 + $0x90] sm:$0xff] %vm554_vm0, %v2238_v52  ;;  %v13487_v16 = vmax.f32 %v13485_v50, %v13486_v44  ;;  %v11556_v40 = vpop.f32.mrb[135].mxu0  ;;  %v13491_v27 = vld [vmem:[#allocation66_spill] sm:$0xff]  ;;  %v13494_v51 = vld [vmem:[#allocation69_spill] sm:$0xff]  ;;  %v13496_v52 = vld [vmem:[#allocation67_spill] sm:$0xff] }
 0x1ed   :  { %v2070_v49 = vadd.f32 %v11188_v10, %v1989_v48  ;;  %v1995_v2 = vmax.f32 %v13483_v61, %v1923_v6  ;;  %v1919_v19 = vmax.f32 %v13484_v12, %v1649_v46  ;;  %v2372_v17 = vpack.c.bf16 %v11508_v35, %v11433_v1  ;;  %9262 = vmatprep.subr.bf16.mxu1 %v11497_v55  ;;  %v13495_v6 = vld [vmem:[#allocation21_spill] sm:$0xff]  ;;  %v2361_v61 = vld [vmem:[#allocation2 + $0x71] sm:$0xff] }
 0x1ee   :  { %v2141_v39 = vmax.f32 %v2069_v3, 0.0  ;;  %v2075_v58 = vadd.f32 %v11182_v22, %v1994_v14  ;;  %v1990_v59 = vmax.f32 %v13487_v16, %v1918_v18  ;;  %9142 = vmatprep.subr.bf16.mxu0 %v11502_v15  ;;  %2302 = vst.msk [vmem:[#allocation2 + $0xc0] sm:$0xff] %vm554_vm0, %v2241_v36  ;;  %v1654_v9 = vcombine.high %v11450_v32, %v11450_v32  ;;  %v13498_v18 = vld [vmem:[#allocation71_spill] sm:$0xff] }
 0x1ef   :  { %v2142_v11 = vmax.f32 %v2070_v49, 0.0  ;;  %v2076_v57 = vadd.f32 %v11188_v10, %v1995_v2  ;;  %v1991_v29 = vmax.f32 %v13488_v41, %v1919_v19  ;;  %9110 = vmatprep.mubr.msk.bf16.mxu0 %vm554_vm0, %v2372_v17  ;;  %v1928_v23 = vmax.f32 %v11149_v25, %v11450_v32  ;;  %v13500_v19 = vld [vmem:[#allocation22_spill] sm:$0xff] }
 0x1f0   :  { %2299 = vst.msk [vmem:[#allocation2 + $0xa8] sm:$0xf] %vm2278_vm1, %v2141_v39  ;;  %v2147_v1 = vmax.f32 %v2075_v58, 0.0  ;;  %v2071_v60 = vadd.f32 %v11182_v22, %v1990_v59  ;;  %v1652_v8 = vcombine.high %v11465_v56, %v11465_v56  ;;  %v13489_v42 = vcombine.high %v11149_v25, %v11149_v25  ;;  %v13501_v39 = vld [vmem:[#allocation68_spill] sm:$0xff] }
 0x1f1   :  { %v2148_v54 = vmax.f32 %v2076_v57, 0.0  ;;  %v2072_v7 = vadd.f32 %v11188_v10, %v1991_v29  ;;  %v1924_v62 = vmax.f32 %v11151_v28, %v11465_v56  ;;  %v13492_v38 = vmax.f32 %v13490_v53, %v13491_v27  ;;  %v13503_v59 = vld [vmem:[#allocation72_spill] sm:$0xff]  ;;  %v13505_v27 = vld [vmem:[#allocation101_spill] sm:$0xff] }
 0x1f2   :  { %v1929_v47 = vmax.f32 %v13489_v42, %v1654_v9  ;;  %2303 = vst.msk [vmem:[#allocation2 + $0xc8] sm:$0xf] %vm2278_vm1, %v2147_v1  ;;  %v2143_v32 = vmax.f32 %v2071_v60, 0.0  ;;  %v13493_v63 = vcombine.high %v11151_v28, %v11151_v28  ;;  %v1655_v25 = vcombine.high %v11471_v4, %v11471_v4  ;;  %v3369_v1 = vld [vmem:[#allocation2 + $0x81] sm:$0xff] }
 0x1f3   :  { %v2000_v46 = vmax.f32 %v13492_v38, %v1928_v23  ;;  %v2144_v48 = vmax.f32 %v2072_v7, 0.0  ;;  %v13497_v3 = vmax.f32 %v13495_v6, %v13496_v52  ;;  %v1930_v20 = vmax.f32 %v11153_v30, %v11471_v4  ;;  %v13512_v52 = vld [vmem:[#allocation74_spill] sm:$0xff] }
 0x1f4   :  { %v1925_v43 = vmax.f32 %v13493_v63, %v1652_v8  ;;  %v2001_v56 = vmax.f32 %v13494_v51, %v1929_v47  ;;  %v2240_v13 = vcombine.low %v2142_v11, %v2143_v32  ;;  %v13499_v36 = vcombine.high %v11153_v30, %v11153_v30  ;;  %v11588_v11 = vpop.f32.mrb[136].mxu0 }
 0x1f5   :  { %v1996_v26 = vmax.f32 %v13497_v3, %v1924_v62  ;;  %v2081_v14 = vadd.f32 %v11182_v22, %v2000_v46  ;;  %2301 = vst.msk [vmem:[#allocation2 + $0xb8] sm:$0xf] %vm2278_vm1, %v2144_v48  ;;  %v13502_v58 = vmax.f32 %v13500_v19, %v13501_v39  ;;  %v2373_v50 = vpack.c.bf16 %v2361_v61, %v2360_v34  ;;  %v11594_v60 = vpop.f32.mrb[137].mxu0 }
 0x1f6   :  { %v1997_v28 = vmax.f32 %v13498_v18, %v1925_v43  ;;  %v1931_v49 = vmax.f32 %v13499_v36, %v1655_v25  ;;  %v2082_v2 = vadd.f32 %v11188_v10, %v2001_v56  ;;  %2300 = vst.msk [vmem:[#allocation2 + $0xb0] sm:$0xff] %vm554_vm0, %v2240_v13  ;;  %v3380_v17 = vpack.c.bf16 %v2360_v34, %v11508_v35  ;;  %v11603_v42 = vpop.f32.mrb[138].mxu0  ;;  %v13507_v43 = vld [vmem:[#allocation70_spill] sm:$0xff]  ;;  %v13510_v56 = vld [vmem:[#allocation73_spill] sm:$0xff] }
 0x1f7   :  { %v2077_v12 = vadd.f32 %v11182_v22, %v1996_v26  ;;  %v2002_v4 = vmax.f32 %v13502_v58, %v1930_v20  ;;  %v2153_v44 = vmax.f32 %v2081_v14, 0.0  ;;  %9111 = vmatmul.mubr.msk.bf16.gmra.mrb[148].mxu0 %vm554_vm0, %v2373_v50  ;;  %v1653_v9 = vcombine.high %v11482_v31, %v11482_v31  ;;  %v11610_v46 = vpop.f32.mrb[139].mxu0  ;;  %v13514_v14 = vld [vmem:[#allocation77_spill] sm:$0xff] }
 0x1f8   :  { %v2078_v16 = vadd.f32 %v11188_v10, %v1997_v28  ;;  %v2003_v30 = vmax.f32 %v13503_v59, %v1931_v49  ;;  %v2154_v57 = vmax.f32 %v2082_v2, 0.0  ;;  %9230 = vmatprep.mubr.msk.bf16.mxu1 %vm554_vm0, %v3380_v17  ;;  %v1926_v35 = vmax.f32 %v11155_v37, %v11482_v31  ;;  %v13506_v31 = vld [vmem:[#allocation23_spill] sm:$0xff] }
 0x1f9   :  { %v2149_v41 = vmax.f32 %v2077_v12, 0.0  ;;  %v2083_v29 = vadd.f32 %v11182_v22, %v2002_v4  ;;  %2307 = vst.msk [vmem:[#allocation2 + $0xe8] sm:$0xf] %vm2278_vm1, %v2153_v44  ;;  %v1658_v7 = vcombine.high %v11530_v21, %v11530_v21  ;;  %v13504_v32 = vcombine.high %v11155_v37, %v11155_v37  ;;  %v13517_v4 = vld [vmem:[#allocation75_spill] sm:$0xff] }
 0x1fa   :  { %v2150_v23 = vmax.f32 %v2078_v16, 0.0  ;;  %v2084_v8 = vadd.f32 %v11188_v10, %v2003_v30  ;;  %v1936_v38 = vmax.f32 %v13505_v27, %v11530_v21  ;;  %v13508_v25 = vmax.f32 %v13506_v31, %v13507_v43  ;;  %v13511_v21 = vld [vmem:[#allocation24_spill] sm:$0xff]  ;;  %v11649_v30 = vpop.f32.mrb[140].mxu0 }
 0x1fb   :  { %v2242_v47 = vcombine.low %v2148_v54, %v2149_v41  ;;  %v2155_v62 = vmax.f32 %v2083_v29, 0.0  ;;  %v1927_v53 = vmax.f32 %v13504_v32, %v1653_v9  ;;  %v13509_v54 = vcombine.high %v13505_v27, %v13505_v27  ;;  %v13521_v29 = vld [vmem:[#allocation26_spill] sm:$0xff]  ;;  %v13522_v9 = vld [vmem:[#allocation76_spill] sm:$0xff] }
 0x1fc   :  { %2305 = vst.msk [vmem:[#allocation2 + $0xd8] sm:$0xf] %vm2278_vm1, %v2150_v23  ;;  %v2156_v63 = vmax.f32 %v2084_v8, 0.0  ;;  %v1998_v34 = vmax.f32 %v13508_v25, %v1926_v35  ;;  %v3381_v51 = vpack.c.bf16 %v3369_v1, %v2361_v61  ;;  %v13513_v3 = vmax.f32 %v13511_v21, %v13512_v52  ;;  %v11655_v23 = vpop.f32.mrb[141].mxu0  ;;  %v13530_v52 = vld [vmem:[#allocation103_spill] sm:$0xff] }
 0x1fd   :  { %v1937_v48 = vmax.f32 %v13509_v54, %v1658_v7  ;;  %2304 = vst.msk [vmem:[#allocation2 + $0xd0] sm:$0xff] %vm554_vm0, %v2242_v47  ;;  %v2244_v37 = vcombine.low %v2154_v57, %v2155_v62  ;;  %v1999_v6 = vmax.f32 %v13510_v56, %v1927_v53  ;;  %v1656_v20 = vcombine.high %v11539_v0, %v11539_v0  ;;  %v13524_v7 = vld [vmem:[#allocation80_spill] sm:$0xff]  ;;  %v11661_v62 = vpop.f32.mrb[142].mxu0  ;;  %v13527_v56 = vld [vmem:[#allocation27_spill] sm:$0xff] }
 0x1fe   :  { %v2008_v26 = vmax.f32 %v13513_v3, %v1936_v38  ;;  %2309 = vst.msk [vmem:[#allocation2 + $0xf8] sm:$0xf] %vm2278_vm1, %v2156_v63  ;;  %v2079_v13 = vadd.f32 %v11182_v22, %v1998_v34  ;;  %9231 = vmatmul.mubr.msk.bf16.gmra.mrb[4].mxu1 %vm554_vm0, %v3381_v51  ;;  %v1932_v28 = vmax.f32 %v11165_v24, %v11539_v0  ;;  %v13516_v0 = vld [vmem:[#allocation25_spill] sm:$0xff]  ;;  %v13525_v38 = vld [vmem:[#allocation102_spill] sm:$0xff]  ;;  %v11667_v31 = vpop.f32.mrb[143].mxu0 }
 0x1ff   :  { %v2009_v18 = vmax.f32 %v13514_v14, %v1937_v48  ;;  %v1659_v36 = vcombine.high %v11548_v45, %v11548_v45  ;;  %2308 = vst.msk [vmem:[#allocation2 + $0xf0] sm:$0xff] %vm554_vm0, %v2244_v37  ;;  %v2080_v49 = vadd.f32 %v11188_v10, %v1999_v6  ;;  %v13515_v2 = vcombine.high %v11165_v24, %v11165_v24  ;;  %v13520_v24 = vld [vmem:[#allocation79_spill] sm:$0xff] }
 0x200   :  { %v2089_v61 = vadd.f32 %v11182_v22, %v2008_v26  ;;  %v1938_v19 = vmax.f32 %v11167_v5, %v11548_v45  ;;  %v2151_v39 = vmax.f32 %v2079_v13, 0.0  ;;  %v13518_v50 = vmax.f32 %v13516_v0, %v13517_v4  ;;  %v13537_v4 = vld [vmem:[#allocation85_spill] sm:$0xff] }
 0x201   :  { %v1933_v12 = vmax.f32 %v13515_v2, %v1656_v20  ;;  %v2090_v58 = vadd.f32 %v11188_v10, %v2009_v18  ;;  %v13519_v16 = vcombine.high %v11167_v5, %v11167_v5  ;;  %v2152_v17 = vmax.f32 %v2080_v49, 0.0  ;;  %v13531_v20 = vld [vmem:[#allocation81_spill] sm:$0xff]  ;;  %v13534_v2 = vld [vmem:[#allocation82_spill] sm:$0xff] }
 0x202   :  { %v2004_v44 = vmax.f32 %v13518_v50, %v1932_v28  ;;  %v2161_v57 = vmax.f32 %v2089_v61, 0.0  ;;  %v13523_v45 = vmax.f32 %v13521_v29, %v13522_v9  ;;  %v1657_v5 = vcombine.high %v11556_v40, %v11556_v40  ;;  %v13533_v61 = vld [vmem:[#allocation28_spill] sm:$0xff] }
 0x203   :  { %v1939_v59 = vmax.f32 %v13519_v16, %v1659_v36  ;;  %v2005_v41 = vmax.f32 %v13520_v24, %v1933_v12  ;;  %v2162_v8 = vmax.f32 %v2090_v58, 0.0  ;;  %v2243_v32 = vcombine.low %v2151_v39, %v2152_v17  ;;  %v13536_v39 = vld [vmem:[#allocation104_spill] sm:$0xff]  ;;  %v13539_v24 = vld [vmem:[#allocation29_spill] sm:$0xff] }
 0x204   :  { %v2010_v1 = vmax.f32 %v13523_v45, %v1938_v19  ;;  %v2085_v35 = vadd.f32 %v11182_v22, %v2004_v44  ;;  %v1934_v63 = vmax.f32 %v13525_v38, %v11556_v40  ;;  %v13526_v34 = vcombine.high %v13525_v38, %v13525_v38  ;;  %v13528_v40 = vld [vmem:[#allocation78_spill] sm:$0xff] }
 0x205   :  { %v2011_v47 = vmax.f32 %v13524_v7, %v1939_v59  ;;  %v2086_v53 = vadd.f32 %v11188_v10, %v2005_v41  ;;  %2313 = vst.msk [vmem:[#allocation2 + $0x118] sm:$0xf] %vm2278_vm1, %v2162_v8  ;;  %v1662_v48 = vcombine.high %v11588_v11, %v11588_v11  ;;  %v13529_v6 = vmax.f32 %v13527_v56, %v13528_v40  ;;  %v13540_v41 = vld [vmem:[#allocation83_spill] sm:$0xff]  ;;  %v13543_v7 = vld [vmem:[#allocation105_spill] sm:$0xff]  ;;  %v13548_v56 = vld [vmem:[#allocation88_spill] sm:$0xff] }
 0x206   :  { %v2091_v27 = vadd.f32 %v11182_v22, %v2010_v1  ;;  %v2157_v43 = vmax.f32 %v2085_v35, 0.0  ;;  %v1935_v54 = vmax.f32 %v13526_v34, %v1657_v5  ;;  %2306 = vst.msk [vmem:[#allocation2 + $0xe0] sm:$0xff] %vm554_vm0, %v2243_v32  ;;  %v1944_v3 = vmax.f32 %v13530_v52, %v11588_v11  ;;  %v13542_v8 = vld [vmem:[#allocation87_spill] sm:$0xff] }
 0x207   :  { %v2092_v25 = vadd.f32 %v11188_v10, %v2011_v47  ;;  %v2158_v51 = vmax.f32 %v2086_v53, 0.0  ;;  %v2006_v21 = vmax.f32 %v13529_v6, %v1934_v63  ;;  %v13532_v14 = vcombine.high %v13530_v52, %v13530_v52  ;;  %v11718_v63 = vld [vmem:[#allocation2 + $0xd1] sm:$0xff]  ;;  %v13549_v6 = vld [vmem:[#allocation106_spill] sm:$0xff] }
 0x208   :  { %v2163_v37 = vmax.f32 %v2091_v27, 0.0  ;;  %v2007_v13 = vmax.f32 %v13531_v20, %v1935_v54  ;;  %v1660_v28 = vcombine.high %v11594_v60, %v11594_v60  ;;  %v13535_v12 = vmax.f32 %v13533_v61, %v13534_v2  ;;  %v13545_v54 = vld [vmem:[#allocation30_spill] sm:$0xff]  ;;  %v13554_v61 = vld [vmem:[#allocation89_spill] sm:$0xff] }
 0x209   :  { %v2164_v26 = vmax.f32 %v2092_v25, 0.0  ;;  %v1945_v18 = vmax.f32 %v13532_v14, %v1662_v48  ;;  %v2245_v36 = vcombine.low %v2157_v43, %v2158_v51  ;;  %v2087_v49 = vadd.f32 %v11182_v22, %v2006_v21 }
 0x20a   :  { %v2016_v19 = vmax.f32 %v13535_v12, %v1944_v3  ;;  %v1940_v11 = vmax.f32 %v13536_v39, %v11594_v60  ;;  %v2088_v0 = vadd.f32 %v11188_v10, %v2007_v13  ;;  %v13538_v44 = vcombine.high %v13536_v39, %v13536_v39  ;;  %v13555_v39 = vld [vmem:[#allocation107_spill] sm:$0xff] }
 0x20b   :  { %v2247_v58 = vcombine.low %v2163_v37, %v2164_v26  ;;  %v2017_v50 = vmax.f32 %v13537_v4, %v1945_v18  ;;  %2310 = vst.msk [vmem:[#allocation2 + $0x100] sm:$0xff] %vm554_vm0, %v2245_v36  ;;  %v2159_v59 = vmax.f32 %v2087_v49, 0.0  ;;  %v13541_v29 = vmax.f32 %v13539_v24, %v13540_v41  ;;  %v2362_v26 = vld [vmem:[#allocation2 + $0xc1] sm:$0xff]  ;;  %v13558_v24 = vld [vmem:[#allocation32_spill] sm:$0xff] }
 0x20c   :  { %v1941_v16 = vmax.f32 %v13538_v44, %v1660_v28  ;;  %v2097_v17 = vadd.f32 %v11182_v22, %v2016_v19  ;;  %v1663_v60 = vcombine.high %v11603_v42, %v11603_v42  ;;  %v2160_v45 = vmax.f32 %v2088_v0, 0.0  ;;  %v13551_v28 = vld [vmem:[#allocation31_spill] sm:$0xff]  ;;  %v13552_v36 = vld [vmem:[#allocation86_spill] sm:$0xff]  ;;  %v13556_v0 = vld [vmem:[#allocation108_spill] sm:$0xff] }
 0x20d   :  { %v2012_v9 = vmax.f32 %v13541_v29, %v1940_v11  ;;  %2314 = vst.msk [vmem:[#allocation2 + $0x120] sm:$0xff] %vm554_vm0, %v2247_v58  ;;  %v2098_v1 = vadd.f32 %v11188_v10, %v2017_v50  ;;  %v1946_v47 = vmax.f32 %v13543_v7, %v11603_v42  ;;  %v13544_v53 = vcombine.high %v13543_v7, %v13543_v7  ;;  %v13546_v42 = vld [vmem:[#allocation84_spill] sm:$0xff]  ;;  %v13559_v41 = vld [vmem:[#allocation90_spill] sm:$0xff] }
 0x20e   :  { %v2013_v35 = vmax.f32 %v13542_v8, %v1941_v16  ;;  %2311 = vst.msk [vmem:[#allocation2 + $0x108] sm:$0xf] %vm2278_vm1, %v2159_v59  ;;  %v2169_v5 = vmax.f32 %v2097_v17, 0.0  ;;  %v1661_v38 = vcombine.high %v11610_v46, %v11610_v46  ;;  %v2246_v43 = vcombine.low %v2160_v45, %v2161_v57  ;;  %v13563_v45 = vld [vmem:[#allocation91_spill] sm:$0xff]  ;;  %v2364_v7 = vld [vmem:[#allocation2 + $0xe1] sm:$0xff] }
 0x20f   :  { %v2093_v32 = vadd.f32 %v11182_v22, %v2012_v9  ;;  %v1947_v27 = vmax.f32 %v13544_v53, %v1663_v60  ;;  %v2170_v25 = vmax.f32 %v2098_v1, 0.0  ;;  %v13547_v48 = vmax.f32 %v13545_v54, %v13546_v42 }
 0x210   :  { %v2094_v34 = vadd.f32 %v11188_v10, %v2013_v35  ;;  %v1942_v21 = vmax.f32 %v13549_v6, %v11610_v46  ;;  %v13550_v52 = vcombine.high %v13549_v6, %v13549_v6  ;;  %2312 = vst.msk [vmem:[#allocation2 + $0x110] sm:$0xff] %vm554_vm0, %v2246_v43  ;;  %v2374_v14 = vpack.c.bf16 %v11718_v63, %v2362_v26  ;;  %v13570_v6 = vld [vmem:[#allocation92_spill] sm:$0xff] }
 0x211   :  { %v2018_v51 = vmax.f32 %v13547_v48, %v1946_v47  ;;  %v2165_v37 = vmax.f32 %v2093_v32, 0.0  ;;  %v2019_v40 = vmax.f32 %v13548_v56, %v1947_v27  ;;  %v2249_v57 = vcombine.low %v2169_v5, %v2170_v25  ;;  %v13565_v32 = vld [vmem:[#allocation93_spill] sm:$0xff]  ;;  %v13567_v25 = vld [vmem:[#allocation95_spill] sm:$0xff] }
 0x212   :  { %v1943_v3 = vmax.f32 %v13550_v52, %v1661_v38  ;;  %v2166_v20 = vmax.f32 %v2094_v34, 0.0  ;;  %v13553_v46 = vmax.f32 %v13551_v28, %v13552_v36  ;;  %v1666_v12 = vcombine.high %v11649_v30, %v11649_v30  ;;  %9114 = vmatprep.mubr.msk.bf16.mxu0 %vm554_vm0, %v2374_v14  ;;  %v13566_v27 = vld [vmem:[#allocation109_spill] sm:$0xff] }
 0x213   :  { %v2099_v13 = vadd.f32 %v11182_v22, %v2018_v51  ;;  %2315 = vst.msk [vmem:[#allocation2 + $0x128] sm:$0xf] %vm2278_vm1, %v2165_v37  ;;  %v2100_v18 = vadd.f32 %v11188_v10, %v2019_v40  ;;  %v1952_v11 = vmax.f32 %v13555_v39, %v11649_v30  ;;  %v1664_v58 = vcombine.high %v11655_v23, %v11655_v23  ;;  %v2365_v51 = vld [vmem:[#allocation2 + $0xf1] sm:$0xff]  ;;  %v13569_v40 = vld [vmem:[#allocation34_spill] sm:$0xff] }
 0x214   :  { %v2014_v49 = vmax.f32 %v13553_v46, %v1942_v21  ;;  %v2015_v2 = vmax.f32 %v13554_v61, %v1943_v3  ;;  %2318 = vst.msk [vmem:[#allocation2 + $0x140] sm:$0xff] %vm554_vm0, %v2249_v57  ;;  %v1948_v4 = vmax.f32 %v13556_v0, %v11655_v23  ;;  %v13557_v59 = vcombine.high %v13555_v39, %v13555_v39  ;;  %v13562_v23 = vld [vmem:[#allocation33_spill] sm:$0xff] }
 0x215   :  { %v2171_v19 = vmax.f32 %v2099_v13, 0.0  ;;  %v2172_v50 = vmax.f32 %v2100_v18, 0.0  ;;  %v13560_v30 = vmax.f32 %v13558_v24, %v13559_v41  ;;  %v13561_v9 = vcombine.high %v13556_v0, %v13556_v0  ;;  %v13573_v13 = vld [vmem:[#allocation96_spill] sm:$0xff]  ;;  %v3373_v18 = vld [vmem:[#allocation2 + $0x101] sm:$0xff] }
 0x216   :  { %v2095_v44 = vadd.f32 %v11182_v22, %v2014_v49  ;;  %v2096_v16 = vadd.f32 %v11188_v10, %v2015_v2  ;;  %v1953_v17 = vmax.f32 %v13557_v59, %v1666_v12  ;;  %v13564_v1 = vmax.f32 %v13562_v23, %v13563_v45  ;;  %v13579_v24 = vld [vmem:[#allocation97_spill] sm:$0xff] }
 0x217   :  { %2319 = vst.msk [vmem:[#allocation2 + $0x148] sm:$0xf] %vm2278_vm1, %v2171_v19  ;;  %v2024_v29 = vmax.f32 %v13560_v30, %v1952_v11  ;;  %v1949_v60 = vmax.f32 %v13561_v9, %v1664_v58  ;;  %v1667_v35 = vcombine.high %v11661_v62, %v11661_v62  ;;  %v1954_v38 = vmax.f32 %v13566_v27, %v11661_v62  ;;  %v2367_v28 = vld [vmem:[#allocation2 + $0x111] sm:$0xff] }
 0x218   :  { %v2020_v8 = vmax.f32 %v13564_v1, %v1948_v4  ;;  %v2167_v47 = vmax.f32 %v2095_v44, 0.0  ;;  %v2168_v5 = vmax.f32 %v2096_v16, 0.0  ;;  %v2025_v53 = vmax.f32 %v13565_v32, %v1953_v17  ;;  %v13577_v44 = vld [vmem:[#allocation94_spill] sm:$0xff] }
 0x219   :  { %v2105_v43 = vadd.f32 %v11182_v22, %v2024_v29  ;;  %v2021_v34 = vmax.f32 %v13567_v25, %v1949_v60  ;;  %v13568_v42 = vcombine.high %v13566_v27, %v13566_v27  ;;  %v13571_v21 = vmax.f32 %v13569_v40, %v13570_v6  ;;  %v11819_v60 = vld [vmem:[#allocation2 + $0x10] sm:$0xff]  ;;  %v10208_v6 = vld [vmem:[%s13129_s3 + $0x88] sm:$0xff]  }
 0x21a   :  { %v2101_v54 = vadd.f32 %v11182_v22, %v2020_v8  ;;  %v2248_v37 = vcombine.low %v2166_v20, %v2167_v47  ;;  %2317 = vst.msk [vmem:[#allocation2 + $0x138] sm:$0xf] %vm2278_vm1, %v2168_v5  ;;  %v2106_v56 = vadd.f32 %v11188_v10, %v2025_v53  ;;  %v11780_v52 = vpack.c.bf16 %v2365_v51, %v2364_v7  ;;  %v3375_v61 = vld [vmem:[#allocation2 + $0x121] sm:$0xff]  ;;  %v11829_v53 = vld [vmem:[#allocation2 + $0x12] sm:$0xff] }
 0x21b   :  { %v1955_v48 = vmax.f32 %v13568_v42, %v1667_v35  ;;  %v2026_v62 = vmax.f32 %v13571_v21, %v1954_v38  ;;  %v2177_v3 = vmax.f32 %v2105_v43, 0.0  ;;  %v2102_v26 = vadd.f32 %v11188_v10, %v2021_v34  ;;  %v11824_v47 = vld [vmem:[#allocation2 + $0x22] sm:$0xff]  ;;  %v11837_v27 = vld [vmem:[#allocation2 + $0x30] sm:$0xff] }
 0x21c   :  { %13572 = vst [vmem:[#allocation36_spill] sm:$0xff] %v11780_v52  ;;  %v2173_v57 = vmax.f32 %v2101_v54, 0.0  ;;  %2316 = vst.msk [vmem:[#allocation2 + $0x130] sm:$0xff] %vm554_vm0, %v2248_v37  ;;  %v2178_v20 = vmax.f32 %v2106_v56, 0.0  ;;  %9115 = vmatmul.mubr.msk.bf16.gmra.mrb[152].mxu0 %vm554_vm0, %v11780_v52  ;;  %v3382_v46 = vpack.c.bf16 %v2364_v7, %v11718_v63  ;;  %v1665_v49 = vcombine.high %v11667_v31, %v11667_v31  ;;  %v2326_v7 = vld [vmem:[#allocation2] sm:$0xff]  ;;  %v11839_v38 = vld [vmem:[#allocation2 + $0x50] sm:$0xff] }
 0x21d   :  { %v2027_v14 = vmax.f32 %v13573_v13, %v1955_v48  ;;  %v2107_v36 = vadd.f32 %v11182_v22, %v2026_v62  ;;  %2323 = vst.msk [vmem:[#allocation2 + $0x168] sm:$0xf] %vm2278_vm1, %v2177_v3  ;;  %v2174_v2 = vmax.f32 %v2102_v26, 0.0  ;;  %v1950_v39 = vmax.f32 %v11218_v33, %v11667_v31  ;;  %13582 = vst [vmem:[#allocation40_spill] sm:$0xff] %v11839_v38  ;;  %v11841_v43 = vld [vmem:[#allocation2 + $0x20] sm:$0xff]  ;;  %v11843_v25 = vld [vmem:[#allocation2 + $0x32] sm:$0xff] }
 0x21e   :  { %v2250_v12 = vcombine.low %v2172_v50, %v2173_v57  ;;  %9234 = vmatprep.mubr.msk.bf16.mxu1 %vm554_vm0, %v3382_v46  ;;  %v13574_v22 = vcombine.high %v11218_v33, %v11218_v33  ;;  %v3383_v58 = vpack.c.bf16 %v3373_v18, %v2365_v51  ;;  %v11799_v0 = vpack.c.bf16 %v2367_v28, %v3373_v18  ;;  %v13576_v50 = vld [vmem:[#allocation35_spill] sm:$0xff]  ;;  %v10287_v33 = vld [vmem:[%s13128_s2] ss:$0 sm:$0xff]  ;;  %v11815_v29 = vld [vmem:[#allocation2 + $0x141] sm:$0xff] }
 0x21f   :  { %v2108_v19 = vadd.f32 %v11188_v10, %v2027_v14  ;;  %v2179_v11 = vmax.f32 %v2107_v36, 0.0  ;;  %2321 = vst.msk [vmem:[#allocation2 + $0x158] sm:$0xf] %vm2278_vm1, %v2174_v2  ;;  %v13578_v16 = vmax.f32 %v13576_v50, %v13577_v44  ;;  %v3384_v31 = vpack.c.bf16 %v3375_v61, %v2367_v28  ;;  %13580 = vst [vmem:[#allocation6_spill] sm:$0xff] %v11815_v29  ;;  %v11845_v34 = vld [vmem:[#allocation2 + $0x42] sm:$0xff]  ;;  %v11866_v40 = vld [vmem:[#allocation2 + $0x52] sm:$0xff] }
 0x220   :  { %v1951_v63 = vmax.f32 %v13574_v22, %v1665_v49  ;;  %13575 = vst [vmem:[#allocation39_spill] sm:$0xff] %v11799_v0  ;;  %2320 = vst.msk [vmem:[#allocation2 + $0x150] sm:$0xff] %vm554_vm0, %v2250_v12  ;;  %9235 = vmatmul.mubr.msk.bf16.gmra.mrb[8].mxu1 %vm554_vm0, %v3383_v58  ;;  %9118 = vmatprep.mubr.msk.bf16.mxu0 %vm554_vm0, %v11799_v0  ;;  %v2342_v5 = vpack.c.bf16 %v11819_v60, %v2326_v7  ;;  %v11851_v42 = vld [vmem:[#allocation2 + $0x40] sm:$0xff]  ;;  %v10210_v51 = vld [vmem:[%s13129_s3 + $0x28] sm:$0xff]  }
 0x221   :  { %v2180_v4 = vmax.f32 %v2108_v19, 0.0  ;;  %v2022_v59 = vmax.f32 %v13578_v16, %v1950_v39  ;;  %v2252_v17 = vcombine.low %v2178_v20, %v2179_v11  ;;  %9238 = vmatprep.mubr.msk.bf16.mxu1 %vm554_vm0, %v3384_v31  ;;  %v11849_v54 = vpack.c.bf16 %v11837_v27, %v11841_v43  ;;  %v11853_v48 = vld [vmem:[#allocation2 + $0x62] sm:$0xff]  ;;  %v11884_v57 = vld [vmem:[%s13129_s3 + $0x30] sm:$0xff]  }
 0x222   :  { %v2023_v41 = vmax.f32 %v13579_v24, %v1951_v63  ;;  %v11860_v37 = vpack.c.bf16 %v11839_v38, %v11851_v42  ;;  %v3557_v56 = vpack.c.bf16 %v11845_v34, %v11843_v25  ;;  %v3558_v21 = vpack.c.bf16 %v11853_v48, %v11866_v40  ;;  %v11875_v62 = vld [vmem:[#allocation2 + $0x60] sm:$0xff]  ;;  %v2339_v13 = vld [vmem:[#allocation2 + $0x110] sm:$0xff] }
 0x223   :  { %2325 = vst.msk [vmem:[#allocation2 + $0x178] sm:$0xf] %vm2278_vm1, %v2180_v4  ;;  %v2103_v30 = vadd.f32 %v10287_v33, %v2022_v59  ;;  %v2369_v23 = vld [vmem:[#allocation2 + $0x131] sm:$0xff]  ;;  %13583 = vst [vmem:[#allocation7_spill] sm:$0xff] %v11875_v62  ;;  %v11879_v3 = vld [vmem:[#allocation2 + $0xe0] sm:$0xff] }
 0x224   :  { %2324 = vst.msk [vmem:[#allocation2 + $0x170] sm:$0xff] %vm554_vm0, %v2252_v17  ;;  %v2104_v9 = vadd.f32 %v11188_v10, %v2023_v41  ;;  %v11821_v8 = vpack.c.bf16 %v2369_v23, %v3375_v61  ;;  %v3385_v35 = vpack.c.bf16 %v11815_v29, %v2369_v23  ;;  %v3556_v10 = vpack.c.bf16 %v11824_v47, %v11829_v53  ;;  %v2338_v26 = vld [vmem:[#allocation2 + $0x100] sm:$0xff]  ;;  %v11892_v18 = vld [vmem:[#allocation2 + $0xd0] sm:$0xff] }
 0x225   :  { %v2175_v45 = vmax.f32 %v2103_v30, 0.0  ;;  %13584 = vst [vmem:[#allocation38_spill] sm:$0xff] %v11879_v3  ;;  %v11888_v14 = vld [vmem:[#allocation2 + $0x120] sm:$0xff]  ;;  %13585 = vst [vmem:[#allocation41_spill] sm:$0xff] %v11892_v18  ;;  %v2337_v28 = vld [vmem:[#allocation2 + $0xf0] sm:$0xff] }
 0x226   :  { %v2176_v1 = vmax.f32 %v2104_v9, 0.0  ;;  %13581 = vst [vmem:[#allocation37_spill] sm:$0xff] %v11821_v8  ;;  %9119 = vmatmul.mubr.msk.bf16.gmra.mrb[156].mxu0 %vm554_vm0, %v11821_v8  ;;  %v11897_v20 = vld [vmem:[%s13129_s3 + $0x90] sm:$0xff]   ;;  %v11905_v49 = vld [vmem:[#allocation2 + $0x82] sm:$0xff]  ;;  %v11911_v12 = vpack.c.bf16 %v2338_v26, %v2337_v28  ;;  %v11923_v63 = vpack.c.bf16 %v11888_v14, %v2339_v13 }
 0x227   :  { %9126 = vmatprep.mubr.msk.bf16.mxu0 %vm554_vm0, %v2342_v5  ;;  %v11903_v46 = vld [vmem:[#allocation2 + $0x70] sm:$0xff]  ;;  %13587 = vst [vmem:[#allocation42_spill] sm:$0xff] %v11905_v49  ;;  %v11907_v61 = vld [vmem:[#allocation2 + $0x41] sm:$0xff] }
 0x228   :  { %v2251_v32 = vcombine.low %v2175_v45, %v2176_v1  ;;  %9239 = vmatmul.mubr.msk.bf16.gmra.mrb[12].mxu1 %vm554_vm0, %v3385_v35  ;;  %13586 = vst [vmem:[#allocation8_spill] sm:$0xff] %v11903_v46  ;;  %13588 = vst [vmem:[#allocation45_spill] sm:$0xff] %v11911_v12  ;;  %v11915_v19 = vpack.c.bf16 %v11903_v46, %v11875_v62  ;;  %v2334_v39 = vld [vmem:[#allocation2 + $0xc0] sm:$0xff]  ;;  %v11920_v22 = vld [vmem:[#allocation2 + $0x31] sm:$0xff]  ;;  %v11959_v45 = vpack.c.bf16 %v2337_v28, %v11879_v3 }
 0x229   :  { %9246 = vmatprep.mubr.msk.bf16.mxu1 %vm554_vm0, %v3556_v10  ;;  %v11917_v11 = vld [vmem:[#allocation2 + $0xe2] sm:$0xff]  ;;  %13589 = vst [vmem:[#allocation9_spill] sm:$0xff] %v11923_v63  ;;  %v11925_v58 = vld [vmem:[#allocation2 + $0x72] sm:$0xff]  ;;  %v2346_v4 = vpack.c.bf16 %v11892_v18, %v2334_v39  ;;  %v11971_v10 = vpack.c.bf16 %v2339_v13, %v2338_v26 }
 0x22a   :  { %2322 = vst.msk [vmem:[#allocation2 + $0x160] sm:$0xff] %vm554_vm0, %v2251_v32  ;;  %v11928_v50 = vld [vmem:[#allocation2 + $0x61] sm:$0xff]  ;;  %v3559_v16 = vpack.c.bf16 %v11905_v49, %v11925_v58  ;;  %v11936_v59 = vld [vmem:[#allocation2 + $0xd2] sm:$0xff] }
 0x22b   :  { %13590 = vst [vmem:[#allocation43_spill] sm:$0xff] %v11928_v50  ;;  %v11930_v44 = vld [vmem:[#allocation2 + $0x81] sm:$0xff]  ;;  %v3560_v31 = vpack.c.bf16 %v11917_v11, %v11936_v59  ;;  %v11942_v17 = vld [vmem:[#allocation2 + $0x51] sm:$0xff] }
 0x22c   :  { %13591 = vst [vmem:[#allocation10_spill] sm:$0xff] %v11930_v44  ;;  %13592 = vst [vmem:[#allocation44_spill] sm:$0xff] %v11942_v17  ;;  %v11944_v24 = vld [vmem:[#allocation2 + $0x71] sm:$0xff]  ;;  %v11954_v9 = vld [vmem:[#allocation2 + $0x102] sm:$0xff] }
 0x22d   :  { %13593 = vst [vmem:[#allocation47_spill] sm:$0xff] %v11944_v24  ;;  %v11956_v23 = vld [vmem:[#allocation2 + $0x50] sm:$0xff]  ;;  %v11961_v1 = vld [vmem:[#allocation2 + $0x122] sm:$0xff] }
 0x22e   :  { %9127 = vmatmul.mubr.msk.bf16.vlgmr.msra.gmra.mrb[144].mxu0 %vm554_vm0, %v11849_v54  ;;  %13594 = vst [vmem:[#allocation48_spill] sm:$0xff] %v11956_v23  ;;  %v11963_v35 = vld [vmem:[#allocation2 + $0x40] sm:$0xff]  ;;  %v11967_v5 = vld [vmem:[#allocation2 + $0x70] sm:$0xff] }
 0x22f   :  { %9130 = vmatprep.mubr.msk.bf16.mxu0 %vm554_vm0, %v11860_v37  ;;  %9143 = vmatpush3.bf16.msra.mxu0 %v11502_v15  ;;  %13595 = vst [vmem:[#allocation98_spill] sm:$0xff] %v11963_v35  ;;  %v11965_v7 = vld [vmem:[#allocation2 + $0x60] sm:$0xff]  ;;  %13597 = vst [vmem:[#allocation46_spill] sm:$0xff] %v11967_v5  ;;  %v11969_v32 = vld [vmem:[#allocation2 + $0xf2] sm:$0xff] }
 0x230   :  { %9247 = vmatmul.mubr.msk.bf16.vlgmr.msra.gmra.mrb[0].mxu1 %vm554_vm0, %v3557_v56  ;;  %9144 = vmatprep.subr.bf16.mxu0 %v10210_v51  ;;  %13596 = vst [vmem:[#allocation11_spill] sm:$0xff] %v11965_v7  ;;  %v11975_v56 = vld [vmem:[#allocation2 + $0x92] sm:$0xff]  ;;  %v3561_v28 = vpack.c.bf16 %v11954_v9, %v11969_v32  ;;  %v11999_v30 = vld [vmem:[#allocation2 + $0x121] sm:$0xff] }
 0x231   :  { %9263 = vmatpush3.bf16.msra.mxu1 %v11497_v55  ;;  %9250 = vmatprep.mubr.msk.bf16.mxu1 %vm554_vm0, %v3558_v21  ;;  %v11979_v21 = vld [vmem:[#allocation2 + $0x62] sm:$0xff]  ;;  %v11985_v39 = vld [vmem:[#allocation2 + $0x151] sm:$0xff]  ;;  %13601 = vst [vmem:[#allocation53_spill] sm:$0xff] %v11999_v30 }
 0x232   :  { %9264 = vmatprep.subr.bf16.mxu1 %v10208_v6  ;;  %13598 = vst [vmem:[#allocation49_spill] sm:$0xff] %v11979_v21  ;;  %v11989_v26 = vld [vmem:[#allocation2 + $0x131] sm:$0xff]  ;;  %v12001_v33 = vld [vmem:[#allocation2 + $0x141] sm:$0xff] }
 0x233   :  { %9145 = vmatpush3.bf16.msra.mxu0 %v10210_v51  ;;  %v11973_v51 = vld [vmem:[#allocation2 + $0x112] sm:$0xff]  ;;  %13600 = vst [vmem:[#allocation50_spill] sm:$0xff] %v11989_v26  ;;  %13602 = vst [vmem:[#allocation13_spill] sm:$0xff] %v12001_v33  ;;  %v12003_v41 = vld [vmem:[#allocation2 + $0x42] sm:$0xff] }
 0x234   :  { %9162 = vmatprep.subr.bf16.mxu0 %v11884_v57  ;;  %v3562_v13 = vpack.c.bf16 %v11961_v1, %v11973_v51  ;;  %v12005_v2 = vld [vmem:[#allocation2 + $0x72] sm:$0xff]  ;;  %v12007_v36 = vld [vmem:[#allocation2 + $0x82] sm:$0xff] }
 0x235   :  { %9265 = vmatpush3.bf16.msra.mxu1 %v10208_v6  ;;  %v11977_v6 = vld [vmem:[#allocation2 + $0x52] sm:$0xff]  ;;  %13603 = vst [vmem:[#allocation51_spill] sm:$0xff] %v12005_v2  ;;  %13604 = vst [vmem:[#allocation14_spill] sm:$0xff] %v12007_v36  ;;  %v12011_v15 = vld [vmem:[#allocation2 + $0x63] sm:$0xff] }
 0x236   :  { %9131 = vmatmul.mubr.msk.bf16.gmra.mrb[148].mxu0 %vm554_vm0, %v11915_v19  ;;  %9282 = vmatprep.subr.bf16.mxu1 %v11897_v20  ;;  %v12009_v55 = vld [vmem:[#allocation2 + $0x53] sm:$0xff]  ;;  %13606 = vst [vmem:[#allocation55_spill] sm:$0xff] %v12011_v15  ;;  %v12020_v0 = vld [vmem:[#allocation2 + $0x102] sm:$0xff] }
 0x237   :  { %9134 = vmatprep.mubr.msk.bf16.mxu0 %vm554_vm0, %v2346_v4  ;;  %v11987_v4 = vld [vmem:[#allocation2 + $0x111] sm:$0xff]  ;;  %13605 = vst [vmem:[#allocation52_spill] sm:$0xff] %v12009_v55  ;;  %v12031_v49 = vld [vmem:[#allocation2 + $0x122] sm:$0xff] }
 0x238   :  { %9251 = vmatmul.mubr.msk.bf16.gmra.mrb[4].mxu1 %vm554_vm0, %v3559_v16  ;;  %13599 = vst [vmem:[#allocation12_spill] sm:$0xff] %v11987_v4  ;;  %v11995_v16 = vld [vmem:[#allocation2 + $0x93] sm:$0xff]  ;;  %13608 = vst [vmem:[#allocation15_spill] sm:$0xff] %v12031_v49  ;;  %v12033_v23 = vld [vmem:[#allocation2 + $0x142] sm:$0xff]  ;;  %v12133_v49 = vpack.c.bf16 %v11843_v25, %v11824_v47 }
 0x239   :  { %9254 = vmatprep.mubr.msk.bf16.mxu1 %vm554_vm0, %v3560_v31  ;;  %v11997_v31 = vld [vmem:[#allocation2 + $0x101] sm:$0xff]  ;;  %v12018_v8 = vld [vmem:[#allocation2 + $0x152] sm:$0xff]  ;;  %13609 = vst [vmem:[#allocation54_spill] sm:$0xff] %v12033_v23 }
 0x23a   :  { %v12022_v63 = vld [vmem:[#allocation2 + $0x112] sm:$0xff]  ;;  %v12035_v29 = vld [vmem:[#allocation2 + $0x43] sm:$0xff] }
 0x23b   :  { %v12024_v12 = vld [vmem:[#allocation2 + $0x132] sm:$0xff]  ;;  %13610 = vst [vmem:[#allocation57_spill] sm:$0xff] %v12035_v29  ;;  %v12039_v5 = vld [vmem:[#allocation2 + $0x83] sm:$0xff] }
 0x23c   :  { %13607 = vst [vmem:[#allocation56_spill] sm:$0xff] %v12024_v12  ;;  %v12027_v52 = vld [vmem:[#allocation2 + $0x130] sm:$0xff]  ;;  %13612 = vst [vmem:[#allocation58_spill] sm:$0xff] %v12039_v5  ;;  %v12043_v35 = vld [vmem:[#allocation2 + $0x64] sm:$0xff] }
 0x23d   :  { %v12029_v18 = vld [vmem:[#allocation2 + $0x94] sm:$0xff]  ;;  %13614 = vst [vmem:[#allocation100_spill] sm:$0xff] %v12043_v35  ;;  %v2649_v46 = vld [vmem:[#allocation2 + $0x2] sm:$0xff] }
 0x23e   :  { %9135 = vmatmul.mubr.msk.bf16.gmra.mrb[152].mxu0 %vm554_vm0, %v11959_v45  ;;  %v12041_v7 = vld [vmem:[#allocation2 + $0x54] sm:$0xff]  ;;  %v12051_v24 = vld [vmem:[#allocation2 + $0x23] sm:$0xff]  ;;  %v2665_v17 = vpack.c.bf16 %v11829_v53, %v2649_v46 }
 0x23f   :  { %9138 = vmatprep.mubr.msk.bf16.mxu0 %vm554_vm0, %v11971_v10  ;;  %13613 = vst [vmem:[#allocation61_spill] sm:$0xff] %v12041_v7  ;;  %v12053_v50 = vld [vmem:[#allocation2 + $0x153] sm:$0xff]  ;;  %v12067_v44 = vld [vmem:[#allocation2 + $0x142] sm:$0xff] }
 0x240   :  { %9255 = vmatmul.mubr.msk.bf16.gmra.mrb[8].mxu1 %vm554_vm0, %v3561_v28  ;;  %v12037_v28 = vld [vmem:[#allocation2 + $0x73] sm:$0xff]  ;;  %v12069_v33 = vld [vmem:[#allocation2 + $0x103] sm:$0xff] }
 0x241   :  { %9258 = vmatprep.mubr.msk.bf16.mxu1 %vm554_vm0, %v3562_v13  ;;  %13611 = vst [vmem:[#allocation16_spill] sm:$0xff] %v12037_v28  ;;  %v12055_v38 = vld [vmem:[#allocation2 + $0x113] sm:$0xff]  ;;  %13617 = vst [vmem:[#allocation59_spill] sm:$0xff] %v12069_v33  ;;  %v12079_v13 = vpack.c.bf16 %v12027_v52, %v11888_v14  ;;  %v12081_v3 = vld [vmem:[#allocation2 + $0x123] sm:$0xff] }
 0x242   :  { %13615 = vst [vmem:[#allocation99_spill] sm:$0xff] %v12055_v38  ;;  %v12057_v62 = vld [vmem:[#allocation2 + $0x133] sm:$0xff]  ;;  %13618 = vst [vmem:[#allocation63_spill] sm:$0xff] %v12081_v3  ;;  %v12083_v36 = vld [vmem:[#allocation2 + $0x143] sm:$0xff] }
 0x243   :  { %13616 = vst [vmem:[#allocation17_spill] sm:$0xff] %v12057_v62  ;;  %v12065_v26 = vld [vmem:[#allocation2 + $0x132] sm:$0xff]  ;;  %13619 = vst [vmem:[#allocation18_spill] sm:$0xff] %v12083_v36  ;;  %v12094_v23 = vld [vmem:[#allocation2 + $0x44] sm:$0xff]  ;;  %v12142_v36 = vpack.c.bf16 %v11866_v40, %v11845_v34 }
 0x244   :  { %v12085_v2 = vld [vmem:[#allocation2 + $0x114] sm:$0xff]  ;;  %13621 = vst [vmem:[#allocation64_spill] sm:$0xff] %v12094_v23  ;;  %v12098_v12 = vld [vmem:[#allocation2 + $0x84] sm:$0xff]  ;;  %v3563_v53 = vpack.c.bf16 %v12067_v44, %v12065_v26 }
 0x245   :  { %13620 = vst [vmem:[#allocation60_spill] sm:$0xff] %v12085_v2  ;;  %v12096_v14 = vld [vmem:[#allocation2 + $0x74] sm:$0xff]  ;;  %13623 = vst [vmem:[#allocation62_spill] sm:$0xff] %v12098_v12  ;;  %v12112_v4 = vld [vmem:[#allocation2 + $0x104] sm:$0xff] }
 0x246   :  { %13622 = vst [vmem:[#allocation19_spill] sm:$0xff] %v12096_v14  ;;  %9139 = vmatmul.mubr.msk.bf16.gmra.mrb[156].mxu0 %vm554_vm0, %v12079_v13  ;;  %v12110_v46 = vld [vmem:[#allocation2 + $0x13] sm:$0xff]  ;;  %13624 = vst [vmem:[#allocation65_spill] sm:$0xff] %v12112_v4  ;;  %v12129_v5 = vld [vmem:[#allocation2 + $0x43] sm:$0xff] }
 0x247   :  { %9146 = vmatprep.mubr.msk.bf16.mxu0 %vm554_vm0, %v2665_v17  ;;  %v3734_v30 = vpack.c.bf16 %v12051_v24, %v12110_v46  ;;  %v12127_v62 = vld [vmem:[#allocation2 + $0x33] sm:$0xff]  ;;  %v12135_v21 = vld [vmem:[#allocation2 + $0x63] sm:$0xff] }
 0x248   :  { %9259 = vmatmul.mubr.msk.bf16.gmra.mrb[12].mxu1 %vm554_vm0, %v3563_v53  ;;  %v10214_v17 = vld [vmem:[%s13129_s3 + $0x38] sm:$0xff]   ;;  %v10217_v34 = vld [vmem:[%s13129_s3 + $0x40] sm:$0xff]   ;;  %v10218_v3 = vld [vmem:[%s13129_s3 + $0x48] sm:$0xff]  }
 0x249   :  { %9266 = vmatprep.mubr.msk.bf16.mxu1 %vm554_vm0, %v3734_v30  ;;  %v3735_v30 = vpack.c.bf16 %v12129_v5, %v12127_v62  ;;  %v3722_v53 = vld [vmem:[#allocation2 + $0x53] sm:$0xff]  ;;  %v10215_v40 = vld [vmem:[%s13129_s3 + $0xa0] sm:$0xff]   ;;  %v10216_v38 = vld [vmem:[%s13129_s3 + $0xa8] sm:$0xff]  }
 0x24a   :  { %v10212_v47 = vld [vmem:[%s13129_s3 + $0x98] sm:$0xff]   ;;  %v3736_v25 = vpack.c.bf16 %v12135_v21, %v3722_v53  ;;  %v12164_v2 = vld [vmem:[#allocation2 + $0x83] sm:$0xff] }
 0x24b   :  { %v12170_v4 = vld [vmem:[#allocation2 + $0xe3] sm:$0xff]  ;;  %v3724_v12 = vld [vmem:[#allocation2 + $0x73] sm:$0xff] }
 0x24c   :  { %v12176_v14 = vld [vmem:[#allocation2 + $0xd3] sm:$0xff]  ;;  %v12211_v35 = vld [vmem:[#allocation2 + $0x24] sm:$0xff] }
 0x24d   :  { %v3905_v33 = vld [vmem:[#allocation2 + $0xe4] sm:$0xff]  ;;  %v3902_v28 = vld [vmem:[#allocation2 + $0x74] sm:$0xff] }
 0x24e   :  { %9147 = vmatmul.mubr.msk.bf16.vlgmr.msra.gmra.mrb[144].mxu0 %vm554_vm0, %v12133_v49  ;;  %v3908_v29 = vld [vmem:[#allocation2 + $0x114] sm:$0xff] }
 0x24f   :  { %9150 = vmatprep.mubr.msk.bf16.mxu0 %vm554_vm0, %v12142_v36  ;;  %9163 = vmatpush3.bf16.msra.mxu0 %v11884_v57  ;;  %v12168_v57 = vpack.c.bf16 %v11925_v58, %v11853_v48  ;;  %v3738_v48 = vpack.c.bf16 %v12170_v4, %v12176_v14  ;;  %v12183_v58 = vld [vmem:[#allocation2 + $0x103] sm:$0xff] }
 0x250   :  { %9267 = vmatmul.mubr.msk.bf16.vlgmr.msra.gmra.mrb[0].mxu1 %vm554_vm0, %v3735_v30  ;;  %9164 = vmatprep.subr.bf16.mxu0 %v10214_v17  ;;  %v2657_v30 = vld [vmem:[#allocation2 + $0xc2] sm:$0xff] }
 0x251   :  { %9283 = vmatpush3.bf16.msra.mxu1 %v11897_v20  ;;  %9270 = vmatprep.mubr.msk.bf16.mxu1 %vm554_vm0, %v3736_v25  ;;  %v2669_v20 = vpack.c.bf16 %v11936_v59, %v2657_v30  ;;  %v3737_v25 = vpack.c.bf16 %v12164_v2, %v3724_v12  ;;  %v12187_v59 = vpack.c.bf16 %v11969_v32, %v11917_v11  ;;  %v12203_v11 = vld [vmem:[#allocation2 + $0x133] sm:$0xff]  ;;  %v12205_v32 = vld [vmem:[#allocation2 + $0x143] sm:$0xff] }
 0x252   :  { %9284 = vmatprep.subr.bf16.mxu1 %v10212_v47  ;;  %v12193_v30 = vpack.c.bf16 %v11973_v51, %v11954_v9  ;;  %v12209_v9 = vpack.c.bf16 %v12065_v26, %v11961_v1  ;;  %v2827_v51 = vld [vmem:[#allocation2 + $0x3] sm:$0xff]  ;;  %v3898_v1 = vld [vmem:[#allocation2 + $0x34] sm:$0xff] }
 0x253   :  { %9165 = vmatpush3.bf16.msra.mxu0 %v10214_v17  ;;  %v12189_v17 = vld [vmem:[#allocation2 + $0x123] sm:$0xff]  ;;  %v2843_v7 = vpack.c.bf16 %v12110_v46, %v2827_v51  ;;  %v12224_v46 = vpack.c.bf16 %v12127_v62, %v12051_v24  ;;  %v10221_v24 = vld [vmem:[%s13129_s3 + $0x50] sm:$0xff]  }
 0x254   :  { %9182 = vmatprep.subr.bf16.mxu0 %v10217_v34  ;;  %v3899_v26 = vld [vmem:[#allocation2 + $0x44] sm:$0xff] }
 0x255   :  { %9285 = vmatpush3.bf16.msra.mxu1 %v10212_v47  ;;  %v3728_v47 = vld [vmem:[#allocation2 + $0xf3] sm:$0xff]  ;;  %v12226_v51 = vld [vmem:[#allocation2 + $0x64] sm:$0xff] }
 0x256   :  { %9151 = vmatmul.mubr.msk.bf16.gmra.mrb[148].mxu0 %vm554_vm0, %v12168_v57  ;;  %9302 = vmatprep.subr.bf16.mxu1 %v10215_v40 }
 0x257   :  { %9154 = vmatprep.mubr.msk.bf16.mxu0 %vm554_vm0, %v2669_v20  ;;  %v3739_v20 = vpack.c.bf16 %v12183_v58, %v3728_v47 }
 0x258   :  { %9271 = vmatmul.mubr.msk.bf16.gmra.mrb[4].mxu1 %vm554_vm0, %v3737_v25  ;;  %v3730_v25 = vld [vmem:[#allocation2 + $0x113] sm:$0xff] }
 0x259   :  { %9274 = vmatprep.mubr.msk.bf16.mxu1 %vm554_vm0, %v3738_v48  ;;  %v3740_v48 = vpack.c.bf16 %v12189_v17, %v3730_v25 }
 0x25e   :  { %9155 = vmatmul.mubr.msk.bf16.gmra.mrb[152].mxu0 %vm554_vm0, %v12187_v59 }
 0x25f   :  { %9158 = vmatprep.mubr.msk.bf16.mxu0 %vm554_vm0, %v12193_v30 }
 0x260   :  { %9275 = vmatmul.mubr.msk.bf16.gmra.mrb[8].mxu1 %vm554_vm0, %v3739_v20  ;;  %v3741_v20 = vpack.c.bf16 %v12205_v32, %v12203_v11 }
 0x261   :  { %9278 = vmatprep.mubr.msk.bf16.mxu1 %vm554_vm0, %v3740_v48  ;;  %v3896_v48 = vld [vmem:[#allocation2 + $0x14] sm:$0xff] }
 0x262   :  { %v3912_v23 = vpack.c.bf16 %v12211_v35, %v3896_v48 }
 0x266   :  { %9159 = vmatmul.mubr.msk.bf16.gmra.mrb[156].mxu0 %vm554_vm0, %v12209_v9 }
 0x267   :  { %9166 = vmatprep.mubr.msk.bf16.mxu0 %vm554_vm0, %v2843_v7  ;;  %v12232_v7 = vpack.c.bf16 %v3722_v53, %v12129_v5  ;;  %v10219_v5 = vld [vmem:[%s13129_s3 + $0xb0] sm:$0xff]   ;;  %v12250_v53 = vld [vmem:[#allocation2 + $0x84] sm:$0xff] }
 0x268   :  { %9279 = vmatmul.mubr.msk.bf16.gmra.mrb[12].mxu1 %vm554_vm0, %v3741_v20  ;;  %v3913_v20 = vpack.c.bf16 %v3899_v26, %v3898_v1 }
 0x269   :  { %9286 = vmatprep.mubr.msk.bf16.mxu1 %vm554_vm0, %v3912_v23  ;;  %v3900_v23 = vld [vmem:[#allocation2 + $0x54] sm:$0xff] }
 0x26a   :  { %v3914_v62 = vpack.c.bf16 %v12226_v51, %v3900_v23 }
 0x26e   :  { %9167 = vmatmul.mubr.msk.bf16.vlgmr.msra.gmra.mrb[144].mxu0 %vm554_vm0, %v12224_v46 }
 0x26f   :  { %9170 = vmatprep.mubr.msk.bf16.mxu0 %vm554_vm0, %v12232_v7  ;;  %9183 = vmatpush3.bf16.msra.mxu0 %v10217_v34  ;;  %v12253_v34 = vpack.c.bf16 %v3724_v12, %v12135_v21  ;;  %v3907_v12 = vld [vmem:[#allocation2 + $0x104] sm:$0xff]  ;;  %v12263_v21 = vpack.c.bf16 %v3728_v47, %v12170_v4  ;;  %v3910_v4 = vld [vmem:[#allocation2 + $0x134] sm:$0xff] }
 0x270   :  { %9287 = vmatmul.mubr.msk.bf16.vlgmr.msra.gmra.mrb[0].mxu1 %vm554_vm0, %v3913_v20  ;;  %9184 = vmatprep.subr.bf16.mxu0 %v10218_v3  ;;  %v2835_v20 = vld [vmem:[#allocation2 + $0xc3] sm:$0xff] }
 0x271   :  { %9303 = vmatpush3.bf16.msra.mxu1 %v10215_v40  ;;  %9290 = vmatprep.mubr.msk.bf16.mxu1 %vm554_vm0, %v3914_v62  ;;  %v2847_v15 = vpack.c.bf16 %v12176_v14, %v2835_v20  ;;  %v3915_v40 = vpack.c.bf16 %v12250_v53, %v3902_v28  ;;  %v3904_v62 = vld [vmem:[#allocation2 + $0xd4] sm:$0xff]  ;;  %v3909_v14 = vld [vmem:[#allocation2 + $0x124] sm:$0xff]  ;;  %v12266_v20 = vpack.c.bf16 %v3730_v25, %v12183_v58 }
 0x272   :  { %9304 = vmatprep.subr.bf16.mxu1 %v10216_v38  ;;  %v12274_v47 = vld [vmem:[#allocation2 + $0x144] sm:$0xff]  ;;  %v12278_v58 = vpack.c.bf16 %v12203_v11, %v12189_v17  ;;  %v10222_v17 = vld [vmem:[%s13129_s3 + $0x58] sm:$0xff]   ;;  %v12296_v11 = vpack.c.bf16 %v3900_v23, %v3899_v26 }
 0x273   :  { %9185 = vmatpush3.bf16.msra.mxu0 %v10218_v3  ;;  %v3916_v3 = vpack.c.bf16 %v3905_v33, %v3904_v62  ;;  %v3005_v25 = vld [vmem:[#allocation2 + $0x4] sm:$0xff] }
 0x274   :  { %9202 = vmatprep.subr.bf16.mxu0 %v10221_v24  ;;  %v3013_v26 = vld [vmem:[#allocation2 + $0xc4] sm:$0xff] }
 0x275   :  { %9305 = vmatpush3.bf16.msra.mxu1 %v10216_v38  ;;  %v3906_v38 = vld [vmem:[#allocation2 + $0xf4] sm:$0xff]  ;;  %v12317_v23 = vld [vmem:[#allocation2 + $0x80] sm:$0xff] }
 0x276   :  { %9171 = vmatmul.mubr.msk.bf16.gmra.mrb[148].mxu0 %vm554_vm0, %v12253_v34  ;;  %9322 = vmatprep.subr.bf16.mxu1 %v10219_v5  ;;  %v3917_v55 = vpack.c.bf16 %v3907_v12, %v3906_v38 }
 0x277   :  { %9174 = vmatprep.mubr.msk.bf16.mxu0 %vm554_vm0, %v2847_v15  ;;  %v3918_v15 = vpack.c.bf16 %v3909_v14, %v3908_v29 }
 0x278   :  { %9291 = vmatmul.mubr.msk.bf16.gmra.mrb[4].mxu1 %vm554_vm0, %v3915_v40  ;;  %v3021_v40 = vpack.c.bf16 %v3896_v48, %v3005_v25  ;;  %v10220_v48 = vld [vmem:[%s13129_s3 + $0xb8] sm:$0xff]   ;;  %v13632_v25 = vld [vmem:[#allocation47_spill] sm:$0xff] }
 0x279   :  { %9294 = vmatprep.mubr.msk.bf16.mxu1 %vm554_vm0, %v3916_v3  ;;  %v12283_v3 = vpack.c.bf16 %v12274_v47, %v3910_v4 }
 0x27e   :  { %9175 = vmatmul.mubr.msk.bf16.gmra.mrb[152].mxu0 %vm554_vm0, %v12263_v21 }
 0x27f   :  { %9178 = vmatprep.mubr.msk.bf16.mxu0 %vm554_vm0, %v12266_v20 }
 0x280   :  { %9295 = vmatmul.mubr.msk.bf16.gmra.mrb[8].mxu1 %vm554_vm0, %v3917_v55  ;;  %v12291_v55 = vpack.c.bf16 %v3898_v1, %v12211_v35  ;;  %v12312_v35 = vld [vmem:[#allocation2 + $0x90] sm:$0xff]  ;;  %v12315_v1 = vpack.c.bf16 %v3902_v28, %v12226_v51  ;;  %v12330_v28 = vpack.c.bf16 %v3906_v38, %v3905_v33  ;;  %v12332_v51 = vpack.c.bf16 %v3908_v29, %v3907_v12  ;;  %v4089_v33 = vld [vmem:[#allocation2 + $0x140] sm:$0xff] }
 0x281   :  { %9298 = vmatprep.mubr.msk.bf16.mxu1 %vm554_vm0, %v3918_v15  ;;  %v13627_v12 = vld [vmem:[#allocation44_spill] sm:$0xff] }
 0x282   :  { %v13629_v38 = vld [vmem:[#allocation40_spill] sm:$0xff] }
 0x286   :  { %9179 = vmatmul.mubr.msk.bf16.gmra.mrb[156].mxu0 %vm554_vm0, %v12278_v58 }
 0x287   :  { %9186 = vmatprep.mubr.msk.bf16.mxu0 %vm554_vm0, %v3021_v40 }
 0x288   :  { %9299 = vmatmul.mubr.msk.bf16.gmra.mrb[12].mxu1 %vm554_vm0, %v12283_v3 }
 0x289   :  { %9306 = vmatprep.mubr.msk.bf16.mxu1 %vm554_vm0, %v11849_v54  ;;  %v10223_v54 = vld [vmem:[%s13129_s3 + $0xc0] sm:$0xff]  }
 0x28e   :  { %9187 = vmatmul.mubr.msk.bf16.vlgmr.msra.gmra.mrb[144].mxu0 %vm554_vm0, %v12291_v55 }
 0x28f   :  { %9190 = vmatprep.mubr.msk.bf16.mxu0 %vm554_vm0, %v12296_v11  ;;  %9203 = vmatpush3.bf16.msra.mxu0 %v10221_v24  ;;  %v12342_v24 = vld [vmem:[#allocation2 + $0x150] sm:$0xff] }
 0x290   :  { %9307 = vmatmul.mubr.msk.bf16.vlgmr.msra.gmra.mrb[0].mxu1 %vm554_vm0, %v11860_v37  ;;  %9204 = vmatprep.subr.bf16.mxu0 %v10222_v17  ;;  %v3025_v37 = vpack.c.bf16 %v3904_v62, %v3013_v26  ;;  %v12349_v29 = vpack.c.bf16 %v12342_v24, %v4089_v33  ;;  %v13625_v62 = vpack.c.bf16 %v11841_v43, %v11819_v60  ;;  %v10224_v60 = vld [vmem:[%s13129_s3 + $0xc8] sm:$0xff]  }
 0x291   :  { %9323 = vmatpush3.bf16.msra.mxu1 %v10219_v5  ;;  %9310 = vmatprep.mubr.msk.bf16.mxu1 %vm554_vm0, %v11915_v19  ;;  %v12323_v19 = vpack.c.bf16 %v12312_v35, %v12317_v23  ;;  %v12344_v5 = vpack.c.bf16 %v3910_v4, %v3909_v14  ;;  %v12365_v14 = vpack.c.bf16 %v13627_v12, %v11907_v61  ;;  %v13628_v43 = vld [vmem:[#allocation7_spill] sm:$0xff]  ;;  %v13634_v26 = vld [vmem:[#allocation10_spill] sm:$0xff] }
 0x292   :  { %9324 = vmatprep.subr.bf16.mxu1 %v10220_v48  ;;  %v13630_v15 = vpack.c.bf16 %v13628_v43, %v13629_v38  ;;  %v13631_v4 = vld [vmem:[#allocation43_spill] sm:$0xff]  ;;  %v13642_v38 = vld [vmem:[#allocation37_spill] sm:$0xff] }
 0x293   :  { %9205 = vmatpush3.bf16.msra.mxu0 %v10222_v17  ;;  %v12376_v40 = vpack.c.bf16 %v13632_v25, %v13631_v4  ;;  %v13633_v17 = vld [vmem:[#allocation8_spill] sm:$0xff]  ;;  %v13641_v43 = vld [vmem:[#allocation39_spill] sm:$0xff] }
 0x295   :  { %9325 = vmatpush3.bf16.msra.mxu1 %v10220_v48  ;;  %v3203_v48 = vpack.c.bf16 %v12317_v23, %v13633_v17  ;;  %v13643_v17 = vld [vmem:[#allocation6_spill] sm:$0xff] }
 0x296   :  { %9191 = vmatmul.mubr.msk.bf16.gmra.mrb[148].mxu0 %vm554_vm0, %v12315_v1  ;;  %9342 = vmatprep.subr.bf16.mxu1 %v10223_v54 }
 0x297   :  { %9194 = vmatprep.mubr.msk.bf16.mxu0 %vm554_vm0, %v3025_v37 }
 0x298   :  { %9311 = vmatmul.mubr.msk.bf16.gmra.mrb[4].mxu1 %vm554_vm0, %v12323_v19 }
 0x299   :  { %9314 = vmatprep.mubr.msk.bf16.mxu1 %vm554_vm0, %v11959_v45  ;;  %v4253_v45 = vld [vmem:[#allocation2 + $0x21] sm:$0xff] }
 0x29e   :  { %9195 = vmatmul.mubr.msk.bf16.gmra.mrb[152].mxu0 %vm554_vm0, %v12330_v28 }
 0x29f   :  { %9198 = vmatprep.mubr.msk.bf16.mxu0 %vm554_vm0, %v12332_v51 }
 0x2a0   :  { %9315 = vmatmul.mubr.msk.bf16.gmra.mrb[8].mxu1 %vm554_vm0, %v11971_v10  ;;  %v4269_v10 = vpack.c.bf16 %v11920_v22, %v4253_v45  ;;  %v13636_v45 = vld [vmem:[#allocation41_spill] sm:$0xff] }
 0x2a1   :  { %9318 = vmatprep.mubr.msk.bf16.mxu1 %vm554_vm0, %v12079_v13  ;;  %v13626_v13 = vpack.c.bf16 %v11851_v42, %v11837_v27  ;;  %v10225_v27 = vld [vmem:[%s13129_s3 + $0xd0] sm:$0xff]  }
 0x2a2   :  { %v12385_v42 = vld [vmem:[#allocation2 + $0x91] sm:$0xff] }
 0x2a3   :  { %v12392_v37 = vpack.c.bf16 %v12385_v42, %v13634_v26 }
 0x2a6   :  { %9199 = vmatmul.mubr.msk.bf16.gmra.mrb[156].mxu0 %vm554_vm0, %v12344_v5 }
 0x2a7   :  { %9206 = vmatprep.mubr.msk.bf16.mxu0 %vm554_vm0, %v13625_v62 }
 0x2a8   :  { %9319 = vmatmul.mubr.msk.bf16.gmra.mrb[12].mxu1 %vm554_vm0, %v12349_v29 }
 0x2a9   :  { %9326 = vmatprep.mubr.msk.bf16.mxu1 %vm554_vm0, %v4269_v10  ;;  %v13638_v10 = vld [vmem:[#allocation36_spill] sm:$0xff] }
 0x2ae   :  { %9207 = vmatmul.mubr.msk.bf16.vlgmr.msra.gmra.mrb[144].mxu0 %vm554_vm0, %v13626_v13  ;;  %v13639_v13 = vld [vmem:[#allocation45_spill] sm:$0xff] }
 0x2af   :  { %9210 = vmatprep.mubr.msk.bf16.mxu0 %vm554_vm0, %v13630_v15  ;;  %v12411_v15 = vpack.c.bf16 %v4089_v33, %v12027_v52  ;;  %v10227_v52 = vld [vmem:[%s13129_s3 + $0xe0] sm:$0xff]  }
 0x2b0   :  { %9327 = vmatmul.mubr.msk.bf16.vlgmr.msra.gmra.mrb[0].mxu1 %vm554_vm0, %v12365_v14  ;;  %v13644_v33 = vld [vmem:[#allocation42_spill] sm:$0xff] }
 0x2b1   :  { %9343 = vmatpush3.bf16.msra.mxu1 %v10223_v54  ;;  %9330 = vmatprep.mubr.msk.bf16.mxu1 %vm554_vm0, %v12376_v40  ;;  %v13635_v54 = vld [vmem:[#allocation38_spill] sm:$0xff] }
 0x2b2   :  { %9344 = vmatprep.subr.bf16.mxu1 %v10224_v60  ;;  %v13637_v62 = vpack.c.bf16 %v13635_v54, %v13636_v45  ;;  %v10226_v54 = vld [vmem:[%s13129_s3 + $0xd8] sm:$0xff]  }
 0x2b3   :  { %v10234_v45 = vld [vmem:[%s13129_s3 + $0x118] sm:$0xff]  }
 0x2b5   :  { %9345 = vmatpush3.bf16.msra.mxu1 %v10224_v60  ;;  %v13640_v60 = vld [vmem:[#allocation9_spill] sm:$0xff] }
 0x2b6   :  { %9211 = vmatmul.mubr.msk.bf16.gmra.mrb[148].mxu0 %vm554_vm0, %v3203_v48  ;;  %9362 = vmatprep.subr.bf16.mxu1 %v10225_v27  ;;  %v4276_v48 = vpack.c.bf16 %v11985_v39, %v13643_v17 }
 0x2b7   :  { %9214 = vmatprep.mubr.msk.bf16.mxu0 %vm554_vm0, %v13637_v62  ;;  %v13650_v62 = vpack.c.bf16 %v13631_v4, %v13627_v12  ;;  %v5152_v12 = vld [vmem:[#allocation2 + $0xf1] sm:$0xff] }
 0x2b8   :  { %9331 = vmatmul.mubr.msk.bf16.gmra.mrb[4].mxu1 %vm554_vm0, %v12392_v37  ;;  %v5164_v4 = vpack.c.bf16 %v11997_v31, %v5152_v12 }
 0x2b9   :  { %9334 = vmatprep.mubr.msk.bf16.mxu1 %vm554_vm0, %v13638_v10 }
 0x2be   :  { %9215 = vmatmul.mubr.msk.bf16.gmra.mrb[152].mxu0 %vm554_vm0, %v13639_v13 }
 0x2bf   :  { %9218 = vmatprep.mubr.msk.bf16.mxu0 %vm554_vm0, %v13640_v60 }
 0x2c0   :  { %9335 = vmatmul.mubr.msk.bf16.gmra.mrb[8].mxu1 %vm554_vm0, %v13641_v43  ;;  %v13655_v43 = vld [vmem:[#allocation13_spill] sm:$0xff] }
 0x2c1   :  { %9338 = vmatprep.mubr.msk.bf16.mxu1 %vm554_vm0, %v13642_v38 }
 0x2c6   :  { %9219 = vmatmul.mubr.msk.bf16.gmra.mrb[156].mxu0 %vm554_vm0, %v12411_v15 }
 0x2c8   :  { %9339 = vmatmul.mubr.msk.bf16.gmra.mrb[12].mxu1 %vm554_vm0, %v4276_v48 }
 0x2c9   :  { %9346 = vmatprep.mubr.msk.bf16.mxu1 %vm554_vm0, %v12133_v49  ;;  %v4450_v49 = vpack.c.bf16 %v11975_v56, %v13644_v33  ;;  %v10236_v33 = vld [vmem:[%s13129_s3 + $0x128] sm:$0xff]  }
 0x2d0   :  { %9347 = vmatmul.mubr.msk.bf16.vlgmr.msra.gmra.mrb[0].mxu1 %vm554_vm0, %v12142_v36  ;;  %v4454_v36 = vpack.c.bf16 %v12018_v8, %v12067_v44  ;;  %v10229_v44 = vld [vmem:[%s13129_s3 + $0xf0] sm:$0xff]  }
 0x2d1   :  { %9363 = vmatpush3.bf16.msra.mxu1 %v10225_v27  ;;  %9350 = vmatprep.mubr.msk.bf16.mxu1 %vm554_vm0, %v12168_v57  ;;  %v10228_v57 = vld [vmem:[%s13129_s3 + $0xe8] sm:$0xff]  }
 0x2d2   :  { %9364 = vmatprep.subr.bf16.mxu1 %v10226_v54 }
 0x2d5   :  { %9365 = vmatpush3.bf16.msra.mxu1 %v10226_v54  ;;  %v13656_v54 = vld [vmem:[#allocation49_spill] sm:$0xff] }
 0x2d6   :  { %9382 = vmatprep.subr.bf16.mxu1 %v10227_v52 }
 0x2d8   :  { %9351 = vmatmul.mubr.msk.bf16.gmra.mrb[4].mxu1 %vm554_vm0, %v4450_v49  ;;  %v13657_v49 = vld [vmem:[#allocation51_spill] sm:$0xff] }
 0x2d9   :  { %9354 = vmatprep.mubr.msk.bf16.mxu1 %vm554_vm0, %v12187_v59  ;;  %v4628_v59 = vpack.c.bf16 %v11995_v16, %v12164_v2  ;;  %v10230_v2 = vld [vmem:[%s13129_s3 + $0xf8] sm:$0xff]  }
 0x2e0   :  { %9355 = vmatmul.mubr.msk.bf16.gmra.mrb[8].mxu1 %vm554_vm0, %v12193_v30  ;;  %v4632_v30 = vpack.c.bf16 %v12053_v50, %v12205_v32  ;;  %v10231_v32 = vld [vmem:[%s13129_s3 + $0x100] sm:$0xff]  }
 0x2e1   :  { %9358 = vmatprep.mubr.msk.bf16.mxu1 %vm554_vm0, %v12209_v9  ;;  %v4806_v9 = vpack.c.bf16 %v12029_v18, %v12250_v53 }
 0x2e8   :  { %9359 = vmatmul.mubr.msk.bf16.gmra.mrb[12].mxu1 %vm554_vm0, %v4454_v36  ;;  %v13658_v36 = vld [vmem:[#allocation14_spill] sm:$0xff] }
 0x2e9   :  { %9366 = vmatprep.mubr.msk.bf16.mxu1 %vm554_vm0, %v12224_v46  ;;  %v12487_v46 = vld [vmem:[#allocation2 + $0x154] sm:$0xff] }
 0x2f0   :  { %9367 = vmatmul.mubr.msk.bf16.vlgmr.msra.gmra.mrb[0].mxu1 %vm554_vm0, %v12232_v7  ;;  %v4966_v7 = vld [vmem:[#allocation2 + $0x30] sm:$0xff] }
 0x2f1   :  { %9383 = vmatpush3.bf16.msra.mxu1 %v10227_v52  ;;  %9370 = vmatprep.mubr.msk.bf16.mxu1 %vm554_vm0, %v12253_v34  ;;  %v4810_v34 = vpack.c.bf16 %v12487_v46, %v12274_v47  ;;  %v10233_v47 = vld [vmem:[%s13129_s3 + $0x110] sm:$0xff]   ;;  %v5339_v52 = vpack.c.bf16 %v13656_v54, %v11977_v6 }
 0x2f2   :  { %9384 = vmatprep.subr.bf16.mxu1 %v10228_v57 }
 0x2f5   :  { %9385 = vmatpush3.bf16.msra.mxu1 %v10228_v57  ;;  %v5340_v57 = vpack.c.bf16 %v13658_v36, %v13657_v49 }
 0x2f6   :  { %9402 = vmatprep.subr.bf16.mxu1 %v10229_v44 }
 0x2f8   :  { %9371 = vmatmul.mubr.msk.bf16.gmra.mrb[4].mxu1 %vm554_vm0, %v4628_v59  ;;  %v12572_v59 = vld [vmem:[#allocation2 + $0xa2] sm:$0xff] }
 0x2f9   :  { %9374 = vmatprep.mubr.msk.bf16.mxu1 %vm554_vm0, %v12263_v21  ;;  %v13645_v21 = vld [vmem:[#allocation98_spill] sm:$0xff] }
 0x2fa   :  { %v4982_v53 = vpack.c.bf16 %v13645_v21, %v4966_v7 }
 0x300   :  { %9375 = vmatmul.mubr.msk.bf16.gmra.mrb[8].mxu1 %vm554_vm0, %v12266_v20  ;;  %v13646_v20 = vld [vmem:[#allocation48_spill] sm:$0xff] }
 0x301   :  { %9378 = vmatprep.mubr.msk.bf16.mxu1 %vm554_vm0, %v12278_v58  ;;  %v13647_v58 = vld [vmem:[#allocation11_spill] sm:$0xff] }
 0x308   :  { %9379 = vmatmul.mubr.msk.bf16.gmra.mrb[12].mxu1 %vm554_vm0, %v4632_v30  ;;  %v5341_v30 = vpack.c.bf16 %v12572_v59, %v11975_v56 }
 0x309   :  { %9386 = vmatprep.mubr.msk.bf16.mxu1 %vm554_vm0, %v12291_v55  ;;  %v4983_v55 = vpack.c.bf16 %v13647_v58, %v13646_v20 }
 0x310   :  { %9387 = vmatmul.mubr.msk.bf16.vlgmr.msra.gmra.mrb[0].mxu1 %vm554_vm0, %v12296_v11  ;;  %v10232_v11 = vld [vmem:[%s13129_s3 + $0x108] sm:$0xff]  }
 0x311   :  { %9403 = vmatpush3.bf16.msra.mxu1 %v10229_v44  ;;  %9390 = vmatprep.mubr.msk.bf16.mxu1 %vm554_vm0, %v12315_v1  ;;  %v13648_v1 = vld [vmem:[#allocation46_spill] sm:$0xff]  ;;  %v10237_v44 = vld [vmem:[%s13129_s3 + $0x130] sm:$0xff]  }
 0x312   :  { %9404 = vmatprep.subr.bf16.mxu1 %v10230_v2 }
 0x315   :  { %9405 = vmatpush3.bf16.msra.mxu1 %v10230_v2  ;;  %v5330_v2 = vld [vmem:[#allocation2 + $0xf2] sm:$0xff] }
 0x316   :  { %9422 = vmatprep.subr.bf16.mxu1 %v10231_v32 }
 0x318   :  { %9391 = vmatmul.mubr.msk.bf16.gmra.mrb[4].mxu1 %vm554_vm0, %v4806_v9  ;;  %v13659_v9 = vld [vmem:[#allocation15_spill] sm:$0xff] }
 0x319   :  { %9394 = vmatprep.mubr.msk.bf16.mxu1 %vm554_vm0, %v12330_v28  ;;  %v4984_v28 = vpack.c.bf16 %v12317_v23, %v13648_v1  ;;  %v12517_v23 = vld [vmem:[#allocation2 + $0x160] sm:$0xff]  ;;  %v5343_v7 = vpack.c.bf16 %v13659_v9, %v12022_v63 }
 0x31a   :  { %v4989_v27 = vpack.c.bf16 %v12517_v23, %v12342_v24  ;;  %v13651_v24 = vpack.c.bf16 %v13634_v26, %v13632_v25  ;;  %v13652_v25 = vld [vmem:[#allocation12_spill] sm:$0xff]  ;;  %v13653_v26 = vld [vmem:[#allocation53_spill] sm:$0xff] }
 0x320   :  { %9395 = vmatmul.mubr.msk.bf16.gmra.mrb[8].mxu1 %vm554_vm0, %v12332_v51  ;;  %v12506_v51 = vld [vmem:[#allocation2 + $0xa0] sm:$0xff] }
 0x321   :  { %9398 = vmatprep.mubr.msk.bf16.mxu1 %vm554_vm0, %v12344_v5  ;;  %v4985_v5 = vpack.c.bf16 %v12506_v51, %v12312_v35  ;;  %v13649_v35 = vpack.c.bf16 %v11907_v61, %v11920_v22  ;;  %v10235_v61 = vld [vmem:[%s13129_s3 + $0x120] sm:$0xff]  }
 0x322   :  { %v12540_v22 = vld [vmem:[#allocation2 + $0xa1] sm:$0xff] }
 0x323   :  { %v5163_v10 = vpack.c.bf16 %v12540_v22, %v12385_v42  ;;  %v5322_v42 = vld [vmem:[#allocation2 + $0x32] sm:$0xff] }
 0x324   :  { %v5338_v48 = vpack.c.bf16 %v12003_v41, %v5322_v42 }
 0x328   :  { %9399 = vmatmul.mubr.msk.bf16.gmra.mrb[12].mxu1 %vm554_vm0, %v4810_v34  ;;  %v13660_v34 = vld [vmem:[#allocation56_spill] sm:$0xff] }
 0x329   :  { %9406 = vmatprep.mubr.msk.bf16.mxu1 %vm554_vm0, %v4982_v53  ;;  %v13661_v53 = vld [vmem:[#allocation54_spill] sm:$0xff] }
 0x330   :  { %9407 = vmatmul.mubr.msk.bf16.vlgmr.msra.gmra.mrb[0].mxu1 %vm554_vm0, %v4983_v55  ;;  %v5344_v55 = vpack.c.bf16 %v13661_v53, %v13660_v34 }
 0x331   :  { %9423 = vmatpush3.bf16.msra.mxu1 %v10231_v32  ;;  %9410 = vmatprep.mubr.msk.bf16.mxu1 %vm554_vm0, %v4984_v28  ;;  %v5342_v32 = vpack.c.bf16 %v12020_v0, %v5330_v2  ;;  %v10239_v2 = vld [vmem:[%s13129_s3 + $0x140] sm:$0xff]  }
 0x332   :  { %9424 = vmatprep.subr.bf16.mxu1 %v10232_v11 }
 0x335   :  { %9425 = vmatpush3.bf16.msra.mxu1 %v10232_v11 }
 0x336   :  { %9442 = vmatprep.subr.bf16.mxu1 %v10233_v47 }
 0x338   :  { %9411 = vmatmul.mubr.msk.bf16.gmra.mrb[4].mxu1 %vm554_vm0, %v4985_v5  ;;  %v12591_v5 = vld [vmem:[#allocation2 + $0x162] sm:$0xff] }
 0x339   :  { %9414 = vmatprep.mubr.msk.bf16.mxu1 %vm554_vm0, %v13639_v13  ;;  %v5165_v13 = vpack.c.bf16 %v13653_v26, %v13652_v25 }
 0x340   :  { %9415 = vmatmul.mubr.msk.bf16.gmra.mrb[8].mxu1 %vm554_vm0, %v13640_v60  ;;  %v13654_v60 = vld [vmem:[#allocation50_spill] sm:$0xff] }
 0x341   :  { %9418 = vmatprep.mubr.msk.bf16.mxu1 %vm554_vm0, %v12411_v15  ;;  %v5166_v38 = vpack.c.bf16 %v13655_v43, %v13654_v60  ;;  %v12553_v15 = vld [vmem:[#allocation2 + $0x161] sm:$0xff] }
 0x342   :  { %v5167_v17 = vpack.c.bf16 %v12553_v15, %v11985_v39 }
 0x348   :  { %9419 = vmatmul.mubr.msk.bf16.gmra.mrb[12].mxu1 %vm554_vm0, %v4989_v27 }
 0x349   :  { %9426 = vmatprep.mubr.msk.bf16.mxu1 %vm554_vm0, %v13649_v35  ;;  %v5500_v35 = vld [vmem:[#allocation2 + $0x33] sm:$0xff] }
 0x350   :  { %9427 = vmatmul.mubr.msk.bf16.vlgmr.msra.gmra.mrb[0].mxu1 %vm554_vm0, %v13650_v62  ;;  %v13666_v62 = vld [vmem:[#allocation57_spill] sm:$0xff] }
 0x351   :  { %9443 = vmatpush3.bf16.msra.mxu1 %v10233_v47  ;;  %9430 = vmatprep.mubr.msk.bf16.mxu1 %vm554_vm0, %v13651_v24  ;;  %v5516_v24 = vpack.c.bf16 %v13666_v62, %v5500_v35  ;;  %v5508_v35 = vld [vmem:[#allocation2 + $0xf3] sm:$0xff] }
 0x352   :  { %9444 = vmatprep.subr.bf16.mxu1 %v10234_v45 }
 0x355   :  { %9445 = vmatpush3.bf16.msra.mxu1 %v10234_v45  ;;  %v5345_v45 = vpack.c.bf16 %v12591_v5, %v12018_v8 }
 0x356   :  { %9462 = vmatprep.subr.bf16.mxu1 %v10235_v61 }
 0x358   :  { %9431 = vmatmul.mubr.msk.bf16.gmra.mrb[4].mxu1 %vm554_vm0, %v5163_v10 }
 0x359   :  { %9434 = vmatprep.mubr.msk.bf16.mxu1 %vm554_vm0, %v5164_v4 }
 0x360   :  { %9435 = vmatmul.mubr.msk.bf16.gmra.mrb[8].mxu1 %vm554_vm0, %v5165_v13  ;;  %v13671_v13 = vld [vmem:[#allocation52_spill] sm:$0xff] }
 0x361   :  { %9438 = vmatprep.mubr.msk.bf16.mxu1 %vm554_vm0, %v5166_v38  ;;  %v13672_v38 = vld [vmem:[#allocation55_spill] sm:$0xff] }
 0x362   :  { %v5517_v42 = vpack.c.bf16 %v13672_v38, %v13671_v13 }
 0x368   :  { %9439 = vmatmul.mubr.msk.bf16.gmra.mrb[12].mxu1 %vm554_vm0, %v5167_v17  ;;  %v10238_v17 = vld [vmem:[%s13129_s3 + $0x138] sm:$0xff]  }
 0x369   :  { %9446 = vmatprep.mubr.msk.bf16.mxu1 %vm554_vm0, %v5338_v48  ;;  %v13673_v48 = vld [vmem:[#allocation16_spill] sm:$0xff] }
 0x370   :  { %9447 = vmatmul.mubr.msk.bf16.vlgmr.msra.gmra.mrb[0].mxu1 %vm554_vm0, %v5339_v52  ;;  %v13674_v52 = vld [vmem:[#allocation58_spill] sm:$0xff] }
 0x371   :  { %9463 = vmatpush3.bf16.msra.mxu1 %v10235_v61  ;;  %9450 = vmatprep.mubr.msk.bf16.mxu1 %vm554_vm0, %v5340_v57 }
 0x372   :  { %9464 = vmatprep.subr.bf16.mxu1 %v10236_v33 }
 0x375   :  { %9465 = vmatpush3.bf16.msra.mxu1 %v10236_v33  ;;  %v5518_v33 = vpack.c.bf16 %v13674_v52, %v13673_v48 }
 0x376   :  { %9482 = vmatprep.subr.bf16.mxu1 %v10237_v44 }
 0x378   :  { %9451 = vmatmul.mubr.msk.bf16.gmra.mrb[4].mxu1 %vm554_vm0, %v5341_v30 }
 0x379   :  { %9454 = vmatprep.mubr.msk.bf16.mxu1 %vm554_vm0, %v5342_v32 }
 0x380   :  { %9455 = vmatmul.mubr.msk.bf16.gmra.mrb[8].mxu1 %vm554_vm0, %v5343_v7  ;;  %v12626_v7 = vld [vmem:[#allocation2 + $0xa3] sm:$0xff] }
 0x381   :  { %9458 = vmatprep.mubr.msk.bf16.mxu1 %vm554_vm0, %v5344_v55  ;;  %v12585_v11 = vpop.f32.mrb[144].mxu0 }
 0x382   :  { %13662 = vst [vmem:[#allocation20_spill] sm:$0xff] %v12585_v11  ;;  %v12587_v28 = vpop.f32.mrb[145].mxu0  ;;  %v13694_v11 = vld [vmem:[#allocation65_spill] sm:$0xff] }
 0x383   :  { %13663 = vst [vmem:[#allocation66_spill] sm:$0xff] %v12587_v28  ;;  %v12589_v47 = vpop.f32.mrb[146].mxu0  ;;  %v5686_v28 = vld [vmem:[#allocation2 + $0xf4] sm:$0xff] }
 0x384   :  { %13664 = vst [vmem:[#allocation69_spill] sm:$0xff] %v12589_v47  ;;  %v12593_v27 = vpop.f32.mrb[147].mxu0 }
 0x385   :  { %13665 = vst [vmem:[#allocation21_spill] sm:$0xff] %v12593_v27  ;;  %v13692_v27 = vld [vmem:[#allocation62_spill] sm:$0xff] }
 0x388   :  { %9459 = vmatmul.mubr.msk.bf16.gmra.mrb[12].mxu1 %vm554_vm0, %v5345_v45  ;;  %v13679_v45 = vld [vmem:[#allocation59_spill] sm:$0xff] }
 0x389   :  { %9466 = vmatprep.mubr.msk.bf16.mxu1 %vm554_vm0, %v5516_v24  ;;  %v12600_v61 = vpop.f32.mrb[148].mxu0  ;;  %v5520_v24 = vpack.c.bf16 %v13679_v45, %v5508_v35  ;;  %v5678_v35 = vld [vmem:[#allocation2 + $0x34] sm:$0xff] }
 0x38a   :  { %13667 = vst [vmem:[#allocation67_spill] sm:$0xff] %v12600_v61  ;;  %v12602_v10 = vpop.f32.mrb[149].mxu0 }
 0x38b   :  { %13668 = vst [vmem:[#allocation71_spill] sm:$0xff] %v12602_v10  ;;  %v12604_v12 = vpop.f32.mrb[150].mxu0 }
 0x38c   :  { %13669 = vst [vmem:[#allocation22_spill] sm:$0xff] %v12604_v12  ;;  %v12606_v4 = vpop.f32.mrb[151].mxu0  ;;  %v13687_v12 = vld [vmem:[#allocation18_spill] sm:$0xff] }
 0x38d   :  { %13670 = vst [vmem:[#allocation68_spill] sm:$0xff] %v12606_v4  ;;  %v13686_v4 = vld [vmem:[#allocation17_spill] sm:$0xff] }
 0x38e   :  { %v5522_v10 = vpack.c.bf16 %v13687_v12, %v13686_v4 }
 0x390   :  { %9467 = vmatmul.mubr.msk.bf16.vlgmr.msra.gmra.mrb[0].mxu1 %vm554_vm0, %v5517_v42 }
 0x391   :  { %9483 = vmatpush3.bf16.msra.mxu1 %v10237_v44  ;;  %9470 = vmatprep.mubr.msk.bf16.mxu1 %vm554_vm0, %v5518_v33  ;;  %v12617_v57 = vpop.f32.mrb[152].mxu0  ;;  %v5519_v44 = vpack.c.bf16 %v12626_v7, %v11995_v16 }
 0x392   :  { %13675 = vst [vmem:[#allocation72_spill] sm:$0xff] %v12617_v57  ;;  %v12619_v30 = vpop.f32.mrb[153].mxu0  ;;  %9484 = vmatprep.subr.bf16.mxu1 %v10238_v17 }
 0x393   :  { %13676 = vst [vmem:[#allocation101_spill] sm:$0xff] %v12619_v30  ;;  %v12624_v32 = vpop.f32.mrb[154].mxu0 }
 0x394   :  { %13677 = vst [vmem:[#allocation23_spill] sm:$0xff] %v12624_v32  ;;  %v12628_v55 = vpop.f32.mrb[155].mxu0 }
 0x395   :  { %13678 = vst [vmem:[#allocation70_spill] sm:$0xff] %v12628_v55  ;;  %9485 = vmatpush3.bf16.msra.mxu1 %v10238_v17  ;;  %v13684_v17 = vld [vmem:[#allocation99_spill] sm:$0xff] }
 0x396   :  { %9502 = vmatprep.subr.bf16.mxu1 %v10239_v2  ;;  %v13685_v55 = vld [vmem:[#allocation63_spill] sm:$0xff] }
 0x397   :  { %v5521_v57 = vpack.c.bf16 %v13685_v55, %v13684_v17 }
 0x398   :  { %9471 = vmatmul.mubr.msk.bf16.gmra.mrb[4].mxu1 %vm554_vm0, %v5519_v44  ;;  %v12649_v44 = vld [vmem:[#allocation2 + $0x163] sm:$0xff] }
 0x399   :  { %9474 = vmatprep.mubr.msk.bf16.mxu1 %vm554_vm0, %v5520_v24  ;;  %v12635_v42 = vpop.f32.mrb[156].mxu0  ;;  %v5523_v24 = vpack.c.bf16 %v12649_v44, %v12053_v50 }
 0x39a   :  { %13680 = vst [vmem:[#allocation73_spill] sm:$0xff] %v12635_v42  ;;  %v12637_v33 = vpop.f32.mrb[157].mxu0  ;;  %v13690_v42 = vld [vmem:[#allocation100_spill] sm:$0xff] }
 0x39b   :  { %13681 = vst [vmem:[#allocation24_spill] sm:$0xff] %v12637_v33  ;;  %v12639_v32 = vpop.f32.mrb[158].mxu0  ;;  %v13688_v33 = vld [vmem:[#allocation64_spill] sm:$0xff] }
 0x39c   :  { %13682 = vst [vmem:[#allocation74_spill] sm:$0xff] %v12639_v32  ;;  %v12641_v30 = vpop.f32.mrb[159].mxu0  ;;  %v5694_v32 = vpack.c.bf16 %v13688_v33, %v5678_v35  ;;  %v12668_v35 = vld [vmem:[#allocation2 + $0xa4] sm:$0xff] }
 0x39d   :  { %13683 = vst [vmem:[#allocation77_spill] sm:$0xff] %v12641_v30  ;;  %v13689_v30 = vld [vmem:[#allocation61_spill] sm:$0xff]  ;;  %13693 = vst [vmem:[#allocation25_spill] sm:$0xff] %v12668_v35 }
 0x39e   :  { %v5695_v61 = vpack.c.bf16 %v13690_v42, %v13689_v30 }
 0x3a0   :  { %9475 = vmatmul.mubr.msk.bf16.gmra.mrb[8].mxu1 %vm554_vm0, %v5521_v57  ;;  %v10240_v57 = vld [vmem:[%s13129_s3 + $0x148] sm:$0xff]  }
 0x3a1   :  { %9478 = vmatprep.mubr.msk.bf16.mxu1 %vm554_vm0, %v5522_v10  ;;  %v13691_v10 = vld [vmem:[#allocation19_spill] sm:$0xff] }
 0x3a2   :  { %v5696_v47 = vpack.c.bf16 %v13692_v27, %v13691_v10  ;;  %v5698_v27 = vpack.c.bf16 %v13694_v11, %v5686_v28  ;;  %v13696_v28 = vpack.c.bf16 %v13646_v20, %v13645_v21  ;;  %v5864_v21 = vld [vmem:[#allocation2 + $0xb0] sm:$0xff] }
 0x3a3   :  { %v5866_v20 = vld [vmem:[#allocation2 + $0x110] sm:$0xff] }
 0x3a8   :  { %9479 = vmatmul.mubr.msk.bf16.gmra.mrb[12].mxu1 %vm554_vm0, %v5523_v24  ;;  %v5697_v24 = vpack.c.bf16 %v12668_v35, %v12029_v18 }
 0x3a9   :  { %9486 = vmatprep.mubr.msk.bf16.mxu1 %vm554_vm0, %v5694_v32  ;;  %v10241_v32 = vld [vmem:[%s13129_s3 + $0x150] sm:$0xff]  }
 0x3b0   :  { %9487 = vmatmul.mubr.msk.bf16.vlgmr.msra.gmra.mrb[0].mxu1 %vm554_vm0, %v5695_v61  ;;  %v13695_v61 = vld [vmem:[#allocation60_spill] sm:$0xff] }
 0x3b1   :  { %9503 = vmatpush3.bf16.msra.mxu1 %v10239_v2  ;;  %9490 = vmatprep.mubr.msk.bf16.mxu1 %vm554_vm0, %v5696_v47  ;;  %v12675_v47 = vld [vmem:[#allocation2 + $0x124] sm:$0xff] }
 0x3b2   :  { %9504 = vmatprep.subr.bf16.mxu1 %v10240_v57  ;;  %v5699_v2 = vpack.c.bf16 %v12675_v47, %v13695_v61 }
 0x3b5   :  { %9505 = vmatpush3.bf16.msra.mxu1 %v10240_v57  ;;  %v12682_v57 = vld [vmem:[#allocation2 + $0x164] sm:$0xff] }
 0x3b6   :  { %9522 = vmatprep.subr.bf16.mxu1 %v10241_v32  ;;  %v5701_v35 = vpack.c.bf16 %v12682_v57, %v12487_v46 }
 0x3b8   :  { %9491 = vmatmul.mubr.msk.bf16.gmra.mrb[4].mxu1 %vm554_vm0, %v5697_v24  ;;  %v13697_v24 = vpack.c.bf16 %v13648_v1, %v13647_v58  ;;  %v5868_v58 = vld [vmem:[#allocation2 + $0x130] sm:$0xff]  ;;  %v5867_v1 = vld [vmem:[#allocation2 + $0x120] sm:$0xff] }
 0x3b9   :  { %9494 = vmatprep.mubr.msk.bf16.mxu1 %vm554_vm0, %v5698_v27  ;;  %v10242_v27 = vld [vmem:[%s13129_s3 + $0x158] sm:$0xff]  }
 0x3c0   :  { %9495 = vmatmul.mubr.msk.bf16.gmra.mrb[8].mxu1 %vm554_vm0, %v5699_v2  ;;  %v5865_v2 = vld [vmem:[#allocation2 + $0x100] sm:$0xff] }
 0x3c1   :  { %9498 = vmatprep.mubr.msk.bf16.mxu1 %vm554_vm0, %v12283_v3  ;;  %v10243_v3 = vld [vmem:[%s13129_s3 + $0x160] sm:$0xff]  }
 0x3c8   :  { %9499 = vmatmul.mubr.msk.bf16.gmra.mrb[12].mxu1 %vm554_vm0, %v5701_v35  ;;  %v5876_v35 = vpack.c.bf16 %v5864_v21, %v12506_v51  ;;  %v10244_v51 = vld [vmem:[%s13129_s3 + $0x168] sm:$0xff]  }
 0x3c9   :  { %9506 = vmatprep.mubr.msk.bf16.mxu1 %vm554_vm0, %v13696_v28  ;;  %v5877_v28 = vpack.c.bf16 %v5866_v20, %v5865_v2 }
 0x3d0   :  { %9507 = vmatmul.mubr.msk.bf16.vlgmr.msra.gmra.mrb[0].mxu1 %vm554_vm0, %v13697_v24  ;;  %v13698_v24 = vpack.c.bf16 %v13652_v25, %v11997_v31  ;;  %v13701_v31 = vpack.c.bf16 %v11977_v6, %v12003_v41  ;;  %v10246_v25 = vld [vmem:[%s13129_s3 + $0x178] sm:$0xff]   ;;  %v10247_v41 = vld [vmem:[%s13129_s3 + $0x180] sm:$0xff]  }
 0x3d1   :  { %9523 = vmatpush3.bf16.msra.mxu1 %v10241_v32  ;;  %9510 = vmatprep.mubr.msk.bf16.mxu1 %vm554_vm0, %v12323_v19  ;;  %v5878_v19 = vpack.c.bf16 %v5868_v58, %v5867_v1  ;;  %v5872_v32 = vld [vmem:[#allocation2 + $0x170] sm:$0xff]  ;;  %v13722_v58 = vld [vmem:[#allocation21_spill] sm:$0xff] }
 0x3d2   :  { %9524 = vmatprep.subr.bf16.mxu1 %v10242_v27  ;;  %v6220_v6 = vld [vmem:[#allocation2 + $0xb2] sm:$0xff] }
 0x3d5   :  { %9525 = vmatpush3.bf16.msra.mxu1 %v10242_v27  ;;  %v5880_v27 = vpack.c.bf16 %v5872_v32, %v12517_v23  ;;  %v6042_v23 = vld [vmem:[#allocation2 + $0xb1] sm:$0xff] }
 0x3d6   :  { %9542 = vmatprep.subr.bf16.mxu1 %v10243_v3 }
 0x3d8   :  { %9511 = vmatmul.mubr.msk.bf16.gmra.mrb[4].mxu1 %vm554_vm0, %v5876_v35  ;;  %v13721_v35 = vld [vmem:[#allocation69_spill] sm:$0xff] }
 0x3d9   :  { %9514 = vmatprep.mubr.msk.bf16.mxu1 %vm554_vm0, %v5877_v28 }
 0x3e0   :  { %9515 = vmatmul.mubr.msk.bf16.gmra.mrb[8].mxu1 %vm554_vm0, %v5878_v19 }
 0x3e1   :  { %9518 = vmatprep.mubr.msk.bf16.mxu1 %vm554_vm0, %v12349_v29  ;;  %v10245_v29 = vld [vmem:[%s13129_s3 + $0x170] sm:$0xff]  }
 0x3e8   :  { %9519 = vmatmul.mubr.msk.bf16.gmra.mrb[12].mxu1 %vm554_vm0, %v5880_v27 }
 0x3e9   :  { %9526 = vmatprep.mubr.msk.bf16.mxu1 %vm554_vm0, %v12365_v14  ;;  %v6054_v14 = vpack.c.bf16 %v6042_v23, %v12540_v22 }
 0x3f0   :  { %9527 = vmatmul.mubr.msk.bf16.vlgmr.msra.gmra.mrb[0].mxu1 %vm554_vm0, %v12376_v40  ;;  %v13699_v40 = vpack.c.bf16 %v13654_v60, %v13653_v26  ;;  %v13702_v26 = vpack.c.bf16 %v13657_v49, %v13656_v54  ;;  %v6232_v60 = vpack.c.bf16 %v6220_v6, %v12572_v59  ;;  %v6228_v54 = vld [vmem:[#allocation2 + $0x172] sm:$0xff] }
 0x3f1   :  { %9543 = vmatpush3.bf16.msra.mxu1 %v10243_v3  ;;  %9530 = vmatprep.mubr.msk.bf16.mxu1 %vm554_vm0, %v12392_v37  ;;  %v13700_v37 = vpack.c.bf16 %v11985_v39, %v13655_v43  ;;  %v6050_v3 = vld [vmem:[#allocation2 + $0x171] sm:$0xff]  ;;  %v13703_v39 = vpack.c.bf16 %v11975_v56, %v13658_v36  ;;  %v13704_v43 = vpack.c.bf16 %v12022_v63, %v12020_v0  ;;  %v10248_v63 = vld [vmem:[%s13129_s3 + $0x188] sm:$0xff]  }
 0x3f2   :  { %9544 = vmatprep.subr.bf16.mxu1 %v10244_v51  ;;  %v6058_v22 = vpack.c.bf16 %v6050_v3, %v12553_v15  ;;  %v13705_v56 = vpack.c.bf16 %v13660_v34, %v13659_v9  ;;  %v13706_v15 = vpack.c.bf16 %v12018_v8, %v13661_v53  ;;  %v6236_v49 = vpack.c.bf16 %v6228_v54, %v12591_v5  ;;  %v6398_v59 = vld [vmem:[#allocation2 + $0xb3] sm:$0xff] }
 0x3f3   :  { %v13707_v0 = vpack.c.bf16 %v13671_v13, %v13666_v62  ;;  %v13708_v36 = vpack.c.bf16 %v13673_v48, %v13672_v38  ;;  %v13709_v8 = vpack.c.bf16 %v11995_v16, %v13674_v52  ;;  %v6410_v9 = vpack.c.bf16 %v6398_v59, %v12626_v7  ;;  %v6406_v5 = vld [vmem:[#allocation2 + $0x173] sm:$0xff]  ;;  %v13715_v38 = vld [vmem:[#allocation62_spill] sm:$0xff] }
 0x3f4   :  { %v13710_v34 = vpack.c.bf16 %v13684_v17, %v13679_v45  ;;  %v13711_v53 = vpack.c.bf16 %v13686_v4, %v13685_v55  ;;  %v13712_v16 = vpack.c.bf16 %v12053_v50, %v13687_v12  ;;  %v6414_v62 = vpack.c.bf16 %v6406_v5, %v12649_v44  ;;  %v6576_v12 = vld [vmem:[#allocation2 + $0xb4] sm:$0xff]  ;;  %v6581_v45 = vld [vmem:[#allocation2 + $0x144] sm:$0xff] }
 0x3f5   :  { %9545 = vmatpush3.bf16.msra.mxu1 %v10244_v51  ;;  %v13713_v13 = vpack.c.bf16 %v13689_v30, %v13688_v33  ;;  %v13714_v4 = vpack.c.bf16 %v13691_v10, %v13690_v42  ;;  %v13716_v50 = vpack.c.bf16 %v12029_v18, %v13715_v38  ;;  %v13717_v48 = vld [vmem:[#allocation25_spill] sm:$0xff]  ;;  %v13718_v30 = vpack.c.bf16 %v13695_v61, %v13694_v11  ;;  %v10249_v11 = vld [vmem:[%s13131_s5 + $0x10] sm:$0xff]  }
 0x3f6   :  { %9562 = vmatprep.subr.bf16.mxu1 %v10245_v29  ;;  %v6588_v52 = vpack.c.bf16 %v6576_v12, %v13717_v48  ;;  %v6580_v7 = vld [vmem:[#allocation2 + $0x134] sm:$0xff]  ;;  %v6591_v42 = vpack.c.bf16 %v12487_v46, %v6581_v45  ;;  %v10312_v17 = vmov 0.0   ;;  %v13723_v51 = vld [vmem:[#allocation67_spill] sm:$0xff]  ;;  %v13730_v12 = vld [vmem:[#allocation70_spill] sm:$0xff] }
 0x3f7   :  { %v6590_v55 = vpack.c.bf16 %v6580_v7, %v12675_v47  ;;  %v6584_v18 = vld [vmem:[#allocation2 + $0x174] sm:$0xff]  ;;  %9602 = vmatprep.subr.bf16.mxu0 %v10312_v17  ;;  %9606 = vmatprep.mubr.msk.bf16.mxu0 %vm10313_vm2, %v10312_v17  ;;  %v13729_v38 = vld [vmem:[#allocation23_spill] sm:$0xff] }
 0x3f8   :  { %9531 = vmatmul.mubr.msk.bf16.gmra.mrb[4].mxu1 %vm554_vm0, %v6054_v14  ;;  %v6592_v33 = vpack.c.bf16 %v6584_v18, %v12682_v57  ;;  %9603 = vmatpush3.bf16.msra.mxu0 %v10249_v11  ;;  %v10250_v46 = vld [vmem:[%s13131_s5 + $0x18] sm:$0xff]   ;;  %v13720_v57 = vld [vmem:[#allocation66_spill] sm:$0xff] }
 0x3f9   :  { %9534 = vmatprep.mubr.msk.bf16.mxu1 %vm554_vm0, %v13698_v24  ;;  %9604 = vmatprep.subr.bf16.mxu0 %v10312_v17  ;;  %v13719_v10 = vld [vmem:[#allocation20_spill] sm:$0xff] }
 0x3fc   :  { %9605 = vmatpush3.bf16.msra.mxu0 %v10250_v46 }
 0x3fd   :  { %9610 = vmatprep.subr.bf16.mxu0 %v10312_v17 }
 0x400   :  { %9535 = vmatmul.mubr.msk.bf16.gmra.mrb[8].mxu1 %vm554_vm0, %v13699_v40  ;;  %v13724_v40 = vld [vmem:[#allocation71_spill] sm:$0xff] }
 0x401   :  { %9538 = vmatprep.mubr.msk.bf16.mxu1 %vm554_vm0, %v13700_v37 }
 0x408   :  { %9539 = vmatmul.mubr.msk.bf16.gmra.mrb[12].mxu1 %vm554_vm0, %v6058_v22  ;;  %v13725_v22 = vld [vmem:[#allocation22_spill] sm:$0xff] }
 0x409   :  { %9546 = vmatprep.mubr.msk.bf16.mxu1 %vm554_vm0, %v13701_v31 }
 0x410   :  { %9547 = vmatmul.mubr.msk.bf16.vlgmr.msra.gmra.mrb[0].mxu1 %vm554_vm0, %v13702_v26  ;;  %v13726_v26 = vld [vmem:[#allocation68_spill] sm:$0xff] }
 0x411   :  { %9563 = vmatpush3.bf16.msra.mxu1 %v10245_v29  ;;  %9550 = vmatprep.mubr.msk.bf16.mxu1 %vm554_vm0, %v13703_v39 }
 0x412   :  { %9564 = vmatprep.subr.bf16.mxu1 %v10246_v25 }
 0x415   :  { %9565 = vmatpush3.bf16.msra.mxu1 %v10246_v25 }
 0x416   :  { %9582 = vmatprep.subr.bf16.mxu1 %v10247_v41 }
 0x418   :  { %9551 = vmatmul.mubr.msk.bf16.gmra.mrb[4].mxu1 %vm554_vm0, %v6232_v60 }
 0x419   :  { %9554 = vmatprep.mubr.msk.bf16.mxu1 %vm554_vm0, %v13704_v43 }
 0x420   :  { %9555 = vmatmul.mubr.msk.bf16.gmra.mrb[8].mxu1 %vm554_vm0, %v13705_v56  ;;  %v12850_v56 = vld [vmem:[%s13130_s4] ss:$0 sm:$0xff] }
 0x421   :  { %9558 = vmatprep.mubr.msk.bf16.mxu1 %vm554_vm0, %v13706_v15 }
 0x428   :  { %9559 = vmatmul.mubr.msk.bf16.gmra.mrb[12].mxu1 %vm554_vm0, %v6236_v49 }
 0x429   :  { %9566 = vmatprep.mubr.msk.bf16.mxu1 %vm554_vm0, %v13707_v0 }
 0x430   :  { %9567 = vmatmul.mubr.msk.bf16.vlgmr.msra.gmra.mrb[0].mxu1 %vm554_vm0, %v13708_v36 }
 0x431   :  { %9583 = vmatpush3.bf16.msra.mxu1 %v10247_v41  ;;  %9570 = vmatprep.mubr.msk.bf16.mxu1 %vm554_vm0, %v13709_v8 }
 0x432   :  { %9584 = vmatprep.subr.bf16.mxu1 %v10248_v63 }
 0x435   :  { %9585 = vmatpush3.bf16.msra.mxu1 %v10248_v63  ;;  %v13727_v63 = vld [vmem:[#allocation72_spill] sm:$0xff] }
 0x438   :  { %9571 = vmatmul.mubr.msk.bf16.gmra.mrb[4].mxu1 %vm554_vm0, %v6410_v9 }
 0x439   :  { %9574 = vmatprep.mubr.msk.bf16.mxu1 %vm554_vm0, %v13710_v34 }
 0x440   :  { %9575 = vmatmul.mubr.msk.bf16.gmra.mrb[8].mxu1 %vm554_vm0, %v13711_v53  ;;  %v13728_v53 = vld [vmem:[#allocation101_spill] sm:$0xff] }
 0x441   :  { %9578 = vmatprep.mubr.msk.bf16.mxu1 %vm554_vm0, %v13712_v16 }
 0x448   :  { %9579 = vmatmul.mubr.msk.bf16.gmra.mrb[12].mxu1 %vm554_vm0, %v6414_v62 }
 0x449   :  { %9586 = vmatprep.mubr.msk.bf16.mxu1 %vm554_vm0, %v13713_v13 }
 0x450   :  { %9587 = vmatmul.mubr.msk.bf16.vlgmr.msra.gmra.mrb[0].mxu1 %vm554_vm0, %v13714_v4 }
 0x451   :  { %9590 = vmatprep.mubr.msk.bf16.mxu1 %vm554_vm0, %v13716_v50 }
 0x458   :  { %9591 = vmatmul.mubr.msk.bf16.gmra.mrb[4].mxu1 %vm554_vm0, %v6588_v52 }
 0x459   :  { %9594 = vmatprep.mubr.msk.bf16.mxu1 %vm554_vm0, %v13718_v30 }
 0x460   :  { %9595 = vmatmul.mubr.msk.bf16.gmra.mrb[8].mxu1 %vm554_vm0, %v6590_v55 }
 0x461   :  { %9598 = vmatprep.mubr.msk.bf16.mxu1 %vm554_vm0, %v6591_v42 }
 0x468   :  { %9599 = vmatmul.mubr.msk.bf16.gmra.mrb[12].mxu1 %vm554_vm0, %v6592_v33  ;;  %v13731_v33 = vld [vmem:[#allocation73_spill] sm:$0xff] }
 0x523   :  { %v9588_v44 = vpop.f32.mrb[0].mxu1 }
 0x524   :  { %v9738_v47 = vadd.f32 %v9588_v44, %v13719_v10  ;;  %v6668_v61 = vpop.f32.mrb[1].mxu1 }
 0x525   :  { %v9739_v21 = vadd.f32 %v6668_v61, %v13720_v57  ;;  %v9589_v20 = vpop.f32.mrb[2].mxu1 }
 0x526   :  { %v9740_v2 = vadd.f32 %v9589_v20, %v13721_v35  ;;  %v6671_v28 = vpop.f32.mrb[3].mxu1 }
 0x527   :  { %v9741_v1 = vadd.f32 %v6671_v28, %v13722_v58  ;;  %v13733_v58 = vld [vmem:[#allocation74_spill] sm:$0xff] }
 0x528   :  { %v6748_v19 = vmax.f32 %v9738_v47, %v9740_v2  ;;  %v13732_v47 = vld [vmem:[#allocation24_spill] sm:$0xff] }
 0x529   :  { %v6747_v32 = vmax.f32 %v9739_v21, %v9741_v1 }
 0x52a   :  { %v7039_v14 = vrot.slane %v6748_v19, 1 }
 0x52b   :  { %v9592_v27 = vpop.f32.mrb[4].mxu1  ;;  %v6757_v24 = vrot.slane %v6747_v32, 1 }
 0x52c   :  { %v9742_v29 = vadd.f32 %v9592_v27, %v13723_v51  ;;  %v6684_v23 = vpop.f32.mrb[5].mxu1  ;;  %v7043_v6 = vmax.f32 %v6748_v19, %v7039_v14  ;;  %v13734_v19 = vld [vmem:[#allocation77_spill] sm:$0xff] }
 0x52d   :  { %v9743_v37 = vadd.f32 %v6684_v23, %v13724_v40  ;;  %v9593_v3 = vpop.f32.mrb[6].mxu1  ;;  %v6761_v60 = vmax.f32 %v6747_v32, %v6757_v24 }
 0x52e   :  { %v9744_v31 = vadd.f32 %v9593_v3, %v13725_v22  ;;  %v6687_v25 = vpop.f32.mrb[7].mxu1  ;;  %v7045_v59 = vadd.f32 %v12850_v56, %v7043_v6 }
 0x52f   :  { %v9745_v39 = vadd.f32 %v6687_v25, %v13726_v26  ;;  %v6770_v9 = vadd.f32 %v12850_v56, %v6761_v60 }
 0x530   :  { %v6750_v41 = vmax.f32 %v9742_v29, %v9744_v31  ;;  %v7047_v52 = vmax.f32 %v7045_v59, 0.0 }
 0x531   :  { %v6749_v43 = vmax.f32 %v9743_v37, %v9745_v39  ;;  %v6772_v30 = vmax.f32 %v6770_v9, 0.0 }
 0x532   :  { %v7593_v15 = vrot.slane %v6750_v41, 1  ;;  %v7049_v44 = vpack.c.bf16 %v7047_v52, %v7047_v52 }
 0x533   :  { %v7316_v54 = vrot.slane %v6749_v43, 1  ;;  %v9596_v49 = vpop.f32.mrb[8].mxu1  ;;  %v6774_v10 = vpack.c.bf16 %v6772_v30, %v6772_v30 }
 0x534   :  { %v7597_v0 = vmax.f32 %v6750_v41, %v7593_v15  ;;  %v9746_v36 = vadd.f32 %v9596_v49, %v13727_v63  ;;  %v6700_v8 = vpop.f32.mrb[9].mxu1  ;;  %v7058_v27 = vunpack.c.l.b16 %v7049_v44 }
 0x535   :  { %v7320_v34 = vmax.f32 %v6749_v43, %v7316_v54  ;;  %v9747_v16 = vadd.f32 %v6700_v8, %v13728_v53  ;;  %v9597_v5 = vpop.f32.mrb[10].mxu1  ;;  %v6787_v51 = vunpack.c.l.b16 %v6774_v10 }
 0x536   :  { %v7599_v62 = vadd.f32 %v12850_v56, %v7597_v0  ;;  %v6703_v13 = vpop.f32.mrb[11].mxu1  ;;  %v9748_v50 = vadd.f32 %v9597_v5, %v13729_v38  ;;  %v7124_v26 = vrot.slane %v7058_v27, 2  ;;  %v7189_v39 = vrot.slane %v7058_v27, 4 }
 0x537   :  { %v7322_v4 = vadd.f32 %v12850_v56, %v7320_v34  ;;  %v9749_v48 = vadd.f32 %v6703_v13, %v13730_v12  ;;  %v6789_v41 = vrot.slane %v6787_v51, 2  ;;  %v6912_v60 = vrot.slane %v6787_v51, 4 }
 0x538   :  { %v6752_v7 = vmax.f32 %v9746_v36, %v9748_v50  ;;  %v7601_v35 = vmax.f32 %v7599_v62, 0.0  ;;  %v6977_v49 = vrot.slane %v6787_v51, 6 }
 0x539   :  { %v6751_v55 = vmax.f32 %v9747_v16, %v9749_v48  ;;  %v7324_v37 = vmax.f32 %v7322_v4, 0.0  ;;  %v10251_v48 = vld [vmem:[%s13131_s5] sm:$0xff]  }
 0x53a   :  { %v7040_v42 = vrot.slane %v6752_v7, 1  ;;  %v7603_v40 = vpack.c.bf16 %v7601_v35, %v7601_v35 }
 0x53b   :  { %v9600_v45 = vpop.f32.mrb[12].mxu1  ;;  %v6758_v18 = vrot.slane %v6751_v55, 1  ;;  %v7326_v63 = vpack.c.bf16 %v7324_v37, %v7324_v37 }
 0x53c   :  { %v9750_v11 = vadd.f32 %v9600_v45, %v13731_v33  ;;  %v6716_v46 = vpop.f32.mrb[13].mxu1  ;;  %v7044_v21 = vmax.f32 %v6752_v7, %v7040_v42  ;;  %v7612_v0 = vunpack.c.l.b16 %v7603_v40 }
 0x53d   :  { %v9751_v61 = vadd.f32 %v6716_v46, %v13732_v47  ;;  %v9601_v57 = vpop.f32.mrb[14].mxu1  ;;  %v6762_v2 = vmax.f32 %v6751_v55, %v6758_v18  ;;  %v7254_v55 = vrot.slane %v7058_v27, 6  ;;  %v7335_v18 = vunpack.c.l.b16 %v7326_v63  ;;  %v10252_v47 = vld [vmem:[%s13131_s5 + $0x8] sm:$0xff]  }
 0x53e   :  { %v6719_v20 = vpop.f32.mrb[15].mxu1  ;;  %v7046_v28 = vadd.f32 %v12850_v56, %v7044_v21  ;;  %v9752_v1 = vadd.f32 %v9601_v57, %v13733_v58  ;;  %v7678_v10 = vrot.slane %v7612_v0, 2  ;;  %v7808_v57 = vrot.slane %v7612_v0, 6 }
 0x53f   :  { %v9753_v32 = vadd.f32 %v6719_v20, %v13734_v19  ;;  %v6771_v29 = vadd.f32 %v12850_v56, %v6762_v2  ;;  %v7401_v35 = vrot.slane %v7335_v18, 2  ;;  %v7466_v2 = vrot.slane %v7335_v18, 4 }
 0x540   :  { %v7048_v23 = vmax.f32 %v7046_v28, 0.0  ;;  %v6754_v14 = vmax.f32 %v9750_v11, %v9752_v1  ;;  %v7531_v28 = vrot.slane %v7335_v18, 6 }
 0x541   :  { %v6753_v24 = vmax.f32 %v9751_v61, %v9753_v32  ;;  %v6773_v3 = vmax.f32 %v6771_v29, 0.0  ;;  %v7743_v61 = vrot.slane %v7612_v0, 4 }
 0x542   :  { %v7050_v22 = vpack.c.bf16 %v7048_v23, %v7048_v23  ;;  %v7594_v31 = vrot.slane %v6754_v14, 1 }
 0x543   :  { %v7317_v25 = vrot.slane %v6753_v24, 1  ;;  %v6775_v6 = vpack.c.bf16 %v6773_v3, %v6773_v3 }
 0x544   :  { %v7059_v43 = vunpack.c.l.b16 %v7050_v22  ;;  %v7598_v15 = vmax.f32 %v6754_v14, %v7594_v31 }
 0x545   :  { %v7321_v54 = vmax.f32 %v6753_v24, %v7317_v25  ;;  %v6788_v36 = vunpack.c.l.b16 %v6775_v6  ;;  %v10253_v24 = vld [vmem:[%s13131_s5 + $0x20] sm:$0xff]   ;;  %v10255_v6 = vld [vmem:[%s13131_s5 + $0x30] sm:$0xff]  }
 0x546   :  { %v7060_v8 = vrot.slane %v7059_v43, 7  ;;  %v7125_v59 = vrot.slane %v7059_v43, 1  ;;  %v7190_v9 = vrot.slane %v7059_v43, 3  ;;  %v7255_v34 = vrot.slane %v7059_v43, 5  ;;  %v10256_v43 = vld [vmem:[%s13131_s5 + $0x38] sm:$0xff]  }
 0x547   :  { %v6790_v53 = vrot.slane %v6788_v36, 1  ;;  %v6849_v16 = vrot.slane %v6788_v36, 7  ;;  %v6913_v5 = vrot.slane %v6788_v36, 3  ;;  %v6978_v62 = vrot.slane %v6788_v36, 5  ;;  %v10260_v36 = vld [vmem:[%s13131_s5 + $0x58] sm:$0xff]  }
 0x548   :  { %v7600_v13 = vadd.f32 %v12850_v56, %v7598_v15  ;;  %v7323_v4 = vadd.f32 %v12850_v56, %v7321_v54  ;;  %v12869_v38 = vsel %vm6791_vm3, %v7060_v8, %v7058_v27  ;;  %v12872_v50 = vsel %vm6791_vm3, %v7125_v59, %v7124_v26  ;;  %v10257_v15 = vld [vmem:[%s13131_s5 + $0x40] sm:$0xff]  }
 0x549   :  { %v6792_v12 = vsel %vm6791_vm3, %v6790_v53, %v6789_v41  ;;  %v6850_v52 = vsel %vm6791_vm3, %v6849_v16, %v6787_v51  ;;  %v6914_v30 = vsel %vm6791_vm3, %v6913_v5, %v6912_v60  ;;  %v6979_v7 = vsel %vm6791_vm3, %v6978_v62, %v6977_v49  ;;  %v10254_v41 = vld [vmem:[%s13131_s5 + $0x28] sm:$0xff]   ;;  %v10261_v8 = vld [vmem:[%s13131_s5 + $0x60] sm:$0xff]   ;;  %v10264_v16 = vld [vmem:[%s13131_s5 + $0x78] sm:$0xff]  }
 0x54a   :  { %v7602_v56 = vmax.f32 %v7600_v13, 0.0  ;;  %v7325_v45 = vmax.f32 %v7323_v4, 0.0  ;;  %v6793_v42 = vpack.c.b16 %v6792_v12, %v6792_v12  ;;  %v12883_v46 = vsel %vm6791_vm3, %v7190_v9, %v7189_v39  ;;  %v10258_v49 = vld [vmem:[%s13131_s5 + $0x48] sm:$0xff]   ;;  %v10265_v5 = vld [vmem:[%s13131_s5 + $0x80] sm:$0xff]   ;;  %v10267_v4 = vld [vmem:[%s13131_s5 + $0x90] sm:$0xff]  }
 0x54b   :  { %v12886_v44 = vsel %vm6791_vm3, %v7255_v34, %v7254_v55  ;;  %v6851_v58 = vpack.c.b16 %v6850_v52, %v6850_v52  ;;  %v6915_v60 = vpack.c.b16 %v6914_v30, %v6914_v30  ;;  %v6980_v54 = vpack.c.b16 %v6979_v7, %v6979_v7  ;;  %v10262_v9 = vld [vmem:[%s13131_s5 + $0x68] sm:$0xff]   ;;  %v10263_v34 = vld [vmem:[%s13131_s5 + $0x70] sm:$0xff]   ;;  %v10269_v12 = vld [vmem:[%s13131_s5 + $0xa0] sm:$0xff]  }
 0x54c   :  { %v7604_v33 = vpack.c.bf16 %v7602_v56, %v7602_v56  ;;  %v7327_v11 = vpack.c.bf16 %v7325_v45, %v7325_v45  ;;  %9607 = vmatmul.mubr.msk.bf16.vlgmr.msra.gmra.mrb[160].mxu0 %vm554_vm0, %v6793_v42  ;;  %v7062_v63 = vpack.c.b16 %v12869_v38, %v12869_v38  ;;  %v7127_v59 = vpack.c.b16 %v12872_v50, %v12872_v50  ;;  %v10266_v13 = vld [vmem:[%s13131_s5 + $0x88] sm:$0xff]   ;;  %v10268_v50 = vld [vmem:[%s13131_s5 + $0x98] sm:$0xff]   ;;  %v10271_v30 = vld [vmem:[%s13131_s5 + $0xb0] sm:$0xff]  }
 0x54d   :  { %9611 = vmatpush3.bf16.msra.mxu0 %v10251_v48  ;;  %9614 = vmatprep.mubr.msk.bf16.mxu0 %vm10313_vm2, %v10312_v17  ;;  %v7192_v53 = vpack.c.b16 %v12883_v46, %v12883_v46  ;;  %v7257_v62 = vpack.c.b16 %v12886_v44, %v12886_v44  ;;  %v10270_v52 = vld [vmem:[%s13131_s5 + $0xa8] sm:$0xff]   ;;  %v10272_v55 = vld [vmem:[%s13131_s5 + $0xb8] sm:$0xff]   ;;  %v10273_v56 = vld [vmem:[%s13131_s5 + $0xc0] sm:$0xff]  }
 0x54e   :  { %v7613_v21 = vunpack.c.l.b16 %v7604_v33  ;;  %v7336_v20 = vunpack.c.l.b16 %v7327_v11  ;;  %9612 = vmatprep.subr.bf16.mxu0 %v10312_v17  ;;  %v10274_v42 = vld [vmem:[%s13131_s5 + $0xc8] sm:$0xff]   ;;  %v10276_v11 = vld [vmem:[%s13131_s5 + $0xd8] sm:$0xff]   ;;  %v10277_v46 = vld [vmem:[%s13131_s5 + $0xe0] sm:$0xff]  }
 0x550   :  { %v7614_v1 = vrot.slane %v7613_v21, 7  ;;  %v7679_v19 = vrot.slane %v7613_v21, 1  ;;  %v7744_v32 = vrot.slane %v7613_v21, 3  ;;  %v7809_v27 = vrot.slane %v7613_v21, 5 }
 0x551   :  { %v7337_v51 = vrot.slane %v7336_v20, 7  ;;  %v7402_v29 = vrot.slane %v7336_v20, 1  ;;  %v7467_v23 = vrot.slane %v7336_v20, 3  ;;  %v7532_v14 = vrot.slane %v7336_v20, 5  ;;  %9613 = vmatpush3.bf16.msra.mxu0 %v10252_v47  ;;  %v10279_v47 = vld [vmem:[%s13131_s5 + $0xf0] sm:$0xff]   ;;  %v10281_v20 = vld [vmem:[%s13133_s7] sm:$0xff]  }
 0x552   :  { %9618 = vmatprep.subr.bf16.mxu0 %v10312_v17  ;;  %v12899_v40 = vsel %vm6791_vm3, %v7614_v1, %v7612_v0  ;;  %v12902_v37 = vsel %vm6791_vm3, %v7679_v19, %v7678_v10  ;;  %v12905_v3 = vsel %vm6791_vm3, %v7744_v32, %v7743_v61  ;;  %v12908_v22 = vsel %vm6791_vm3, %v7809_v27, %v7808_v57  ;;  %v10259_v0 = vld [vmem:[%s13131_s5 + $0x50] sm:$0xff]   ;;  %v10278_v10 = vld [vmem:[%s13131_s5 + $0xe8] sm:$0xff]   ;;  %v10280_v57 = vld [vmem:[%s13131_s5 + $0xf8] sm:$0xff]  }
 0x553   :  { %v12911_v31 = vsel %vm6791_vm3, %v7337_v51, %v7335_v18  ;;  %v12914_v25 = vsel %vm6791_vm3, %v7402_v29, %v7401_v35  ;;  %v12917_v26 = vsel %vm6791_vm3, %v7467_v23, %v7466_v2  ;;  %v12920_v39 = vsel %vm6791_vm3, %v7532_v14, %v7531_v28  ;;  %v10275_v18 = vld [vmem:[%s13131_s5 + $0xd0] sm:$0xff]   ;;  %v10282_v28 = vld [vmem:[%s13133_s7 + $0x8] sm:$0xff]  }
 0x554   :  { %9615 = vmatmul.mubr.msk.bf16.vlgmr.msra.gmra.mrb[164].mxu0 %vm554_vm0, %v6851_v58  ;;  %v7339_v38 = vpack.c.b16 %v12911_v31, %v12911_v31  ;;  %v7404_v48 = vpack.c.b16 %v12914_v25, %v12914_v25  ;;  %v7469_v7 = vpack.c.b16 %v12917_v26, %v12917_v26  ;;  %v7534_v45 = vpack.c.b16 %v12920_v39, %v12920_v39 }
 0x555   :  { %9619 = vmatpush3.bf16.msra.mxu0 %v10253_v24  ;;  %9622 = vmatprep.mubr.msk.bf16.mxu0 %vm10313_vm2, %v10312_v17  ;;  %v7616_v33 = vpack.c.b16 %v12899_v40, %v12899_v40  ;;  %v7681_v44 = vpack.c.b16 %v12902_v37, %v12902_v37  ;;  %v7746_v61 = vpack.c.b16 %v12905_v3, %v12905_v3 }
 0x556   :  { %9620 = vmatprep.subr.bf16.mxu0 %v10312_v17  ;;  %v7811_v21 = vpack.c.b16 %v12908_v22, %v12908_v22 }
 0x559   :  { %9621 = vmatpush3.bf16.msra.mxu0 %v10254_v41 }
 0x55a   :  { %9626 = vmatprep.subr.bf16.mxu0 %v10312_v17 }
 0x55c   :  { %9623 = vmatmul.mubr.msk.bf16.vlgmr.msra.gmra.mrb[168].mxu0 %vm554_vm0, %v6915_v60 }
 0x55d   :  { %9627 = vmatpush3.bf16.msra.mxu0 %v10255_v6  ;;  %9630 = vmatprep.mubr.msk.bf16.mxu0 %vm10313_vm2, %v10312_v17 }
 0x55e   :  { %9628 = vmatprep.subr.bf16.mxu0 %v10312_v17 }
 0x561   :  { %9629 = vmatpush3.bf16.msra.mxu0 %v10256_v43 }
 0x562   :  { %9634 = vmatprep.subr.bf16.mxu0 %v10312_v17 }
 0x564   :  { %9631 = vmatmul.mubr.msk.bf16.vlgmr.msra.gmra.mrb[172].mxu0 %vm554_vm0, %v6980_v54 }
 0x565   :  { %9635 = vmatpush3.bf16.msra.mxu0 %v10257_v15  ;;  %9638 = vmatprep.mubr.msk.bf16.mxu0 %vm10313_vm2, %v10312_v17 }
 0x566   :  { %9636 = vmatprep.subr.bf16.mxu0 %v10312_v17 }
 0x569   :  { %9637 = vmatpush3.bf16.msra.mxu0 %v10258_v49 }
 0x56a   :  { %9642 = vmatprep.subr.bf16.mxu0 %v10312_v17 }
 0x56c   :  { %9639 = vmatmul.mubr.msk.bf16.vlgmr.msra.gmra.mrb[176].mxu0 %vm554_vm0, %v7062_v63 }
 0x56d   :  { %9643 = vmatpush3.bf16.msra.mxu0 %v10259_v0  ;;  %9646 = vmatprep.mubr.msk.bf16.mxu0 %vm10313_vm2, %v10312_v17 }
 0x56e   :  { %9644 = vmatprep.subr.bf16.mxu0 %v10312_v17 }
 0x571   :  { %9645 = vmatpush3.bf16.msra.mxu0 %v10260_v36 }
 0x572   :  { %9650 = vmatprep.subr.bf16.mxu0 %v10312_v17 }
 0x574   :  { %9647 = vmatmul.mubr.msk.bf16.vlgmr.msra.gmra.mrb[180].mxu0 %vm554_vm0, %v7127_v59 }
 0x575   :  { %9651 = vmatpush3.bf16.msra.mxu0 %v10261_v8  ;;  %9654 = vmatprep.mubr.msk.bf16.mxu0 %vm10313_vm2, %v10312_v17 }
 0x576   :  { %9652 = vmatprep.subr.bf16.mxu0 %v10312_v17 }
 0x579   :  { %9653 = vmatpush3.bf16.msra.mxu0 %v10262_v9 }
 0x57a   :  { %9658 = vmatprep.subr.bf16.mxu0 %v10312_v17 }
 0x57c   :  { %9655 = vmatmul.mubr.msk.bf16.vlgmr.msra.gmra.mrb[184].mxu0 %vm554_vm0, %v7192_v53 }
 0x57d   :  { %9659 = vmatpush3.bf16.msra.mxu0 %v10263_v34  ;;  %9662 = vmatprep.mubr.msk.bf16.mxu0 %vm10313_vm2, %v10312_v17 }
 0x57e   :  { %9660 = vmatprep.subr.bf16.mxu0 %v10312_v17 }
 0x581   :  { %9661 = vmatpush3.bf16.msra.mxu0 %v10264_v16 }
 0x582   :  { %9666 = vmatprep.subr.bf16.mxu0 %v10312_v17 }
 0x584   :  { %9663 = vmatmul.mubr.msk.bf16.vlgmr.msra.gmra.mrb[188].mxu0 %vm554_vm0, %v7257_v62 }
 0x585   :  { %9667 = vmatpush3.bf16.msra.mxu0 %v10265_v5  ;;  %9670 = vmatprep.mubr.msk.bf16.mxu0 %vm10313_vm2, %v10312_v17 }
 0x586   :  { %9668 = vmatprep.subr.bf16.mxu0 %v10312_v17 }
 0x589   :  { %9669 = vmatpush3.bf16.msra.mxu0 %v10266_v13 }
 0x58a   :  { %9674 = vmatprep.subr.bf16.mxu0 %v10312_v17 }
 0x58c   :  { %9671 = vmatmul.mubr.msk.bf16.vlgmr.msra.gmra.mrb[192].mxu0 %vm554_vm0, %v7339_v38 }
 0x58d   :  { %9675 = vmatpush3.bf16.msra.mxu0 %v10267_v4  ;;  %9678 = vmatprep.mubr.msk.bf16.mxu0 %vm10313_vm2, %v10312_v17 }
 0x58e   :  { %9676 = vmatprep.subr.bf16.mxu0 %v10312_v17 }
 0x591   :  { %9677 = vmatpush3.bf16.msra.mxu0 %v10268_v50 }
 0x592   :  { %9682 = vmatprep.subr.bf16.mxu0 %v10312_v17 }
 0x594   :  { %9679 = vmatmul.mubr.msk.bf16.vlgmr.msra.gmra.mrb[196].mxu0 %vm554_vm0, %v7404_v48 }
 0x595   :  { %9683 = vmatpush3.bf16.msra.mxu0 %v10269_v12  ;;  %9686 = vmatprep.mubr.msk.bf16.mxu0 %vm10313_vm2, %v10312_v17 }
 0x596   :  { %9684 = vmatprep.subr.bf16.mxu0 %v10312_v17 }
 0x599   :  { %9685 = vmatpush3.bf16.msra.mxu0 %v10270_v52 }
 0x59a   :  { %9690 = vmatprep.subr.bf16.mxu0 %v10312_v17 }
 0x59c   :  { %9687 = vmatmul.mubr.msk.bf16.vlgmr.msra.gmra.mrb[200].mxu0 %vm554_vm0, %v7469_v7 }
 0x59d   :  { %9691 = vmatpush3.bf16.msra.mxu0 %v10271_v30  ;;  %9694 = vmatprep.mubr.msk.bf16.mxu0 %vm10313_vm2, %v10312_v17 }
 0x59e   :  { %9692 = vmatprep.subr.bf16.mxu0 %v10312_v17 }
 0x5a1   :  { %9693 = vmatpush3.bf16.msra.mxu0 %v10272_v55 }
 0x5a2   :  { %9698 = vmatprep.subr.bf16.mxu0 %v10312_v17 }
 0x5a4   :  { %9695 = vmatmul.mubr.msk.bf16.vlgmr.msra.gmra.mrb[204].mxu0 %vm554_vm0, %v7534_v45 }
 0x5a5   :  { %9699 = vmatpush3.bf16.msra.mxu0 %v10273_v56  ;;  %9702 = vmatprep.mubr.msk.bf16.mxu0 %vm10313_vm2, %v10312_v17 }
 0x5a6   :  { %9700 = vmatprep.subr.bf16.mxu0 %v10312_v17 }
 0x5a9   :  { %9701 = vmatpush3.bf16.msra.mxu0 %v10274_v42 }
 0x5aa   :  { %9706 = vmatprep.subr.bf16.mxu0 %v10312_v17 }
 0x5ac   :  { %9703 = vmatmul.mubr.msk.bf16.vlgmr.msra.gmra.mrb[208].mxu0 %vm554_vm0, %v7616_v33 }
 0x5ad   :  { %9707 = vmatpush3.bf16.msra.mxu0 %v10275_v18  ;;  %9710 = vmatprep.mubr.msk.bf16.mxu0 %vm10313_vm2, %v10312_v17 }
 0x5ae   :  { %9708 = vmatprep.subr.bf16.mxu0 %v10312_v17 }
 0x5b1   :  { %9709 = vmatpush3.bf16.msra.mxu0 %v10276_v11 }
 0x5b2   :  { %9714 = vmatprep.subr.bf16.mxu0 %v10312_v17 }
 0x5b4   :  { %9711 = vmatmul.mubr.msk.bf16.vlgmr.msra.gmra.mrb[212].mxu0 %vm554_vm0, %v7681_v44 }
 0x5b5   :  { %9715 = vmatpush3.bf16.msra.mxu0 %v10277_v46  ;;  %9718 = vmatprep.mubr.msk.bf16.mxu0 %vm10313_vm2, %v10312_v17 }
 0x5b6   :  { %9716 = vmatprep.subr.bf16.mxu0 %v10312_v17 }
 0x5b9   :  { %9717 = vmatpush3.bf16.msra.mxu0 %v10278_v10 }
 0x5ba   :  { %9722 = vmatprep.subr.bf16.mxu0 %v10312_v17 }
 0x5bc   :  { %9719 = vmatmul.mubr.msk.bf16.vlgmr.msra.gmra.mrb[216].mxu0 %vm554_vm0, %v7746_v61 }
 0x5bd   :  { %9723 = vmatpush3.bf16.msra.mxu0 %v10279_v47  ;;  %9726 = vmatprep.mubr.msk.bf16.mxu0 %vm10313_vm2, %v10312_v17 }
 0x5be   :  { %9724 = vmatprep.subr.bf16.mxu0 %v10312_v17 }
 0x5c1   :  { %9725 = vmatpush3.bf16.msra.mxu0 %v10280_v57 }
 0x5c2   :  { %9730 = vmatprep.subr.bf16.mxu0 %v10312_v17 }
 0x5c4   :  { %9727 = vmatmul.mubr.msk.bf16.vlgmr.msra.gmra.mrb[220].mxu0 %vm554_vm0, %v7811_v21 }
 0x5c5   :  { %9734 = vmatprep.mubr.msk.bf16.mxu0 %vm10313_vm2, %v10312_v17  ;;  %9731 = vmatpush3.bf16.msra.mxu0 %v10281_v20 }
 0x5c6   :  { %9732 = vmatprep.subr.bf16.mxu0 %v10312_v17 }
 0x5c9   :  { %9733 = vmatpush3.bf16.msra.mxu0 %v10282_v28 }
 0x61f   :  { %v6843_v35 = vpop.f32.mrb[160].mxu0 }
 0x620   :  { %v9608_v2 = vpop.f32.mrb[161].mxu0 }
 0x621   :  { %v6846_v58 = vpop.f32.mrb[162].mxu0 }
 0x622   :  { %v9609_v1 = vpop.f32.mrb[163].mxu0 }
 0x627   :  { %v6901_v19 = vpop.f32.mrb[164].mxu0 }
 0x628   :  { %v6902_v32 = vadd.f32 %v6901_v19, %v6843_v35  ;;  %v9616_v27 = vpop.f32.mrb[165].mxu0 }
 0x629   :  { %v6904_v51 = vpop.f32.mrb[166].mxu0 }
 0x62a   :  { %v9617_v29 = vpop.f32.mrb[167].mxu0 }
 0x62f   :  { %v6965_v23 = vpop.f32.mrb[168].mxu0 }
 0x630   :  { %v6971_v14 = vadd.f32 %v6965_v23, %v6902_v32  ;;  %v9624_v24 = vpop.f32.mrb[169].mxu0 }
 0x631   :  { %v6968_v40 = vpop.f32.mrb[170].mxu0  ;;  %v8574_v24 = vld [vmem:[%s13132_s6] ss:$0 sm:$0xff]  ;;  %s10314_s6 = smov [#allocation3]  }
 0x632   :  { %v9625_v37 = vpop.f32.mrb[171].mxu0 }
 0x637   :  { %v7030_v3 = vpop.f32.mrb[172].mxu0 }
 0x638   :  { %v7036_v22 = vadd.f32 %v7030_v3, %v6971_v14  ;;  %v9632_v31 = vpop.f32.mrb[173].mxu0 }
 0x639   :  { %v7033_v25 = vpop.f32.mrb[174].mxu0 }
 0x63a   :  { %v9633_v26 = vpop.f32.mrb[175].mxu0 }
 0x63f   :  { %v7112_v39 = vpop.f32.mrb[176].mxu0 }
 0x640   :  { %v7118_v41 = vadd.f32 %v7112_v39, %v7036_v22  ;;  %v9640_v17 = vpop.f32.mrb[177].mxu0  ;;  %v8575_v39 = vld [vmem:[%s13134_s8] ss:$0 sm:$0xff]  ;;  %s7964_s8 = sshll.u32 %s10314_s6, 4  ;;  %s7965_s8 = int_to_ptr.vmem [resolvable:$true] %s7964_s8 }
 0x641   :  { %v7115_v6 = vpop.f32.mrb[178].mxu0  ;;  %s10288_s25 = scalar_lea.vmem %s7965_s8, 32  ;;  %p10293_p1 = scmp.lt.s32.totalorder %s7965_s8, %s7965_s8 }
 0x642   :  { %v9641_v60 = vpop.f32.mrb[179].mxu0  ;;  %p10289_p0 = scmp.ne.s32.totalorder %s7965_s8, %s10288_s25  ;;  %p10294_p2 = scmp.lt.s32.totalorder %s10288_s25, %s10288_s25 }
 0x644   :  { %p10295_p3 = por %p10294_p2, %p10293_p1 }
 0x646   :  { %p10296_p4 = pnand %p10295_p3, %p10289_p0 }
 0x647   :  { %v7177_v43 = vpop.f32.mrb[180].mxu0 }
 0x648   :  { %v7183_v15 = vadd.f32 %v7177_v43, %v7118_v41  ;;  %v9648_v54 = vpop.f32.mrb[181].mxu0 }
 0x649   :  { %v7180_v49 = vpop.f32.mrb[182].mxu0 }
 0x64a   :  { %v9649_v0 = vpop.f32.mrb[183].mxu0 }
 0x64f   :  { %v7242_v63 = vpop.f32.mrb[184].mxu0 }
 0x650   :  { %v7248_v36 = vadd.f32 %v7242_v63, %v7183_v15  ;;  %v9656_v8 = vpop.f32.mrb[185].mxu0 }
 0x651   :  { %v7245_v59 = vpop.f32.mrb[186].mxu0 }
 0x652   :  { %v9657_v9 = vpop.f32.mrb[187].mxu0 }
 0x657   :  { %v7307_v34 = vpop.f32.mrb[188].mxu0 }
 0x658   :  { %v7313_v53 = vadd.f32 %v7307_v34, %v7248_v36  ;;  %v9664_v16 = vpop.f32.mrb[189].mxu0 }
 0x659   :  { %v7310_v5 = vpop.f32.mrb[190].mxu0 }
 0x65a   :  { %v9665_v62 = vpop.f32.mrb[191].mxu0 }
 0x65f   :  { %v7389_v13 = vpop.f32.mrb[192].mxu0 }
 0x660   :  { %v7395_v4 = vadd.f32 %v7389_v13, %v7313_v53  ;;  %v9672_v38 = vpop.f32.mrb[193].mxu0 }
 0x661   :  { %v7392_v50 = vpop.f32.mrb[194].mxu0 }
 0x662   :  { %v9673_v12 = vpop.f32.mrb[195].mxu0 }
 0x667   :  { %v7454_v48 = vpop.f32.mrb[196].mxu0 }
 0x668   :  { %v7460_v52 = vadd.f32 %v7454_v48, %v7395_v4  ;;  %v9680_v30 = vpop.f32.mrb[197].mxu0 }
 0x669   :  { %v7457_v7 = vpop.f32.mrb[198].mxu0 }
 0x66a   :  { %v9681_v55 = vpop.f32.mrb[199].mxu0 }
 0x66f   :  { %v7519_v56 = vpop.f32.mrb[200].mxu0 }
 0x670   :  { %v7525_v45 = vadd.f32 %v7519_v56, %v7460_v52  ;;  %v9688_v42 = vpop.f32.mrb[201].mxu0 }
 0x671   :  { %v7522_v18 = vpop.f32.mrb[202].mxu0 }
 0x672   :  { %v9689_v33 = vpop.f32.mrb[203].mxu0 }
 0x677   :  { %v7584_v11 = vpop.f32.mrb[204].mxu0 }
 0x678   :  { %v7590_v46 = vadd.f32 %v7584_v11, %v7525_v45  ;;  %v9696_v44 = vpop.f32.mrb[205].mxu0 }
 0x679   :  { %v7587_v10 = vpop.f32.mrb[206].mxu0 }
 0x67a   :  { %v9697_v47 = vpop.f32.mrb[207].mxu0 }
 0x67f   :  { %v7666_v61 = vpop.f32.mrb[208].mxu0 }
 0x680   :  { %v7672_v57 = vadd.f32 %v7666_v61, %v7590_v46  ;;  %v9704_v21 = vpop.f32.mrb[209].mxu0 }
 0x681   :  { %v7669_v20 = vpop.f32.mrb[210].mxu0 }
 0x682   :  { %v9705_v35 = vpop.f32.mrb[211].mxu0 }
 0x687   :  { %v7731_v2 = vpop.f32.mrb[212].mxu0 }
 0x688   :  { %v7737_v28 = vadd.f32 %v7731_v2, %v7672_v57  ;;  %v9712_v58 = vpop.f32.mrb[213].mxu0 }
 0x689   :  { %v7734_v1 = vpop.f32.mrb[214].mxu0 }
 0x68a   :  { %v9713_v19 = vpop.f32.mrb[215].mxu0 }
 0x68f   :  { %v7796_v32 = vpop.f32.mrb[216].mxu0 }
 0x690   :  { %v7802_v27 = vadd.f32 %v7796_v32, %v7737_v28  ;;  %v9720_v51 = vpop.f32.mrb[217].mxu0 }
 0x691   :  { %v7799_v29 = vpop.f32.mrb[218].mxu0 }
 0x692   :  { %v9721_v23 = vpop.f32.mrb[219].mxu0 }
 0x697   :  { %v7861_v14 = vpop.f32.mrb[220].mxu0 }
 0x698   :  { %v7867_v40 = vadd.f32 %v7861_v14, %v7802_v27  ;;  %v9728_v37 = vpop.f32.mrb[221].mxu0 }
 0x699   :  { %v7864_v3 = vpop.f32.mrb[222].mxu0 }
 0x69a   :  { %v7875_v22 = vadd.f32 %v8574_v24, %v7867_v40  ;;  %v9729_v31 = vpop.f32.mrb[223].mxu0 }
 0x69c   :  { %v7876_v25 = vmax.f32 %v7875_v22, 0.0 }
 0x69e   :  { %v7877_v26 = vpack.c.bf16 %v7876_v25, %v7876_v25 }
 0x6a0   :  { %9735 = vmatmul.mubr.msk.bf16.vlgmr.msra.gmra.mrb[224].mxu0 %vm554_vm0, %v7877_v26 }
 0x773   :  { %v7938_v41 = vpop.f32.mrb[224].mxu0 }
 0x774   :  { %v7939_v17 = vadd.f32 %v8575_v39, %v7938_v41  ;;  %v9736_v6 = vpop.f32.mrb[225].mxu0 }
 0x775   :  { %v7941_v60 = vpop.f32.mrb[226].mxu0 }
 0x776   :  { %v9737_v43 = vpop.f32.mrb[227].mxu0  ;;  %v7945_v15 = vsel %vm7944_vm4, %v7939_v17, -inf }
 0x777   :  { %7946 = vmax.xlane.f32.xlu0 %v7945_v15 }
 0x804   :  { %v7947_v54 = vpop.xlane.xlu0 %7946 }
 0x805   :  { %v7948_v49 = vsub.f32 %v7939_v17, %v7947_v54 }
 0x807   :  { %v7949_v0 = vmul.f32 1.442695, %v7948_v49 }
 0x809   :  { %10283 = vpow2.f32 %v7949_v0 }
 0x813   :  { %v10284_v63 = vpop.eup %10283 }
 0x814   :  { %v7951_v36 = vsel %vm7944_vm4, %v10284_v63, 0.0 }
 0x815   :  { %7952 = vadd.xlane.f32.xlu0 %v7951_v36 }
 0x8a2   :  { %v7953_v8 = vpop.xlane.xlu0 %7952 }
 0x8a3   :  { %10285 = vlog2.f32 %v7953_v8 }
 0x8ad   :  { %v10286_v59 = vpop.eup %10285 }
 0x8ae   :  { %v7955_v9 = vmul.f32 0.6931472, %v10286_v59 }
 0x8b0   :  { %v7956_v34 = vsub.f32 %v7948_v49, %v7955_v9 }
 0x8b2   :  { %7957 = vst [vmem:[#allocation3] sm:$0x3] %v7956_v34 }
 0x8b3   :  { %10299 = shalt.err (!%p10296_p4)
}
 0x8b4   :  { %s10300_s28 = scalar_lea.hbm %s13135_s9, 32 }
 0x8b5   :  { %p10301_p5 = scmp.ne.s32.totalorder %s13135_s9, %s10300_s28  ;;  %p10304_p6 = scmp.lt.u32.totalorder %s10300_s28, %s13135_s9 }
 0x8b7   :  { %p10306_p7 = pnand %p10304_p6, %p10301_p5 }
 0x8b9   :  { %10309 = shalt.err (!%p10306_p7)
}
 0x8ba   :  { %7967 = dma.vmem_to_hbm [thread:$0]  %s7965_s8, 32, %s13135_s9, [#allocation4]  }
 0x8bb   :  { %10310 = dma.done.wait [#allocation4], 32  }
 0x8bc   :  { %10311 = vsyncadd [#allocation4], 4294967264 }
 0x8bd   :  { %7971 = vsyncpa [#allocation4], 1 }

</bundles_post_ra>
